<compile_context>
chip_gen: v5e
topology: v5e:2x2
jax: 0.10.0
libtpu: 0.0.40
codegen_flags: <defaults>
</compile_context>

<pallas_src>
import functools

import jax
import jax.numpy as jnp
from jax.experimental import pallas as pl
from jax.experimental.pallas import tpu as pltpu


# ----------------------------------------------------------------------------
# small helpers
# ----------------------------------------------------------------------------

def _round_up(x, m):
    return (x + m - 1) // m * m


def _tile(dim, pref, align):
    """Return (tile, padded_dim): tile<=pref, tile % align == 0 (or full dim)."""
    if dim >= pref:
        return pref, _round_up(dim, pref)
    t = _round_up(dim, align)
    return t, t


# ----------------------------------------------------------------------------
# Tiled GEMM + folded-BN + activation (+ optional fused residual) kernel
# ----------------------------------------------------------------------------

def _gemm_bn_act_kernel(act, has_res, *refs):
    if has_res:
        a_ref, b_ref, s_ref, c_ref, r_ref, o_ref, acc_ref = refs
    else:
        a_ref, b_ref, s_ref, c_ref, o_ref, acc_ref = refs
        r_ref = None

    @pl.when(pl.program_id(2) == 0)
    def _init():
        acc_ref[...] = jnp.zeros_like(acc_ref)

    acc_ref[...] += jnp.dot(a_ref[...], b_ref[...],
                            preferred_element_type=jnp.float32)

    @pl.when(pl.program_id(2) == pl.num_programs(2) - 1)
    def _finalize():
        y = acc_ref[...] * s_ref[...] + c_ref[...]        # BN affine in f32
        if act == "silu":
            y = y * jax.nn.sigmoid(y)                     # EUP co-issues with MXU
        elif act == "sigmoid":
            y = jax.nn.sigmoid(y)
        if r_ref is not None:
            y = y + r_ref[...]                            # fused residual add
        o_ref[...] = y


def gemm_bn_act(a, b, scale, bias, act="none", residual=None):
    """out = act((a @ b) * scale + bias) [+ residual], tiled Pallas GEMM."""
    M, K = a.shape
    Kb, N = b.shape
    assert K == Kb

    tm, Mp = _tile(M, 128, 8)
    tn, Np = _tile(N, 128, 128)
    tk, Kp = _tile(K, 128, 128)

    # bf16 operands for the MXU; BN scale/bias stay f32.
    a_p = jnp.pad(a.astype(jnp.float32), ((0, Mp - M), (0, Kp - K))).astype(jnp.bfloat16)
    b_p = jnp.pad(b.astype(jnp.float32), ((0, Kp - K), (0, Np - N))).astype(jnp.bfloat16)
    s_p = jnp.pad(scale.reshape(1, N).astype(jnp.float32), ((0, 0), (0, Np - N)))
    c_p = jnp.pad(bias.reshape(1, N).astype(jnp.float32), ((0, 0), (0, Np - N)))

    has_res = residual is not None
    inputs = [a_p, b_p, s_p, c_p]
    in_specs = [
        pl.BlockSpec((tm, tk), lambda i, j, k: (i, k)),
        pl.BlockSpec((tk, tn), lambda i, j, k: (k, j)),
        pl.BlockSpec((1, tn), lambda i, j, k: (0, j)),
        pl.BlockSpec((1, tn), lambda i, j, k: (0, j)),
    ]
    if has_res:
        r_p = jnp.pad(residual.astype(jnp.float32), ((0, Mp - M), (0, Np - N)))
        inputs.append(r_p)
        in_specs.append(pl.BlockSpec((tm, tn), lambda i, j, k: (i, j)))

    flops = 2 * Mp * Kp * Np
    transcendentals = Mp * Np if act in ("silu", "sigmoid") else 0
    bytes_accessed = (Mp * Kp + Kp * Np) * 2 + Mp * Np * 4 + 2 * Np * 4
    if has_res:
        bytes_accessed += Mp * Np * 4

    out = pl.pallas_call(
        functools.partial(_gemm_bn_act_kernel, act, has_res),
        grid=(Mp // tm, Np // tn, Kp // tk),
        in_specs=in_specs,
        out_specs=pl.BlockSpec((tm, tn), lambda i, j, k: (i, j)),
        out_shape=jax.ShapeDtypeStruct((Mp, Np), jnp.float32),
        scratch_shapes=[pltpu.VMEM((tm, tn), jnp.float32)],
        compiler_params=pltpu.CompilerParams(
            dimension_semantics=("parallel", "parallel", "arbitrary"),
            vmem_limit_bytes=32 * 1024 * 1024,
        ),
        cost_estimate=pl.CostEstimate(
            flops=flops,
            transcendentals=transcendentals,
            bytes_accessed=bytes_accessed,
        ),
    )(*inputs)
    return out[:M, :N]


# ----------------------------------------------------------------------------
# Depthwise conv kernel: taps leading, channels on lanes, unrolled MAC chain
# ----------------------------------------------------------------------------

def _dw_bn_act_kernel(act, kk, p_ref, w_ref, s_ref, c_ref, o_ref):
    w = w_ref[...].astype(jnp.float32)                    # (KK, Cp)
    acc = jnp.zeros(o_ref.shape, jnp.float32)
    for t in range(kk):                                   # unrolled 9-tap MAC on VPU
        acc = acc + p_ref[t].astype(jnp.float32) * w[t:t + 1, :]
    y = acc * s_ref[...] + c_ref[...]
    if act == "silu":
        y = y * jax.nn.sigmoid(y)
    o_ref[...] = y


def dwconv_bn_act(x, w, scale, bias, stride=1, padding=1, act="silu"):
    N, H, W, C = x.shape
    kh, kw, _ = w.shape
    # tap-major patches: (KK, N, Ho, Wo, C) -> no wrapper transpose needed
    p, Ho, Wo = _extract_patches(x, kh, kw, stride, padding, tap_major=True)
    M = N * Ho * Wo
    KK = kh * kw
    patches = p.reshape(KK, M, C)

    tm, Mp = _tile(M, 256, 8)
    Cp = _round_up(C, 128)
    p_p = jnp.pad(patches, ((0, 0), (0, Mp - M), (0, Cp - C)))
    w_p = jnp.pad(w.reshape(KK, C).astype(jnp.float32), ((0, 0), (0, Cp - C)))
    s_p = jnp.pad(scale.reshape(1, C).astype(jnp.float32), ((0, 0), (0, Cp - C)))
    c_p = jnp.pad(bias.reshape(1, C).astype(jnp.float32), ((0, 0), (0, Cp - C)))

    out = pl.pallas_call(
        functools.partial(_dw_bn_act_kernel, act, KK),
        grid=(Mp // tm,),
        in_specs=[
            pl.BlockSpec((KK, tm, Cp), lambda i: (0, i, 0)),
            pl.BlockSpec((KK, Cp), lambda i: (0, 0)),
            pl.BlockSpec((1, Cp), lambda i: (0, 0)),
            pl.BlockSpec((1, Cp), lambda i: (0, 0)),
        ],
        out_specs=pl.BlockSpec((tm, Cp), lambda i: (i, 0)),
        out_shape=jax.ShapeDtypeStruct((Mp, Cp), jnp.float32),
        compiler_params=pltpu.CompilerParams(dimension_semantics=("parallel",)),
    )(p_p, w_p, s_p, c_p)
    return out[:M, :C].reshape(N, Ho, Wo, C)


# ----------------------------------------------------------------------------
# Fused global-average-pool + SE MLP (pool -> FC -> SiLU -> FC -> sigmoid)
# ----------------------------------------------------------------------------

def _gap_se_gate_kernel(inv_hw, x_ref, w1_ref, b1_ref, w2_ref, b2_ref, o_ref, acc_ref):
    @pl.when(pl.program_id(0) == 0)
    def _init():
        acc_ref[...] = jnp.zeros_like(acc_ref)

    acc_ref[...] += jnp.sum(x_ref[...], axis=1)

    @pl.when(pl.program_id(0) == pl.num_programs(0) - 1)
    def _finalize():
        pooled = acc_ref[...] * inv_hw                                  # (N, Cp)
        h = jnp.dot(pooled, w1_ref[...],
                    preferred_element_type=jnp.float32) + b1_ref[...]
        h = h * jax.nn.sigmoid(h)
        g = jnp.dot(h, w2_ref[...],
                    preferred_element_type=jnp.float32) + b2_ref[...]
        o_ref[...] = jax.nn.sigmoid(g)


def se_pool_gate(xf, p):
    """xf: (N, HW, C) -> gate (N, C).  Pool + SE-MLP in one kernel."""
    N, HW, C = xf.shape
    hid = p["w1"].shape[1]
    thw, HWp = _tile(HW, 256, 8)
    Cp = _round_up(C, 128)
    Hidp = _round_up(hid, 128)

    x_p = jnp.pad(xf, ((0, 0), (0, HWp - HW), (0, Cp - C)))
    w1_p = jnp.pad(p["w1"].astype(jnp.float32), ((0, Cp - C), (0, Hidp - hid)))
    b1_p = jnp.pad(p["b1"].reshape(1, hid).astype(jnp.float32), ((0, 0), (0, Hidp - hid)))
    w2_p = jnp.pad(p["w2"].astype(jnp.float32), ((0, Hidp - hid), (0, Cp - C)))
    b2_p = jnp.pad(p["b2"].reshape(1, C).astype(jnp.float32), ((0, 0), (0, Cp - C)))

    out = pl.pallas_call(
        functools.partial(_gap_se_gate_kernel, 1.0 / HW),
        grid=(HWp // thw,),
        in_specs=[
            pl.BlockSpec((N, thw, Cp), lambda j: (0, j, 0)),
            pl.BlockSpec((Cp, Hidp), lambda j: (0, 0)),
            pl.BlockSpec((1, Hidp), lambda j: (0, 0)),
            pl.BlockSpec((Hidp, Cp), lambda j: (0, 0)),
            pl.BlockSpec((1, Cp), lambda j: (0, 0)),
        ],
        out_specs=pl.BlockSpec((N, Cp), lambda j: (0, 0)),
        out_shape=jax.ShapeDtypeStruct((N, Cp), jnp.float32),
        scratch_shapes=[pltpu.VMEM((N, Cp), jnp.float32)],
        compiler_params=pltpu.CompilerParams(dimension_semantics=("arbitrary",)),
    )(x_p, w1_p, b1_p, w2_p, b2_p)
    return out[:, :C]


def _se_apply_kernel(x_ref, g_ref, o_ref):
    o_ref[...] = x_ref[...] * g_ref[...]


def se_apply(x, gate):  # x (N, HW, C), gate (N, C)
    N, HW, C = x.shape
    thw, HWp = _tile(HW, 256, 8)
    Cp = _round_up(C, 128)
    x_p = jnp.pad(x, ((0, 0), (0, HWp - HW), (0, Cp - C)))
    g_p = jnp.pad(gate, ((0, 0), (0, Cp - C))).reshape(N, 1, Cp)
    out = pl.pallas_call(
        _se_apply_kernel,
        grid=(N, HWp // thw),
        in_specs=[
            pl.BlockSpec((1, thw, Cp), lambda b, j: (b, j, 0)),
            pl.BlockSpec((1, 1, Cp), lambda b, j: (b, 0, 0)),
        ],
        out_specs=pl.BlockSpec((1, thw, Cp), lambda b, j: (b, j, 0)),
        out_shape=jax.ShapeDtypeStruct((N, HWp, Cp), jnp.float32),
        compiler_params=pltpu.CompilerParams(
            dimension_semantics=("parallel", "parallel")),
    )(x_p, g_p)
    return out[:, :HW, :C]


def se_block(x, p):
    N, H, W, C = x.shape
    xf = x.reshape(N, H * W, C)
    gate = se_pool_gate(xf, p)            # fused pool + MLP + sigmoid
    # TODO(synk): fuse the gate multiply into the following 1x1 project GEMM
    # (needs per-batch-row scaling of the GEMM A operand).
    return se_apply(xf, gate).reshape(N, H, W, C)


# ----------------------------------------------------------------------------
# Fused global-average-pool + linear classifier (head)
# ----------------------------------------------------------------------------

def _gap_fc_kernel(inv_hw, x_ref, w_ref, b_ref, o_ref, acc_ref):
    @pl.when(pl.program_id(0) == 0)
    def _init():
        acc_ref[...] = jnp.zeros_like(acc_ref)

    acc_ref[...] += jnp.sum(x_ref[...], axis=1)

    @pl.when(pl.program_id(0) == pl.num_programs(0) - 1)
    def _finalize():
        feat = acc_ref[...] * inv_hw                                    # (N, Cp)
        o_ref[...] = jnp.dot(feat, w_ref[...],
                             preferred_element_type=jnp.float32) + b_ref[...]


def global_pool_classifier(x, w, b):
    """x: (N, H, W, C) -> logits (N, num_classes); pool + FC fused."""
    N, H, W, C = x.shape
    HW = H * W
    num_classes = w.shape[1]
    xf = x.reshape(N, HW, C)
    thw, HWp = _tile(HW, 256, 8)
    Cp = _round_up(C, 128)
    Ncls = _round_up(num_classes, 128)

    x_p = jnp.pad(xf, ((0, 0), (0, HWp - HW), (0, Cp - C)))
    w_p = jnp.pad(w.astype(jnp.float32), ((0, Cp - C), (0, Ncls - num_classes)))
    b_p = jnp.pad(b.reshape(1, num_classes).astype(jnp.float32),
                  ((0, 0), (0, Ncls - num_classes)))

    out = pl.pallas_call(
        functools.partial(_gap_fc_kernel, 1.0 / HW),
        grid=(HWp // thw,),
        in_specs=[
            pl.BlockSpec((N, thw, Cp), lambda j: (0, j, 0)),
            pl.BlockSpec((Cp, Ncls), lambda j: (0, 0)),
            pl.BlockSpec((1, Ncls), lambda j: (0, 0)),
        ],
        out_specs=pl.BlockSpec((N, Ncls), lambda j: (0, 0)),
        out_shape=jax.ShapeDtypeStruct((N, Ncls), jnp.float32),
        scratch_shapes=[pltpu.VMEM((N, Cp), jnp.float32)],
        compiler_params=pltpu.CompilerParams(dimension_semantics=("arbitrary",)),
    )(x_p, w_p, b_p)
    return out[:, :num_classes]


# ----------------------------------------------------------------------------
# Cross-entropy (tiny; single-block kernel)
# ----------------------------------------------------------------------------

def _ce_kernel(logits_ref, onehot_ref, o_ref):
    z = logits_ref[...]
    m = jnp.max(z, axis=-1, keepdims=True)
    zs = z - m
    lse = jnp.log(jnp.sum(jnp.exp(zs), axis=-1, keepdims=True))
    nll = lse - jnp.sum(onehot_ref[...] * zs, axis=-1, keepdims=True)  # (B, 1)
    o_ref[...] = jnp.mean(nll, axis=0, keepdims=True)                  # (1, 1)


def cross_entropy(logits, onehot):
    out = pl.pallas_call(
        _ce_kernel,
        out_shape=jax.ShapeDtypeStruct((1, 1), jnp.float32),
    )(logits.astype(jnp.float32), onehot.astype(jnp.float32))
    return out[0, 0]


# ----------------------------------------------------------------------------
# Conv helpers (patch extraction is pure slicing glue; GEMM runs in Pallas)
# TODO(synk): for production resolutions, move im2col inside the GEMM kernel
# (accumulate kh*kw shifted 1x1 GEMMs) instead of materializing patches.
# ----------------------------------------------------------------------------

def _extract_patches(x, kh, kw, stride, padding, tap_major=False):
    N, H, W, C = x.shape
    xp = jnp.pad(x, ((0, 0), (padding, padding), (padding, padding), (0, 0)))
    Ho = (H + 2 * padding - kh) // stride + 1
    Wo = (W + 2 * padding - kw) // stride + 1
    taps = []
    for i in range(kh):
        for j in range(kw):
            taps.append(xp[:, i:i + Ho * stride:stride, j:j + Wo * stride:stride, :])
    axis = 0 if tap_major else 3
    p = jnp.stack(taps, axis=axis)  # tap_major: (KK,N,Ho,Wo,C), else (N,Ho,Wo,KK,C)
    return p, Ho, Wo


def conv_bn_act(x, w, scale, bias, stride=1, padding=0, act="silu", residual=None):
    N, H, W, Cin = x.shape
    kh, kw, _, Cout = w.shape
    if kh == 1 and kw == 1 and stride == 1 and padding == 0:
        a = x.reshape(N * H * W, Cin)
        wm = w.reshape(Cin, Cout)
        Ho, Wo = H, W
    else:
        p, Ho, Wo = _extract_patches(x, kh, kw, stride, padding)
        a = p.reshape(N * Ho * Wo, kh * kw * Cin)
        wm = w.reshape(kh * kw * Cin, Cout)
    res2 = residual.reshape(N * Ho * Wo, Cout) if residual is not None else None
    out = gemm_bn_act(a, wm, scale, bias, act, residual=res2)
    return out.reshape(N, Ho, Wo, Cout)


# ----------------------------------------------------------------------------
# Parameters (deterministic synthetic init) and forward pass
# ----------------------------------------------------------------------------

def init_params(key, num_classes=10):
    counter = [0]

    def rnd(shape, scale=0.1):
        counter[0] += 1
        return scale * jax.random.normal(jax.random.fold_in(key, counter[0]), shape, jnp.float32)

    def bn(c):
        return 1.0 + rnd((c,), 0.02), rnd((c,), 0.02)

    params = {}
    s, b = bn(16)
    params["stem"] = {"w": rnd((3, 3, 3, 16)), "s": s, "b": b}
    s, b = bn(16)
    params["fmb1"] = {"w": rnd((3, 3, 16, 16)), "s": s, "b": b}
    se, be = bn(32)
    sp, bp = bn(24)
    params["fmb2"] = {"we": rnd((3, 3, 16, 32)), "se": se, "be": be,
                      "wp": rnd((1, 1, 32, 24)), "sp": sp, "bp": bp}
    se, be = bn(96)
    sd, bd = bn(96)
    sp, bp = bn(24)
    params["mb1"] = {
        "we": rnd((1, 1, 24, 96)), "se": se, "be": be,
        "wd": rnd((3, 3, 96)), "sd": sd, "bd": bd,
        "se_mod": {"w1": rnd((96, 6)), "b1": rnd((6,), 0.02),
                   "w2": rnd((6, 96)), "b2": rnd((96,), 0.02)},
        "wp": rnd((1, 1, 96, 24)), "sp": sp, "bp": bp,
    }
    s, b = bn(64)
    params["head"] = {"w": rnd((1, 1, 24, 64)), "s": s, "b": b}
    params["cls"] = {"w": rnd((64, num_classes)), "b": rnd((num_classes,), 0.02)}
    return params


def effnetv2_forward(params, x_nchw, labels=None, num_classes=10):
    # NCHW (PyTorch convention) -> NHWC for TPU-friendly kernels
    x = jnp.transpose(x_nchw, (0, 2, 3, 1)).astype(jnp.float32)

    # Stem: 3x3 conv stride 2 + BN + SiLU
    p = params["stem"]
    x = conv_bn_act(x, p["w"], p["s"], p["b"], stride=2, padding=1, act="silu")

    # Stage 1: Fused-MBConv (expand=1, stride=1, 16->16), residual fused in GEMM epilogue
    p = params["fmb1"]
    x = conv_bn_act(x, p["w"], p["s"], p["b"], stride=1, padding=1, act="silu", residual=x)

    # Stage 2: Fused-MBConv (expand=2, stride=2, 16->24)
    p = params["fmb2"]
    y = conv_bn_act(x, p["we"], p["se"], p["be"], stride=2, padding=1, act="silu")
    x = conv_bn_act(y, p["wp"], p["sp"], p["bp"], stride=1, padding=0, act="none")

    # Stage 3: MBConv (expand=4, stride=1, 24->24) with SE, residual fused in project GEMM
    p = params["mb1"]
    y = conv_bn_act(x, p["we"], p["se"], p["be"], act="silu")                  # 1x1 expand
    y = dwconv_bn_act(y, p["wd"], p["sd"], p["bd"], stride=1, padding=1)       # 3x3 depthwise
    y = se_block(y, p["se_mod"])                                               # squeeze-excite
    x = conv_bn_act(y, p["wp"], p["sp"], p["bp"], act="none", residual=x)      # 1x1 project + add

    # Head: 1x1 conv -> fused global-average-pool + linear classifier
    p = params["head"]
    x = conv_bn_act(x, p["w"], p["s"], p["b"], act="silu")
    logits = global_pool_classifier(x, params["cls"]["w"], params["cls"]["b"])

    if labels is not None:
        onehot = jax.nn.one_hot(labels.reshape(-1), num_classes, dtype=jnp.float32)
        loss = cross_entropy(logits.reshape(-1, num_classes), onehot)
        return {"loss": loss, "logits": logits}
    return logits


if __name__ == "__main__":
    num_classes = 10
    key = jax.random.PRNGKey(0)
    pkey, xkey, lkey = jax.random.split(key, 3)

    params = init_params(pkey, num_classes=num_classes)
    x = jax.random.normal(xkey, (2, 3, 16, 16), jnp.float32)          # NCHW like PyTorch
    labels = jax.random.randint(lkey, (2,), 0, num_classes)

    logits_fn = jax.jit(lambda p, xx: effnetv2_forward(p, xx, num_classes=num_classes))
    loss_fn = jax.jit(lambda p, xx, yy: effnetv2_forward(p, xx, labels=yy,
                                                         num_classes=num_classes))

    logits = logits_fn(params, x)
    out = loss_fn(params, x, labels)

    jax.block_until_ready((logits, out["loss"], out["logits"]))
    assert logits.shape == (2, num_classes)
    assert out["logits"].shape == (2, num_classes)
    assert out["loss"].shape == ()
    print("KERNEL_OK")
</pallas_src>

<mosaic_0001>
module attributes {stable_mosaic.version = 11 : i64} {
  func.func @_gemm_bn_act_kernel(%arg0: i32, %arg1: i32, %arg2: i32, %arg3: memref<128x128xbf16, #tpu.memory_space<vmem>>, %arg4: memref<128x128xbf16, #tpu.memory_space<vmem>>, %arg5: memref<1x128xf32, #tpu.memory_space<vmem>>, %arg6: memref<1x128xf32, #tpu.memory_space<vmem>>, %arg7: memref<128x128xf32, #tpu.memory_space<vmem>>, %arg8: memref<128x128xf32, #tpu.memory_space<vmem>>) attributes {dimension_semantics = [#tpu.dimension_semantics<parallel>, #tpu.dimension_semantics<parallel>, #tpu.dimension_semantics<arbitrary>], iteration_bounds = array<i64: 1, 1, 1>, scalar_prefetch = 0 : i64, scratch_operands = 1 : i64, tpu.core_type = #tpu.core_type<tc>, window_params = [{transform_indices = @transform_0, window_bounds = array<i64: 128, 128>}, {transform_indices = @transform_1, window_bounds = array<i64: 128, 128>}, {transform_indices = @transform_2, window_bounds = array<i64: 1, 128>}, {transform_indices = @transform_3, window_bounds = array<i64: 1, 128>}, {transform_indices = @transform_4, window_bounds = array<i64: 128, 128>}]} {
    %c0_i32 = arith.constant 0 : i32
    %0 = arith.cmpi eq, %arg2, %c0_i32 : i32
    %1 = arith.extui %0 : i1 to i32
    %c0_i32_0 = arith.constant 0 : i32
    %2 = arith.cmpi ne, %1, %c0_i32_0 : i32
    scf.if %2 {
      %cst_10 = arith.constant 0.000000e+00 : f32
      %12 = vector.broadcast %cst_10 : f32 to vector<128x128xf32>
      %c0_11 = arith.constant 0 : index
      %c0_12 = arith.constant 0 : index
      %13 = vector.load %arg8[%c0_11, %c0_12] : memref<128x128xf32, #tpu.memory_space<vmem>>, vector<128x128xf32>
      tpu.vector_store %arg8[%c0_11, %c0_12], %12 {strides = array<i32>} : memref<128x128xf32, #tpu.memory_space<vmem>>, vector<128x128xf32>,
    } else {
    }
    %c0 = arith.constant 0 : index
    %c0_1 = arith.constant 0 : index
    %3 = vector.load %arg8[%c0, %c0_1] : memref<128x128xf32, #tpu.memory_space<vmem>>, vector<128x128xf32>
    %c0_2 = arith.constant 0 : index
    %c0_3 = arith.constant 0 : index
    %4 = vector.load %arg3[%c0_2, %c0_3] : memref<128x128xbf16, #tpu.memory_space<vmem>>, vector<128x128xbf16>
    %c0_4 = arith.constant 0 : index
    %c0_5 = arith.constant 0 : index
    %5 = vector.load %arg4[%c0_4, %c0_5] : memref<128x128xbf16, #tpu.memory_space<vmem>>, vector<128x128xbf16>
    %cst = arith.constant dense<0.000000e+00> : vector<128x128xf32>
    %6 = tpu.matmul %4, %5, %cst {dimension_numbers = #tpu.dot_dimension_numbers<[1], [0], [0], [1], [0, 0, 1, 1], [], []>} : vector<128x128xbf16>, vector<128x128xbf16>, vector<128x128xf32> -> vector<128x128xf32>
    %7 = arith.addf %3, %6 : vector<128x128xf32>
    %c0_6 = arith.constant 0 : index
    %c0_7 = arith.constant 0 : index
    %8 = vector.load %arg8[%c0_6, %c0_7] : memref<128x128xf32, #tpu.memory_space<vmem>>, vector<128x128xf32>
    tpu.vector_store %arg8[%c0_6, %c0_7], %7 {strides = array<i32>} : memref<128x128xf32, #tpu.memory_space<vmem>>, vector<128x128xf32>,
    %c0_i32_8 = arith.constant 0 : i32
    %9 = arith.cmpi eq, %arg2, %c0_i32_8 : i32
    %10 = arith.extui %9 : i1 to i32
    %c0_i32_9 = arith.constant 0 : i32
    %11 = arith.cmpi ne, %10, %c0_i32_9 : i32
    scf.if %11 {
      %c0_10 = arith.constant 0 : index
      %c0_11 = arith.constant 0 : index
      %12 = vector.load %arg8[%c0_10, %c0_11] : memref<128x128xf32, #tpu.memory_space<vmem>>, vector<128x128xf32>
      %c0_12 = arith.constant 0 : index
      %c0_13 = arith.constant 0 : index
      %13 = vector.load %arg5[%c0_12, %c0_13] : memref<1x128xf32, #tpu.memory_space<vmem>>, vector<1x128xf32>
      %14 = vector.broadcast %13 : vector<1x128xf32> to vector<128x128xf32>
      %15 = arith.mulf %12, %14 : vector<128x128xf32>
      %c0_14 = arith.constant 0 : index
      %c0_15 = arith.constant 0 : index
      %16 = vector.load %arg6[%c0_14, %c0_15] : memref<1x128xf32, #tpu.memory_space<vmem>>, vector<1x128xf32>
      %17 = vector.broadcast %16 : vector<1x128xf32> to vector<128x128xf32>
      %18 = arith.addf %15, %17 : vector<128x128xf32>
      %19 = arith.negf %18 : vector<128x128xf32>
      %20 = math.exp %19 : vector<128x128xf32>
      %cst_16 = arith.constant 1.000000e+00 : f32
      %21 = vector.broadcast %cst_16 : f32 to vector<128x128xf32>
      %22 = arith.addf %21, %20 : vector<128x128xf32>
      %23 = arith.divf %21, %22 : vector<128x128xf32>
      %24 = arith.mulf %18, %23 : vector<128x128xf32>
      %c0_17 = arith.constant 0 : index
      %c0_18 = arith.constant 0 : index
      %25 = vector.load %arg7[%c0_17, %c0_18] : memref<128x128xf32, #tpu.memory_space<vmem>>, vector<128x128xf32>
      tpu.vector_store %arg7[%c0_17, %c0_18], %24 {strides = array<i32>} : memref<128x128xf32, #tpu.memory_space<vmem>>, vector<128x128xf32>,
    } else {
    }
    return
  }
  func.func @transform_0(%arg0: i32, %arg1: i32, %arg2: i32) -> (i32, i32) {
    %c0_i32 = arith.constant 0 : i32
    return %arg0, %arg2 : i32, i32
  }
  func.func @transform_1(%arg0: i32, %arg1: i32, %arg2: i32) -> (i32, i32) {
    %c0_i32 = arith.constant 0 : i32
    return %arg2, %arg1 : i32, i32
  }
  func.func @transform_2(%arg0: i32, %arg1: i32, %arg2: i32) -> (i32, i32) {
    %c0_i32 = arith.constant 0 : i32
    %c0_i32_0 = arith.constant 0 : i32
    return %c0_i32, %arg1 : i32, i32
  }
  func.func @transform_3(%arg0: i32, %arg1: i32, %arg2: i32) -> (i32, i32) {
    %c0_i32 = arith.constant 0 : i32
    %c0_i32_0 = arith.constant 0 : i32
    return %c0_i32, %arg1 : i32, i32
  }
  func.func @transform_4(%arg0: i32, %arg1: i32, %arg2: i32) -> (i32, i32) {
    %c0_i32 = arith.constant 0 : i32
    return %arg0, %arg1 : i32, i32
  }
}

module attributes {stable_mosaic.version = 11 : i64} {
  func.func @_gemm_bn_act_kernel(%arg0: i32, %arg1: i32, %arg2: i32, %arg3: memref<128x128xbf16, #tpu.memory_space<vmem>>, %arg4: memref<128x128xbf16, #tpu.memory_space<vmem>>, %arg5: memref<1x128xf32, #tpu.memory_space<vmem>>, %arg6: memref<1x128xf32, #tpu.memory_space<vmem>>, %arg7: memref<128x128xf32, #tpu.memory_space<vmem>>, %arg8: memref<128x128xf32, #tpu.memory_space<vmem>>, %arg9: memref<128x128xf32, #tpu.memory_space<vmem>>) attributes {dimension_semantics = [#tpu.dimension_semantics<parallel>, #tpu.dimension_semantics<parallel>, #tpu.dimension_semantics<arbitrary>], iteration_bounds = array<i64: 1, 1, 2>, scalar_prefetch = 0 : i64, scratch_operands = 1 : i64, tpu.core_type = #tpu.core_type<tc>, window_params = [{transform_indices = @transform_0, window_bounds = array<i64: 128, 128>}, {transform_indices = @transform_1, window_bounds = array<i64: 128, 128>}, {transform_indices = @transform_2, window_bounds = array<i64: 1, 128>}, {transform_indices = @transform_3, window_bounds = array<i64: 1, 128>}, {transform_indices = @transform_4, window_bounds = array<i64: 128, 128>}, {transform_indices = @transform_5, window_bounds = array<i64: 128, 128>}]} {
    %c0_i32 = arith.constant 0 : i32
    %0 = arith.cmpi eq, %arg2, %c0_i32 : i32
    %1 = arith.extui %0 : i1 to i32
    %c0_i32_0 = arith.constant 0 : i32
    %2 = arith.cmpi ne, %1, %c0_i32_0 : i32
    scf.if %2 {
      %cst_9 = arith.constant 0.000000e+00 : f32
      %12 = vector.broadcast %cst_9 : f32 to vector<128x128xf32>
      %c0_10 = arith.constant 0 : index
      %c0_11 = arith.constant 0 : index
      %13 = vector.load %arg9[%c0_10, %c0_11] : memref<128x128xf32, #tpu.memory_space<vmem>>, vector<128x128xf32>
      tpu.vector_store %arg9[%c0_10, %c0_11], %12 {strides = array<i32>} : memref<128x128xf32, #tpu.memory_space<vmem>>, vector<128x128xf32>,
    } else {
    }
    %c0 = arith.constant 0 : index
    %c0_1 = arith.constant 0 : index
    %3 = vector.load %arg9[%c0, %c0_1] : memref<128x128xf32, #tpu.memory_space<vmem>>, vector<128x128xf32>
    %c0_2 = arith.constant 0 : index
    %c0_3 = arith.constant 0 : index
    %4 = vector.load %arg3[%c0_2, %c0_3] : memref<128x128xbf16, #tpu.memory_space<vmem>>, vector<128x128xbf16>
    %c0_4 = arith.constant 0 : index
    %c0_5 = arith.constant 0 : index
    %5 = vector.load %arg4[%c0_4, %c0_5] : memref<128x128xbf16, #tpu.memory_space<vmem>>, vector<128x128xbf16>
    %cst = arith.constant dense<0.000000e+00> : vector<128x128xf32>
    %6 = tpu.matmul %4, %5, %cst {dimension_numbers = #tpu.dot_dimension_numbers<[1], [0], [0], [1], [0, 0, 1, 1], [], []>} : vector<128x128xbf16>, vector<128x128xbf16>, vector<128x128xf32> -> vector<128x128xf32>
    %7 = arith.addf %3, %6 : vector<128x128xf32>
    %c0_6 = arith.constant 0 : index
    %c0_7 = arith.constant 0 : index
    %8 = vector.load %arg9[%c0_6, %c0_7] : memref<128x128xf32, #tpu.memory_space<vmem>>, vector<128x128xf32>
    tpu.vector_store %arg9[%c0_6, %c0_7], %7 {strides = array<i32>} : memref<128x128xf32, #tpu.memory_space<vmem>>, vector<128x128xf32>,
    %c1_i32 = arith.constant 1 : i32
    %9 = arith.cmpi eq, %arg2, %c1_i32 : i32
    %10 = arith.extui %9 : i1 to i32
    %c0_i32_8 = arith.constant 0 : i32
    %11 = arith.cmpi ne, %10, %c0_i32_8 : i32
    scf.if %11 {
      %c0_9 = arith.constant 0 : index
      %c0_10 = arith.constant 0 : index
      %12 = vector.load %arg9[%c0_9, %c0_10] : memref<128x128xf32, #tpu.memory_space<vmem>>, vector<128x128xf32>
      %c0_11 = arith.constant 0 : index
      %c0_12 = arith.constant 0 : index
      %13 = vector.load %arg5[%c0_11, %c0_12] : memref<1x128xf32, #tpu.memory_space<vmem>>, vector<1x128xf32>
      %14 = vector.broadcast %13 : vector<1x128xf32> to vector<128x128xf32>
      %15 = arith.mulf %12, %14 : vector<128x128xf32>
      %c0_13 = arith.constant 0 : index
      %c0_14 = arith.constant 0 : index
      %16 = vector.load %arg6[%c0_13, %c0_14] : memref<1x128xf32, #tpu.memory_space<vmem>>, vector<1x128xf32>
      %17 = vector.broadcast %16 : vector<1x128xf32> to vector<128x128xf32>
      %18 = arith.addf %15, %17 : vector<128x128xf32>
      %19 = arith.negf %18 : vector<128x128xf32>
      %20 = math.exp %19 : vector<128x128xf32>
      %cst_15 = arith.constant 1.000000e+00 : f32
      %21 = vector.broadcast %cst_15 : f32 to vector<128x128xf32>
      %22 = arith.addf %21, %20 : vector<128x128xf32>
      %23 = arith.divf %21, %22 : vector<128x128xf32>
      %24 = arith.mulf %18, %23 : vector<128x128xf32>
      %c0_16 = arith.constant 0 : index
      %c0_17 = arith.constant 0 : index
      %25 = vector.load %arg7[%c0_16, %c0_17] : memref<128x128xf32, #tpu.memory_space<vmem>>, vector<128x128xf32>
      %26 = arith.addf %24, %25 : vector<128x128xf32>
      %c0_18 = arith.constant 0 : index
      %c0_19 = arith.constant 0 : index
      %27 = vector.load %arg8[%c0_18, %c0_19] : memref<128x128xf32, #tpu.memory_space<vmem>>, vector<128x128xf32>
      tpu.vector_store %arg8[%c0_18, %c0_19], %26 {strides = array<i32>} : memref<128x128xf32, #tpu.memory_space<vmem>>, vector<128x128xf32>,
    } else {
    }
    return
  }
  func.func @transform_0(%arg0: i32, %arg1: i32, %arg2: i32) -> (i32, i32) {
    %c0_i32 = arith.constant 0 : i32
    return %arg0, %arg2 : i32, i32
  }
  func.func @transform_1(%arg0: i32, %arg1: i32, %arg2: i32) -> (i32, i32) {
    %c0_i32 = arith.constant 0 : i32
    return %arg2, %arg1 : i32, i32
  }
  func.func @transform_2(%arg0: i32, %arg1: i32, %arg2: i32) -> (i32, i32) {
    %c0_i32 = arith.constant 0 : i32
    %c0_i32_0 = arith.constant 0 : i32
    return %c0_i32, %arg1 : i32, i32
  }
  func.func @transform_3(%arg0: i32, %arg1: i32, %arg2: i32) -> (i32, i32) {
    %c0_i32 = arith.constant 0 : i32
    %c0_i32_0 = arith.constant 0 : i32
    return %c0_i32, %arg1 : i32, i32
  }
  func.func @transform_4(%arg0: i32, %arg1: i32, %arg2: i32) -> (i32, i32) {
    %c0_i32 = arith.constant 0 : i32
    return %arg0, %arg1 : i32, i32
  }
  func.func @transform_5(%arg0: i32, %arg1: i32, %arg2: i32) -> (i32, i32) {
    %c0_i32 = arith.constant 0 : i32
    return %arg0, %arg1 : i32, i32
  }
}

module attributes {stable_mosaic.version = 11 : i64} {
  func.func @_gemm_bn_act_kernel(%arg0: i32, %arg1: i32, %arg2: i32, %arg3: memref<32x128xbf16, #tpu.memory_space<vmem>>, %arg4: memref<128x128xbf16, #tpu.memory_space<vmem>>, %arg5: memref<1x128xf32, #tpu.memory_space<vmem>>, %arg6: memref<1x128xf32, #tpu.memory_space<vmem>>, %arg7: memref<32x128xf32, #tpu.memory_space<vmem>>, %arg8: memref<32x128xf32, #tpu.memory_space<vmem>>) attributes {dimension_semantics = [#tpu.dimension_semantics<parallel>, #tpu.dimension_semantics<parallel>, #tpu.dimension_semantics<arbitrary>], iteration_bounds = array<i64: 1, 1, 2>, scalar_prefetch = 0 : i64, scratch_operands = 1 : i64, tpu.core_type = #tpu.core_type<tc>, window_params = [{transform_indices = @transform_0, window_bounds = array<i64: 32, 128>}, {transform_indices = @transform_1, window_bounds = array<i64: 128, 128>}, {transform_indices = @transform_2, window_bounds = array<i64: 1, 128>}, {transform_indices = @transform_3, window_bounds = array<i64: 1, 128>}, {transform_indices = @transform_4, window_bounds = array<i64: 32, 128>}]} {
    %c0_i32 = arith.constant 0 : i32
    %0 = arith.cmpi eq, %arg2, %c0_i32 : i32
    %1 = arith.extui %0 : i1 to i32
    %c0_i32_0 = arith.constant 0 : i32
    %2 = arith.cmpi ne, %1, %c0_i32_0 : i32
    scf.if %2 {
      %cst_9 = arith.constant 0.000000e+00 : f32
      %12 = vector.broadcast %cst_9 : f32 to vector<32x128xf32>
      %c0_10 = arith.constant 0 : index
      %c0_11 = arith.constant 0 : index
      %13 = vector.load %arg8[%c0_10, %c0_11] : memref<32x128xf32, #tpu.memory_space<vmem>>, vector<32x128xf32>
      tpu.vector_store %arg8[%c0_10, %c0_11], %12 {strides = array<i32>} : memref<32x128xf32, #tpu.memory_space<vmem>>, vector<32x128xf32>,
    } else {
    }
    %c0 = arith.constant 0 : index
    %c0_1 = arith.constant 0 : index
    %3 = vector.load %arg8[%c0, %c0_1] : memref<32x128xf32, #tpu.memory_space<vmem>>, vector<32x128xf32>
    %c0_2 = arith.constant 0 : index
    %c0_3 = arith.constant 0 : index
    %4 = vector.load %arg3[%c0_2, %c0_3] : memref<32x128xbf16, #tpu.memory_space<vmem>>, vector<32x128xbf16>
    %c0_4 = arith.constant 0 : index
    %c0_5 = arith.constant 0 : index
    %5 = vector.load %arg4[%c0_4, %c0_5] : memref<128x128xbf16, #tpu.memory_space<vmem>>, vector<128x128xbf16>
    %cst = arith.constant dense<0.000000e+00> : vector<32x128xf32>
    %6 = tpu.matmul %4, %5, %cst {dimension_numbers = #tpu.dot_dimension_numbers<[1], [0], [0], [1], [0, 0, 1, 1], [], []>} : vector<32x128xbf16>, vector<128x128xbf16>, vector<32x128xf32> -> vector<32x128xf32>
    %7 = arith.addf %3, %6 : vector<32x128xf32>
    %c0_6 = arith.constant 0 : index
    %c0_7 = arith.constant 0 : index
    %8 = vector.load %arg8[%c0_6, %c0_7] : memref<32x128xf32, #tpu.memory_space<vmem>>, vector<32x128xf32>
    tpu.vector_store %arg8[%c0_6, %c0_7], %7 {strides = array<i32>} : memref<32x128xf32, #tpu.memory_space<vmem>>, vector<32x128xf32>,
    %c1_i32 = arith.constant 1 : i32
    %9 = arith.cmpi eq, %arg2, %c1_i32 : i32
    %10 = arith.extui %9 : i1 to i32
    %c0_i32_8 = arith.constant 0 : i32
    %11 = arith.cmpi ne, %10, %c0_i32_8 : i32
    scf.if %11 {
      %c0_9 = arith.constant 0 : index
      %c0_10 = arith.constant 0 : index
      %12 = vector.load %arg8[%c0_9, %c0_10] : memref<32x128xf32, #tpu.memory_space<vmem>>, vector<32x128xf32>
      %c0_11 = arith.constant 0 : index
      %c0_12 = arith.constant 0 : index
      %13 = vector.load %arg5[%c0_11, %c0_12] : memref<1x128xf32, #tpu.memory_space<vmem>>, vector<1x128xf32>
      %14 = vector.broadcast %13 : vector<1x128xf32> to vector<32x128xf32>
      %15 = arith.mulf %12, %14 : vector<32x128xf32>
      %c0_13 = arith.constant 0 : index
      %c0_14 = arith.constant 0 : index
      %16 = vector.load %arg6[%c0_13, %c0_14] : memref<1x128xf32, #tpu.memory_space<vmem>>, vector<1x128xf32>
      %17 = vector.broadcast %16 : vector<1x128xf32> to vector<32x128xf32>
      %18 = arith.addf %15, %17 : vector<32x128xf32>
      %19 = arith.negf %18 : vector<32x128xf32>
      %20 = math.exp %19 : vector<32x128xf32>
      %cst_15 = arith.constant 1.000000e+00 : f32
      %21 = vector.broadcast %cst_15 : f32 to vector<32x128xf32>
      %22 = arith.addf %21, %20 : vector<32x128xf32>
      %23 = arith.divf %21, %22 : vector<32x128xf32>
      %24 = arith.mulf %18, %23 : vector<32x128xf32>
      %c0_16 = arith.constant 0 : index
      %c0_17 = arith.constant 0 : index
      %25 = vector.load %arg7[%c0_16, %c0_17] : memref<32x128xf32, #tpu.memory_space<vmem>>, vector<32x128xf32>
      tpu.vector_store %arg7[%c0_16, %c0_17], %24 {strides = array<i32>} : memref<32x128xf32, #tpu.memory_space<vmem>>, vector<32x128xf32>,
    } else {
    }
    return
  }
  func.func @transform_0(%arg0: i32, %arg1: i32, %arg2: i32) -> (i32, i32) {
    %c0_i32 = arith.constant 0 : i32
    return %arg0, %arg2 : i32, i32
  }
  func.func @transform_1(%arg0: i32, %arg1: i32, %arg2: i32) -> (i32, i32) {
    %c0_i32 = arith.constant 0 : i32
    return %arg2, %arg1 : i32, i32
  }
  func.func @transform_2(%arg0: i32, %arg1: i32, %arg2: i32) -> (i32, i32) {
    %c0_i32 = arith.constant 0 : i32
    %c0_i32_0 = arith.constant 0 : i32
    return %c0_i32, %arg1 : i32, i32
  }
  func.func @transform_3(%arg0: i32, %arg1: i32, %arg2: i32) -> (i32, i32) {
    %c0_i32 = arith.constant 0 : i32
    %c0_i32_0 = arith.constant 0 : i32
    return %c0_i32, %arg1 : i32, i32
  }
  func.func @transform_4(%arg0: i32, %arg1: i32, %arg2: i32) -> (i32, i32) {
    %c0_i32 = arith.constant 0 : i32
    return %arg0, %arg1 : i32, i32
  }
}

module attributes {stable_mosaic.version = 11 : i64} {
  func.func @_gemm_bn_act_kernel(%arg0: i32, %arg1: i32, %arg2: i32, %arg3: memref<32x128xbf16, #tpu.memory_space<vmem>>, %arg4: memref<128x128xbf16, #tpu.memory_space<vmem>>, %arg5: memref<1x128xf32, #tpu.memory_space<vmem>>, %arg6: memref<1x128xf32, #tpu.memory_space<vmem>>, %arg7: memref<32x128xf32, #tpu.memory_space<vmem>>, %arg8: memref<32x128xf32, #tpu.memory_space<vmem>>) attributes {dimension_semantics = [#tpu.dimension_semantics<parallel>, #tpu.dimension_semantics<parallel>, #tpu.dimension_semantics<arbitrary>], iteration_bounds = array<i64: 1, 1, 1>, scalar_prefetch = 0 : i64, scratch_operands = 1 : i64, tpu.core_type = #tpu.core_type<tc>, window_params = [{transform_indices = @transform_0, window_bounds = array<i64: 32, 128>}, {transform_indices = @transform_1, window_bounds = array<i64: 128, 128>}, {transform_indices = @transform_2, window_bounds = array<i64: 1, 128>}, {transform_indices = @transform_3, window_bounds = array<i64: 1, 128>}, {transform_indices = @transform_4, window_bounds = array<i64: 32, 128>}]} {
    %c0_i32 = arith.constant 0 : i32
    %0 = arith.cmpi eq, %arg2, %c0_i32 : i32
    %1 = arith.extui %0 : i1 to i32
    %c0_i32_0 = arith.constant 0 : i32
    %2 = arith.cmpi ne, %1, %c0_i32_0 : i32
    scf.if %2 {
      %cst_10 = arith.constant 0.000000e+00 : f32
      %12 = vector.broadcast %cst_10 : f32 to vector<32x128xf32>
      %c0_11 = arith.constant 0 : index
      %c0_12 = arith.constant 0 : index
      %13 = vector.load %arg8[%c0_11, %c0_12] : memref<32x128xf32, #tpu.memory_space<vmem>>, vector<32x128xf32>
      tpu.vector_store %arg8[%c0_11, %c0_12], %12 {strides = array<i32>} : memref<32x128xf32, #tpu.memory_space<vmem>>, vector<32x128xf32>,
    } else {
    }
    %c0 = arith.constant 0 : index
    %c0_1 = arith.constant 0 : index
    %3 = vector.load %arg8[%c0, %c0_1] : memref<32x128xf32, #tpu.memory_space<vmem>>, vector<32x128xf32>
    %c0_2 = arith.constant 0 : index
    %c0_3 = arith.constant 0 : index
    %4 = vector.load %arg3[%c0_2, %c0_3] : memref<32x128xbf16, #tpu.memory_space<vmem>>, vector<32x128xbf16>
    %c0_4 = arith.constant 0 : index
    %c0_5 = arith.constant 0 : index
    %5 = vector.load %arg4[%c0_4, %c0_5] : memref<128x128xbf16, #tpu.memory_space<vmem>>, vector<128x128xbf16>
    %cst = arith.constant dense<0.000000e+00> : vector<32x128xf32>
    %6 = tpu.matmul %4, %5, %cst {dimension_numbers = #tpu.dot_dimension_numbers<[1], [0], [0], [1], [0, 0, 1, 1], [], []>} : vector<32x128xbf16>, vector<128x128xbf16>, vector<32x128xf32> -> vector<32x128xf32>
    %7 = arith.addf %3, %6 : vector<32x128xf32>
    %c0_6 = arith.constant 0 : index
    %c0_7 = arith.constant 0 : index
    %8 = vector.load %arg8[%c0_6, %c0_7] : memref<32x128xf32, #tpu.memory_space<vmem>>, vector<32x128xf32>
    tpu.vector_store %arg8[%c0_6, %c0_7], %7 {strides = array<i32>} : memref<32x128xf32, #tpu.memory_space<vmem>>, vector<32x128xf32>,
    %c0_i32_8 = arith.constant 0 : i32
    %9 = arith.cmpi eq, %arg2, %c0_i32_8 : i32
    %10 = arith.extui %9 : i1 to i32
    %c0_i32_9 = arith.constant 0 : i32
    %11 = arith.cmpi ne, %10, %c0_i32_9 : i32
    scf.if %11 {
      %c0_10 = arith.constant 0 : index
      %c0_11 = arith.constant 0 : index
      %12 = vector.load %arg8[%c0_10, %c0_11] : memref<32x128xf32, #tpu.memory_space<vmem>>, vector<32x128xf32>
      %c0_12 = arith.constant 0 : index
      %c0_13 = arith.constant 0 : index
      %13 = vector.load %arg5[%c0_12, %c0_13] : memref<1x128xf32, #tpu.memory_space<vmem>>, vector<1x128xf32>
      %14 = vector.broadcast %13 : vector<1x128xf32> to vector<32x128xf32>
      %15 = arith.mulf %12, %14 : vector<32x128xf32>
      %c0_14 = arith.constant 0 : index
      %c0_15 = arith.constant 0 : index
      %16 = vector.load %arg6[%c0_14, %c0_15] : memref<1x128xf32, #tpu.memory_space<vmem>>, vector<1x128xf32>
      %17 = vector.broadcast %16 : vector<1x128xf32> to vector<32x128xf32>
      %18 = arith.addf %15, %17 : vector<32x128xf32>
      %c0_16 = arith.constant 0 : index
      %c0_17 = arith.constant 0 : index
      %19 = vector.load %arg7[%c0_16, %c0_17] : memref<32x128xf32, #tpu.memory_space<vmem>>, vector<32x128xf32>
      tpu.vector_store %arg7[%c0_16, %c0_17], %18 {strides = array<i32>} : memref<32x128xf32, #tpu.memory_space<vmem>>, vector<32x128xf32>,
    } else {
    }
    return
  }
  func.func @transform_0(%arg0: i32, %arg1: i32, %arg2: i32) -> (i32, i32) {
    %c0_i32 = arith.constant 0 : i32
    return %arg0, %arg2 : i32, i32
  }
  func.func @transform_1(%arg0: i32, %arg1: i32, %arg2: i32) -> (i32, i32) {
    %c0_i32 = arith.constant 0 : i32
    return %arg2, %arg1 : i32, i32
  }
  func.func @transform_2(%arg0: i32, %arg1: i32, %arg2: i32) -> (i32, i32) {
    %c0_i32 = arith.constant 0 : i32
    %c0_i32_0 = arith.constant 0 : i32
    return %c0_i32, %arg1 : i32, i32
  }
  func.func @transform_3(%arg0: i32, %arg1: i32, %arg2: i32) -> (i32, i32) {
    %c0_i32 = arith.constant 0 : i32
    %c0_i32_0 = arith.constant 0 : i32
    return %c0_i32, %arg1 : i32, i32
  }
  func.func @transform_4(%arg0: i32, %arg1: i32, %arg2: i32) -> (i32, i32) {
    %c0_i32 = arith.constant 0 : i32
    return %arg0, %arg1 : i32, i32
  }
}

module attributes {stable_mosaic.version = 11 : i64} {
  func.func @_gemm_bn_act_kernel(%arg0: i32, %arg1: i32, %arg2: i32, %arg3: memref<32x128xbf16, #tpu.memory_space<vmem>>, %arg4: memref<128x128xbf16, #tpu.memory_space<vmem>>, %arg5: memref<1x128xf32, #tpu.memory_space<vmem>>, %arg6: memref<1x128xf32, #tpu.memory_space<vmem>>, %arg7: memref<32x128xf32, #tpu.memory_space<vmem>>, %arg8: memref<32x128xf32, #tpu.memory_space<vmem>>) attributes {dimension_semantics = [#tpu.dimension_semantics<parallel>, #tpu.dimension_semantics<parallel>, #tpu.dimension_semantics<arbitrary>], iteration_bounds = array<i64: 1, 1, 1>, scalar_prefetch = 0 : i64, scratch_operands = 1 : i64, tpu.core_type = #tpu.core_type<tc>, window_params = [{transform_indices = @transform_0, window_bounds = array<i64: 32, 128>}, {transform_indices = @transform_1, window_bounds = array<i64: 128, 128>}, {transform_indices = @transform_2, window_bounds = array<i64: 1, 128>}, {transform_indices = @transform_3, window_bounds = array<i64: 1, 128>}, {transform_indices = @transform_4, window_bounds = array<i64: 32, 128>}]} {
    %c0_i32 = arith.constant 0 : i32
    %0 = arith.cmpi eq, %arg2, %c0_i32 : i32
    %1 = arith.extui %0 : i1 to i32
    %c0_i32_0 = arith.constant 0 : i32
    %2 = arith.cmpi ne, %1, %c0_i32_0 : i32
    scf.if %2 {
      %cst_10 = arith.constant 0.000000e+00 : f32
      %12 = vector.broadcast %cst_10 : f32 to vector<32x128xf32>
      %c0_11 = arith.constant 0 : index
      %c0_12 = arith.constant 0 : index
      %13 = vector.load %arg8[%c0_11, %c0_12] : memref<32x128xf32, #tpu.memory_space<vmem>>, vector<32x128xf32>
      tpu.vector_store %arg8[%c0_11, %c0_12], %12 {strides = array<i32>} : memref<32x128xf32, #tpu.memory_space<vmem>>, vector<32x128xf32>,
    } else {
    }
    %c0 = arith.constant 0 : index
    %c0_1 = arith.constant 0 : index
    %3 = vector.load %arg8[%c0, %c0_1] : memref<32x128xf32, #tpu.memory_space<vmem>>, vector<32x128xf32>
    %c0_2 = arith.constant 0 : index
    %c0_3 = arith.constant 0 : index
    %4 = vector.load %arg3[%c0_2, %c0_3] : memref<32x128xbf16, #tpu.memory_space<vmem>>, vector<32x128xbf16>
    %c0_4 = arith.constant 0 : index
    %c0_5 = arith.constant 0 : index
    %5 = vector.load %arg4[%c0_4, %c0_5] : memref<128x128xbf16, #tpu.memory_space<vmem>>, vector<128x128xbf16>
    %cst = arith.constant dense<0.000000e+00> : vector<32x128xf32>
    %6 = tpu.matmul %4, %5, %cst {dimension_numbers = #tpu.dot_dimension_numbers<[1], [0], [0], [1], [0, 0, 1, 1], [], []>} : vector<32x128xbf16>, vector<128x128xbf16>, vector<32x128xf32> -> vector<32x128xf32>
    %7 = arith.addf %3, %6 : vector<32x128xf32>
    %c0_6 = arith.constant 0 : index
    %c0_7 = arith.constant 0 : index
    %8 = vector.load %arg8[%c0_6, %c0_7] : memref<32x128xf32, #tpu.memory_space<vmem>>, vector<32x128xf32>
    tpu.vector_store %arg8[%c0_6, %c0_7], %7 {strides = array<i32>} : memref<32x128xf32, #tpu.memory_space<vmem>>, vector<32x128xf32>,
    %c0_i32_8 = arith.constant 0 : i32
    %9 = arith.cmpi eq, %arg2, %c0_i32_8 : i32
    %10 = arith.extui %9 : i1 to i32
    %c0_i32_9 = arith.constant 0 : i32
    %11 = arith.cmpi ne, %10, %c0_i32_9 : i32
    scf.if %11 {
      %c0_10 = arith.constant 0 : index
      %c0_11 = arith.constant 0 : index
      %12 = vector.load %arg8[%c0_10, %c0_11] : memref<32x128xf32, #tpu.memory_space<vmem>>, vector<32x128xf32>
      %c0_12 = arith.constant 0 : index
      %c0_13 = arith.constant 0 : index
      %13 = vector.load %arg5[%c0_12, %c0_13] : memref<1x128xf32, #tpu.memory_space<vmem>>, vector<1x128xf32>
      %14 = vector.broadcast %13 : vector<1x128xf32> to vector<32x128xf32>
      %15 = arith.mulf %12, %14 : vector<32x128xf32>
      %c0_14 = arith.constant 0 : index
      %c0_15 = arith.constant 0 : index
      %16 = vector.load %arg6[%c0_14, %c0_15] : memref<1x128xf32, #tpu.memory_space<vmem>>, vector<1x128xf32>
      %17 = vector.broadcast %16 : vector<1x128xf32> to vector<32x128xf32>
      %18 = arith.addf %15, %17 : vector<32x128xf32>
      %19 = arith.negf %18 : vector<32x128xf32>
      %20 = math.exp %19 : vector<32x128xf32>
      %cst_16 = arith.constant 1.000000e+00 : f32
      %21 = vector.broadcast %cst_16 : f32 to vector<32x128xf32>
      %22 = arith.addf %21, %20 : vector<32x128xf32>
      %23 = arith.divf %21, %22 : vector<32x128xf32>
      %24 = arith.mulf %18, %23 : vector<32x128xf32>
      %c0_17 = arith.constant 0 : index
      %c0_18 = arith.constant 0 : index
      %25 = vector.load %arg7[%c0_17, %c0_18] : memref<32x128xf32, #tpu.memory_space<vmem>>, vector<32x128xf32>
      tpu.vector_store %arg7[%c0_17, %c0_18], %24 {strides = array<i32>} : memref<32x128xf32, #tpu.memory_space<vmem>>, vector<32x128xf32>,
    } else {
    }
    return
  }
  func.func @transform_0(%arg0: i32, %arg1: i32, %arg2: i32) -> (i32, i32) {
    %c0_i32 = arith.constant 0 : i32
    return %arg0, %arg2 : i32, i32
  }
  func.func @transform_1(%arg0: i32, %arg1: i32, %arg2: i32) -> (i32, i32) {
    %c0_i32 = arith.constant 0 : i32
    return %arg2, %arg1 : i32, i32
  }
  func.func @transform_2(%arg0: i32, %arg1: i32, %arg2: i32) -> (i32, i32) {
    %c0_i32 = arith.constant 0 : i32
    %c0_i32_0 = arith.constant 0 : i32
    return %c0_i32, %arg1 : i32, i32
  }
  func.func @transform_3(%arg0: i32, %arg1: i32, %arg2: i32) -> (i32, i32) {
    %c0_i32 = arith.constant 0 : i32
    %c0_i32_0 = arith.constant 0 : i32
    return %c0_i32, %arg1 : i32, i32
  }
  func.func @transform_4(%arg0: i32, %arg1: i32, %arg2: i32) -> (i32, i32) {
    %c0_i32 = arith.constant 0 : i32
    return %arg0, %arg1 : i32, i32
  }
}

module attributes {stable_mosaic.version = 11 : i64} {
  func.func @_dw_bn_act_kernel(%arg0: i32, %arg1: memref<9x32x128xf32, #tpu.memory_space<vmem>>, %arg2: memref<9x128xf32, #tpu.memory_space<vmem>>, %arg3: memref<1x128xf32, #tpu.memory_space<vmem>>, %arg4: memref<1x128xf32, #tpu.memory_space<vmem>>, %arg5: memref<32x128xf32, #tpu.memory_space<vmem>>) attributes {dimension_semantics = [#tpu.dimension_semantics<parallel>], iteration_bounds = array<i64: 1>, scalar_prefetch = 0 : i64, scratch_operands = 0 : i64, tpu.core_type = #tpu.core_type<tc>, window_params = [{transform_indices = @transform_0, window_bounds = array<i64: 9, 32, 128>}, {pipeline_mode = #tpu.pipeline_mode<synchronous>, transform_indices = @transform_1, window_bounds = array<i64: 9, 128>}, {pipeline_mode = #tpu.pipeline_mode<synchronous>, transform_indices = @transform_2, window_bounds = array<i64: 1, 128>}, {pipeline_mode = #tpu.pipeline_mode<synchronous>, transform_indices = @transform_3, window_bounds = array<i64: 1, 128>}, {transform_indices = @transform_4, window_bounds = array<i64: 32, 128>}]} {
    %c0 = arith.constant 0 : index
    %c0_0 = arith.constant 0 : index
    %0 = vector.load %arg2[%c0, %c0_0] : memref<9x128xf32, #tpu.memory_space<vmem>>, vector<9x128xf32>
    %cst = arith.constant 0.000000e+00 : f32
    %1 = vector.broadcast %cst : f32 to vector<32x128xf32>
    %c0_1 = arith.constant 0 : index
    %c0_2 = arith.constant 0 : index
    %c0_3 = arith.constant 0 : index
    %2 = vector.load %arg1[%c0_1, %c0_2, %c0_3] : memref<9x32x128xf32, #tpu.memory_space<vmem>>, vector<1x32x128xf32>
    %3 = vector.shape_cast %2 : vector<1x32x128xf32> to vector<32x128xf32>
    %4 = vector.extract_strided_slice %0 {offsets = [0, 0], sizes = [1, 128], strides = [1, 1]} : vector<9x128xf32> to vector<1x128xf32>
    %5 = vector.broadcast %4 : vector<1x128xf32> to vector<32x128xf32>
    %6 = arith.mulf %3, %5 : vector<32x128xf32>
    %7 = arith.addf %1, %6 : vector<32x128xf32>
    %c1 = arith.constant 1 : index
    %c0_4 = arith.constant 0 : index
    %c0_5 = arith.constant 0 : index
    %8 = vector.load %arg1[%c1, %c0_4, %c0_5] : memref<9x32x128xf32, #tpu.memory_space<vmem>>, vector<1x32x128xf32>
    %9 = vector.shape_cast %8 : vector<1x32x128xf32> to vector<32x128xf32>
    %10 = vector.extract_strided_slice %0 {offsets = [1, 0], sizes = [1, 128], strides = [1, 1]} : vector<9x128xf32> to vector<1x128xf32>
    %11 = vector.broadcast %10 : vector<1x128xf32> to vector<32x128xf32>
    %12 = arith.mulf %9, %11 : vector<32x128xf32>
    %13 = arith.addf %7, %12 : vector<32x128xf32>
    %c2 = arith.constant 2 : index
    %c0_6 = arith.constant 0 : index
    %c0_7 = arith.constant 0 : index
    %14 = vector.load %arg1[%c2, %c0_6, %c0_7] : memref<9x32x128xf32, #tpu.memory_space<vmem>>, vector<1x32x128xf32>
    %15 = vector.shape_cast %14 : vector<1x32x128xf32> to vector<32x128xf32>
    %16 = vector.extract_strided_slice %0 {offsets = [2, 0], sizes = [1, 128], strides = [1, 1]} : vector<9x128xf32> to vector<1x128xf32>
    %17 = vector.broadcast %16 : vector<1x128xf32> to vector<32x128xf32>
    %18 = arith.mulf %15, %17 : vector<32x128xf32>
    %19 = arith.addf %13, %18 : vector<32x128xf32>
    %c3 = arith.constant 3 : index
    %c0_8 = arith.constant 0 : index
    %c0_9 = arith.constant 0 : index
    %20 = vector.load %arg1[%c3, %c0_8, %c0_9] : memref<9x32x128xf32, #tpu.memory_space<vmem>>, vector<1x32x128xf32>
    %21 = vector.shape_cast %20 : vector<1x32x128xf32> to vector<32x128xf32>
    %22 = vector.extract_strided_slice %0 {offsets = [3, 0], sizes = [1, 128], strides = [1, 1]} : vector<9x128xf32> to vector<1x128xf32>
    %23 = vector.broadcast %22 : vector<1x128xf32> to vector<32x128xf32>
    %24 = arith.mulf %21, %23 : vector<32x128xf32>
    %25 = arith.addf %19, %24 : vector<32x128xf32>
    %c4 = arith.constant 4 : index
    %c0_10 = arith.constant 0 : index
    %c0_11 = arith.constant 0 : index
    %26 = vector.load %arg1[%c4, %c0_10, %c0_11] : memref<9x32x128xf32, #tpu.memory_space<vmem>>, vector<1x32x128xf32>
    %27 = vector.shape_cast %26 : vector<1x32x128xf32> to vector<32x128xf32>
    %28 = vector.extract_strided_slice %0 {offsets = [4, 0], sizes = [1, 128], strides = [1, 1]} : vector<9x128xf32> to vector<1x128xf32>
    %29 = vector.broadcast %28 : vector<1x128xf32> to vector<32x128xf32>
    %30 = arith.mulf %27, %29 : vector<32x128xf32>
    %31 = arith.addf %25, %30 : vector<32x128xf32>
    %c5 = arith.constant 5 : index
    %c0_12 = arith.constant 0 : index
    %c0_13 = arith.constant 0 : index
    %32 = vector.load %arg1[%c5, %c0_12, %c0_13] : memref<9x32x128xf32, #tpu.memory_space<vmem>>, vector<1x32x128xf32>
    %33 = vector.shape_cast %32 : vector<1x32x128xf32> to vector<32x128xf32>
    %34 = vector.extract_strided_slice %0 {offsets = [5, 0], sizes = [1, 128], strides = [1, 1]} : vector<9x128xf32> to vector<1x128xf32>
    %35 = vector.broadcast %34 : vector<1x128xf32> to vector<32x128xf32>
    %36 = arith.mulf %33, %35 : vector<32x128xf32>
    %37 = arith.addf %31, %36 : vector<32x128xf32>
    %c6 = arith.constant 6 : index
    %c0_14 = arith.constant 0 : index
    %c0_15 = arith.constant 0 : index
    %38 = vector.load %arg1[%c6, %c0_14, %c0_15] : memref<9x32x128xf32, #tpu.memory_space<vmem>>, vector<1x32x128xf32>
    %39 = vector.shape_cast %38 : vector<1x32x128xf32> to vector<32x128xf32>
    %40 = vector.extract_strided_slice %0 {offsets = [6, 0], sizes = [1, 128], strides = [1, 1]} : vector<9x128xf32> to vector<1x128xf32>
    %41 = vector.broadcast %40 : vector<1x128xf32> to vector<32x128xf32>
    %42 = arith.mulf %39, %41 : vector<32x128xf32>
    %43 = arith.addf %37, %42 : vector<32x128xf32>
    %c7 = arith.constant 7 : index
    %c0_16 = arith.constant 0 : index
    %c0_17 = arith.constant 0 : index
    %44 = vector.load %arg1[%c7, %c0_16, %c0_17] : memref<9x32x128xf32, #tpu.memory_space<vmem>>, vector<1x32x128xf32>
    %45 = vector.shape_cast %44 : vector<1x32x128xf32> to vector<32x128xf32>
    %46 = vector.extract_strided_slice %0 {offsets = [7, 0], sizes = [1, 128], strides = [1, 1]} : vector<9x128xf32> to vector<1x128xf32>
    %47 = vector.broadcast %46 : vector<1x128xf32> to vector<32x128xf32>
    %48 = arith.mulf %45, %47 : vector<32x128xf32>
    %49 = arith.addf %43, %48 : vector<32x128xf32>
    %c8 = arith.constant 8 : index
    %c0_18 = arith.constant 0 : index
    %c0_19 = arith.constant 0 : index
    %50 = vector.load %arg1[%c8, %c0_18, %c0_19] : memref<9x32x128xf32, #tpu.memory_space<vmem>>, vector<1x32x128xf32>
    %51 = vector.shape_cast %50 : vector<1x32x128xf32> to vector<32x128xf32>
    %52 = vector.extract_strided_slice %0 {offsets = [8, 0], sizes = [1, 128], strides = [1, 1]} : vector<9x128xf32> to vector<1x128xf32>
    %53 = vector.broadcast %52 : vector<1x128xf32> to vector<32x128xf32>
    %54 = arith.mulf %51, %53 : vector<32x128xf32>
    %55 = arith.addf %49, %54 : vector<32x128xf32>
    %c0_20 = arith.constant 0 : index
    %c0_21 = arith.constant 0 : index
    %56 = vector.load %arg3[%c0_20, %c0_21] : memref<1x128xf32, #tpu.memory_space<vmem>>, vector<1x128xf32>
    %57 = vector.broadcast %56 : vector<1x128xf32> to vector<32x128xf32>
    %58 = arith.mulf %55, %57 : vector<32x128xf32>
    %c0_22 = arith.constant 0 : index
    %c0_23 = arith.constant 0 : index
    %59 = vector.load %arg4[%c0_22, %c0_23] : memref<1x128xf32, #tpu.memory_space<vmem>>, vector<1x128xf32>
    %60 = vector.broadcast %59 : vector<1x128xf32> to vector<32x128xf32>
    %61 = arith.addf %58, %60 : vector<32x128xf32>
    %62 = arith.negf %61 : vector<32x128xf32>
    %63 = math.exp %62 : vector<32x128xf32>
    %cst_24 = arith.constant 1.000000e+00 : f32
    %64 = vector.broadcast %cst_24 : f32 to vector<32x128xf32>
    %65 = arith.addf %64, %63 : vector<32x128xf32>
    %66 = arith.divf %64, %65 : vector<32x128xf32>
    %67 = arith.mulf %61, %66 : vector<32x128xf32>
    %c0_25 = arith.constant 0 : index
    %c0_26 = arith.constant 0 : index
    %68 = vector.load %arg5[%c0_25, %c0_26] : memref<32x128xf32, #tpu.memory_space<vmem>>, vector<32x128xf32>
    tpu.vector_store %arg5[%c0_25, %c0_26], %67 {strides = array<i32>} : memref<32x128xf32, #tpu.memory_space<vmem>>, vector<32x128xf32>,
    return
  }
  func.func @transform_0(%arg0: i32) -> (i32, i32, i32) {
    %c0_i32 = arith.constant 0 : i32
    %c0_i32_0 = arith.constant 0 : i32
    %c0_i32_1 = arith.constant 0 : i32
    return %c0_i32, %arg0, %c0_i32_0 : i32, i32, i32
  }
  func.func @transform_1(%arg0: i32) -> (i32, i32) {
    %c0_i32 = arith.constant 0 : i32
    %c0_i32_0 = arith.constant 0 : i32
    %c0_i32_1 = arith.constant 0 : i32
    return %c0_i32, %c0_i32_0 : i32, i32
  }
  func.func @transform_2(%arg0: i32) -> (i32, i32) {
    %c0_i32 = arith.constant 0 : i32
    %c0_i32_0 = arith.constant 0 : i32
    %c0_i32_1 = arith.constant 0 : i32
    return %c0_i32, %c0_i32_0 : i32, i32
  }
  func.func @transform_3(%arg0: i32) -> (i32, i32) {
    %c0_i32 = arith.constant 0 : i32
    %c0_i32_0 = arith.constant 0 : i32
    %c0_i32_1 = arith.constant 0 : i32
    return %c0_i32, %c0_i32_0 : i32, i32
  }
  func.func @transform_4(%arg0: i32) -> (i32, i32) {
    %c0_i32 = arith.constant 0 : i32
    %c0_i32_0 = arith.constant 0 : i32
    return %arg0, %c0_i32 : i32, i32
  }
}

module attributes {stable_mosaic.version = 11 : i64} {
  func.func @_se_apply_kernel(%arg0: i32, %arg1: i32, %arg2: memref<1x16x128xf32, #tpu.memory_space<vmem>>, %arg3: memref<1x1x128xf32, #tpu.memory_space<vmem>>, %arg4: memref<1x16x128xf32, #tpu.memory_space<vmem>>) attributes {dimension_semantics = [#tpu.dimension_semantics<parallel>, #tpu.dimension_semantics<parallel>], iteration_bounds = array<i64: 2, 1>, scalar_prefetch = 0 : i64, scratch_operands = 0 : i64, tpu.core_type = #tpu.core_type<tc>, window_params = [{transform_indices = @transform_0, window_bounds = array<i64: 1, 16, 128>}, {transform_indices = @transform_1, window_bounds = array<i64: 1, 1, 128>}, {transform_indices = @transform_2, window_bounds = array<i64: 1, 16, 128>}]} {
    %c0 = arith.constant 0 : index
    %c0_0 = arith.constant 0 : index
    %c0_1 = arith.constant 0 : index
    %0 = vector.load %arg2[%c0, %c0_0, %c0_1] : memref<1x16x128xf32, #tpu.memory_space<vmem>>, vector<1x16x128xf32>
    %c0_2 = arith.constant 0 : index
    %c0_3 = arith.constant 0 : index
    %c0_4 = arith.constant 0 : index
    %1 = vector.load %arg3[%c0_2, %c0_3, %c0_4] : memref<1x1x128xf32, #tpu.memory_space<vmem>>, vector<1x1x128xf32>
    %2 = vector.broadcast %1 : vector<1x1x128xf32> to vector<1x16x128xf32>
    %3 = arith.mulf %0, %2 : vector<1x16x128xf32>
    %c0_5 = arith.constant 0 : index
    %c0_6 = arith.constant 0 : index
    %c0_7 = arith.constant 0 : index
    %4 = vector.load %arg4[%c0_5, %c0_6, %c0_7] : memref<1x16x128xf32, #tpu.memory_space<vmem>>, vector<1x16x128xf32>
    tpu.vector_store %arg4[%c0_5, %c0_6, %c0_7], %3 {strides = array<i32>} : memref<1x16x128xf32, #tpu.memory_space<vmem>>, vector<1x16x128xf32>,
    return
  }
  func.func @transform_0(%arg0: i32, %arg1: i32) -> (i32, i32, i32) {
    %c0_i32 = arith.constant 0 : i32
    %c0_i32_0 = arith.constant 0 : i32
    return %arg0, %arg1, %c0_i32 : i32, i32, i32
  }
  func.func @transform_1(%arg0: i32, %arg1: i32) -> (i32, i32, i32) {
    %c0_i32 = arith.constant 0 : i32
    %c0_i32_0 = arith.constant 0 : i32
    %c0_i32_1 = arith.constant 0 : i32
    return %arg0, %c0_i32, %c0_i32_0 : i32, i32, i32
  }
  func.func @transform_2(%arg0: i32, %arg1: i32) -> (i32, i32, i32) {
    %c0_i32 = arith.constant 0 : i32
    %c0_i32_0 = arith.constant 0 : i32
    return %arg0, %arg1, %c0_i32 : i32, i32, i32
  }
}

module attributes {stable_mosaic.version = 11 : i64} {
  func.func @_gap_se_gate_kernel(%arg0: i32, %arg1: memref<2x16x128xf32, #tpu.memory_space<vmem>>, %arg2: memref<128x128xf32, #tpu.memory_space<vmem>>, %arg3: memref<1x128xf32, #tpu.memory_space<vmem>>, %arg4: memref<128x128xf32, #tpu.memory_space<vmem>>, %arg5: memref<1x128xf32, #tpu.memory_space<vmem>>, %arg6: memref<2x128xf32, #tpu.memory_space<vmem>>, %arg7: memref<2x128xf32, #tpu.memory_space<vmem>>) attributes {dimension_semantics = [#tpu.dimension_semantics<arbitrary>], iteration_bounds = array<i64: 1>, scalar_prefetch = 0 : i64, scratch_operands = 1 : i64, tpu.core_type = #tpu.core_type<tc>, window_params = [{transform_indices = @transform_0, window_bounds = array<i64: 2, 16, 128>}, {pipeline_mode = #tpu.pipeline_mode<synchronous>, transform_indices = @transform_1, window_bounds = array<i64: 128, 128>}, {pipeline_mode = #tpu.pipeline_mode<synchronous>, transform_indices = @transform_2, window_bounds = array<i64: 1, 128>}, {pipeline_mode = #tpu.pipeline_mode<synchronous>, transform_indices = @transform_3, window_bounds = array<i64: 128, 128>}, {pipeline_mode = #tpu.pipeline_mode<synchronous>, transform_indices = @transform_4, window_bounds = array<i64: 1, 128>}, {pipeline_mode = #tpu.pipeline_mode<synchronous>, transform_indices = @transform_5, window_bounds = array<i64: 2, 128>}]} {
    %c0_i32 = arith.constant 0 : i32
    %0 = arith.cmpi eq, %arg0, %c0_i32 : i32
    %1 = arith.extui %0 : i1 to i32
    %c0_i32_0 = arith.constant 0 : i32
    %2 = arith.cmpi ne, %1, %c0_i32_0 : i32
    scf.if %2 {
      %cst_9 = arith.constant 0.000000e+00 : f32
      %11 = vector.broadcast %cst_9 : f32 to vector<2x128xf32>
      %c0_10 = arith.constant 0 : index
      %c0_11 = arith.constant 0 : index
      %12 = vector.load %arg7[%c0_10, %c0_11] : memref<2x128xf32, #tpu.memory_space<vmem>>, vector<2x128xf32>
      tpu.vector_store %arg7[%c0_10, %c0_11], %11 {strides = array<i32>} : memref<2x128xf32, #tpu.memory_space<vmem>>, vector<2x128xf32>,
    } else {
    }
    %c0 = arith.constant 0 : index
    %c0_1 = arith.constant 0 : index
    %3 = vector.load %arg7[%c0, %c0_1] : memref<2x128xf32, #tpu.memory_space<vmem>>, vector<2x128xf32>
    %c0_2 = arith.constant 0 : index
    %c0_3 = arith.constant 0 : index
    %c0_4 = arith.constant 0 : index
    %4 = vector.load %arg1[%c0_2, %c0_3, %c0_4] : memref<2x16x128xf32, #tpu.memory_space<vmem>>, vector<2x16x128xf32>
    %cst = arith.constant dense<0.000000e+00> : vector<2x128xf32>
    %5 = vector.multi_reduction <add>, %4, %cst [1] : vector<2x16x128xf32> to vector<2x128xf32>
    %6 = arith.addf %3, %5 : vector<2x128xf32>
    %c0_5 = arith.constant 0 : index
    %c0_6 = arith.constant 0 : index
    %7 = vector.load %arg7[%c0_5, %c0_6] : memref<2x128xf32, #tpu.memory_space<vmem>>, vector<2x128xf32>
    tpu.vector_store %arg7[%c0_5, %c0_6], %6 {strides = array<i32>} : memref<2x128xf32, #tpu.memory_space<vmem>>, vector<2x128xf32>,
    %c0_i32_7 = arith.constant 0 : i32
    %8 = arith.cmpi eq, %arg0, %c0_i32_7 : i32
    %9 = arith.extui %8 : i1 to i32
    %c0_i32_8 = arith.constant 0 : i32
    %10 = arith.cmpi ne, %9, %c0_i32_8 : i32
    scf.if %10 {
      %c0_9 = arith.constant 0 : index
      %c0_10 = arith.constant 0 : index
      %11 = vector.load %arg7[%c0_9, %c0_10] : memref<2x128xf32, #tpu.memory_space<vmem>>, vector<2x128xf32>
      %cst_11 = arith.constant 6.250000e-02 : f32
      %12 = vector.broadcast %cst_11 : f32 to vector<2x128xf32>
      %13 = arith.mulf %11, %12 : vector<2x128xf32>
      %c0_12 = arith.constant 0 : index
      %c0_13 = arith.constant 0 : index
      %14 = vector.load %arg2[%c0_12, %c0_13] : memref<128x128xf32, #tpu.memory_space<vmem>>, vector<128x128xf32>
      %cst_14 = arith.constant dense<0.000000e+00> : vector<2x128xf32>
      %15 = tpu.matmul %13, %14, %cst_14 {dimension_numbers = #tpu.dot_dimension_numbers<[1], [0], [0], [1], [0, 0, 1, 1], [], []>} : vector<2x128xf32>, vector<128x128xf32>, vector<2x128xf32> -> vector<2x128xf32>
      %c0_15 = arith.constant 0 : index
      %c0_16 = arith.constant 0 : index
      %16 = vector.load %arg3[%c0_15, %c0_16] : memref<1x128xf32, #tpu.memory_space<vmem>>, vector<1x128xf32>
      %17 = vector.broadcast %16 : vector<1x128xf32> to vector<2x128xf32>
      %18 = arith.addf %15, %17 : vector<2x128xf32>
      %19 = arith.negf %18 : vector<2x128xf32>
      %20 = math.exp %19 : vector<2x128xf32>
      %cst_17 = arith.constant 1.000000e+00 : f32
      %21 = vector.broadcast %cst_17 : f32 to vector<2x128xf32>
      %22 = arith.addf %21, %20 : vector<2x128xf32>
      %23 = arith.divf %21, %22 : vector<2x128xf32>
      %24 = arith.mulf %18, %23 : vector<2x128xf32>
      %c0_18 = arith.constant 0 : index
      %c0_19 = arith.constant 0 : index
      %25 = vector.load %arg4[%c0_18, %c0_19] : memref<128x128xf32, #tpu.memory_space<vmem>>, vector<128x128xf32>
      %cst_20 = arith.constant dense<0.000000e+00> : vector<2x128xf32>
      %26 = tpu.matmul %24, %25, %cst_20 {dimension_numbers = #tpu.dot_dimension_numbers<[1], [0], [0], [1], [0, 0, 1, 1], [], []>} : vector<2x128xf32>, vector<128x128xf32>, vector<2x128xf32> -> vector<2x128xf32>
      %c0_21 = arith.constant 0 : index
      %c0_22 = arith.constant 0 : index
      %27 = vector.load %arg5[%c0_21, %c0_22] : memref<1x128xf32, #tpu.memory_space<vmem>>, vector<1x128xf32>
      %28 = vector.broadcast %27 : vector<1x128xf32> to vector<2x128xf32>
      %29 = arith.addf %26, %28 : vector<2x128xf32>
      %30 = arith.negf %29 : vector<2x128xf32>
      %31 = math.exp %30 : vector<2x128xf32>
      %cst_23 = arith.constant 1.000000e+00 : f32
      %32 = vector.broadcast %cst_23 : f32 to vector<2x128xf32>
      %33 = arith.addf %32, %31 : vector<2x128xf32>
      %34 = arith.divf %32, %33 : vector<2x128xf32>
      %c0_24 = arith.constant 0 : index
      %c0_25 = arith.constant 0 : index
      %35 = vector.load %arg6[%c0_24, %c0_25] : memref<2x128xf32, #tpu.memory_space<vmem>>, vector<2x128xf32>
      tpu.vector_store %arg6[%c0_24, %c0_25], %34 {strides = array<i32>} : memref<2x128xf32, #tpu.memory_space<vmem>>, vector<2x128xf32>,
    } else {
    }
    return
  }
  func.func @transform_0(%arg0: i32) -> (i32, i32, i32) {
    %c0_i32 = arith.constant 0 : i32
    %c0_i32_0 = arith.constant 0 : i32
    %c0_i32_1 = arith.constant 0 : i32
    return %c0_i32, %arg0, %c0_i32_0 : i32, i32, i32
  }
  func.func @transform_1(%arg0: i32) -> (i32, i32) {
    %c0_i32 = arith.constant 0 : i32
    %c0_i32_0 = arith.constant 0 : i32
    %c0_i32_1 = arith.constant 0 : i32
    return %c0_i32, %c0_i32_0 : i32, i32
  }
  func.func @transform_2(%arg0: i32) -> (i32, i32) {
    %c0_i32 = arith.constant 0 : i32
    %c0_i32_0 = arith.constant 0 : i32
    %c0_i32_1 = arith.constant 0 : i32
    return %c0_i32, %c0_i32_0 : i32, i32
  }
  func.func @transform_3(%arg0: i32) -> (i32, i32) {
    %c0_i32 = arith.constant 0 : i32
    %c0_i32_0 = arith.constant 0 : i32
    %c0_i32_1 = arith.constant 0 : i32
    return %c0_i32, %c0_i32_0 : i32, i32
  }
  func.func @transform_4(%arg0: i32) -> (i32, i32) {
    %c0_i32 = arith.constant 0 : i32
    %c0_i32_0 = arith.constant 0 : i32
    %c0_i32_1 = arith.constant 0 : i32
    return %c0_i32, %c0_i32_0 : i32, i32
  }
  func.func @transform_5(%arg0: i32) -> (i32, i32) {
    %c0_i32 = arith.constant 0 : i32
    %c0_i32_0 = arith.constant 0 : i32
    %c0_i32_1 = arith.constant 0 : i32
    return %c0_i32, %c0_i32_0 : i32, i32
  }
}

module attributes {stable_mosaic.version = 11 : i64} {
  func.func @_gemm_bn_act_kernel(%arg0: i32, %arg1: i32, %arg2: i32, %arg3: memref<32x128xbf16, #tpu.memory_space<vmem>>, %arg4: memref<128x128xbf16, #tpu.memory_space<vmem>>, %arg5: memref<1x128xf32, #tpu.memory_space<vmem>>, %arg6: memref<1x128xf32, #tpu.memory_space<vmem>>, %arg7: memref<32x128xf32, #tpu.memory_space<vmem>>, %arg8: memref<32x128xf32, #tpu.memory_space<vmem>>, %arg9: memref<32x128xf32, #tpu.memory_space<vmem>>) attributes {dimension_semantics = [#tpu.dimension_semantics<parallel>, #tpu.dimension_semantics<parallel>, #tpu.dimension_semantics<arbitrary>], iteration_bounds = array<i64: 1, 1, 1>, scalar_prefetch = 0 : i64, scratch_operands = 1 : i64, tpu.core_type = #tpu.core_type<tc>, window_params = [{transform_indices = @transform_0, window_bounds = array<i64: 32, 128>}, {transform_indices = @transform_1, window_bounds = array<i64: 128, 128>}, {transform_indices = @transform_2, window_bounds = array<i64: 1, 128>}, {transform_indices = @transform_3, window_bounds = array<i64: 1, 128>}, {transform_indices = @transform_4, window_bounds = array<i64: 32, 128>}, {transform_indices = @transform_5, window_bounds = array<i64: 32, 128>}]} {
    %c0_i32 = arith.constant 0 : i32
    %0 = arith.cmpi eq, %arg2, %c0_i32 : i32
    %1 = arith.extui %0 : i1 to i32
    %c0_i32_0 = arith.constant 0 : i32
    %2 = arith.cmpi ne, %1, %c0_i32_0 : i32
    scf.if %2 {
      %cst_10 = arith.constant 0.000000e+00 : f32
      %12 = vector.broadcast %cst_10 : f32 to vector<32x128xf32>
      %c0_11 = arith.constant 0 : index
      %c0_12 = arith.constant 0 : index
      %13 = vector.load %arg9[%c0_11, %c0_12] : memref<32x128xf32, #tpu.memory_space<vmem>>, vector<32x128xf32>
      tpu.vector_store %arg9[%c0_11, %c0_12], %12 {strides = array<i32>} : memref<32x128xf32, #tpu.memory_space<vmem>>, vector<32x128xf32>,
    } else {
    }
    %c0 = arith.constant 0 : index
    %c0_1 = arith.constant 0 : index
    %3 = vector.load %arg9[%c0, %c0_1] : memref<32x128xf32, #tpu.memory_space<vmem>>, vector<32x128xf32>
    %c0_2 = arith.constant 0 : index
    %c0_3 = arith.constant 0 : index
    %4 = vector.load %arg3[%c0_2, %c0_3] : memref<32x128xbf16, #tpu.memory_space<vmem>>, vector<32x128xbf16>
    %c0_4 = arith.constant 0 : index
    %c0_5 = arith.constant 0 : index
    %5 = vector.load %arg4[%c0_4, %c0_5] : memref<128x128xbf16, #tpu.memory_space<vmem>>, vector<128x128xbf16>
    %cst = arith.constant dense<0.000000e+00> : vector<32x128xf32>
    %6 = tpu.matmul %4, %5, %cst {dimension_numbers = #tpu.dot_dimension_numbers<[1], [0], [0], [1], [0, 0, 1, 1], [], []>} : vector<32x128xbf16>, vector<128x128xbf16>, vector<32x128xf32> -> vector<32x128xf32>
    %7 = arith.addf %3, %6 : vector<32x128xf32>
    %c0_6 = arith.constant 0 : index
    %c0_7 = arith.constant 0 : index
    %8 = vector.load %arg9[%c0_6, %c0_7] : memref<32x128xf32, #tpu.memory_space<vmem>>, vector<32x128xf32>
    tpu.vector_store %arg9[%c0_6, %c0_7], %7 {strides = array<i32>} : memref<32x128xf32, #tpu.memory_space<vmem>>, vector<32x128xf32>,
    %c0_i32_8 = arith.constant 0 : i32
    %9 = arith.cmpi eq, %arg2, %c0_i32_8 : i32
    %10 = arith.extui %9 : i1 to i32
    %c0_i32_9 = arith.constant 0 : i32
    %11 = arith.cmpi ne, %10, %c0_i32_9 : i32
    scf.if %11 {
      %c0_10 = arith.constant 0 : index
      %c0_11 = arith.constant 0 : index
      %12 = vector.load %arg9[%c0_10, %c0_11] : memref<32x128xf32, #tpu.memory_space<vmem>>, vector<32x128xf32>
      %c0_12 = arith.constant 0 : index
      %c0_13 = arith.constant 0 : index
      %13 = vector.load %arg5[%c0_12, %c0_13] : memref<1x128xf32, #tpu.memory_space<vmem>>, vector<1x128xf32>
      %14 = vector.broadcast %13 : vector<1x128xf32> to vector<32x128xf32>
      %15 = arith.mulf %12, %14 : vector<32x128xf32>
      %c0_14 = arith.constant 0 : index
      %c0_15 = arith.constant 0 : index
      %16 = vector.load %arg6[%c0_14, %c0_15] : memref<1x128xf32, #tpu.memory_space<vmem>>, vector<1x128xf32>
      %17 = vector.broadcast %16 : vector<1x128xf32> to vector<32x128xf32>
      %18 = arith.addf %15, %17 : vector<32x128xf32>
      %c0_16 = arith.constant 0 : index
      %c0_17 = arith.constant 0 : index
      %19 = vector.load %arg7[%c0_16, %c0_17] : memref<32x128xf32, #tpu.memory_space<vmem>>, vector<32x128xf32>
      %20 = arith.addf %18, %19 : vector<32x128xf32>
      %c0_18 = arith.constant 0 : index
      %c0_19 = arith.constant 0 : index
      %21 = vector.load %arg8[%c0_18, %c0_19] : memref<32x128xf32, #tpu.memory_space<vmem>>, vector<32x128xf32>
      tpu.vector_store %arg8[%c0_18, %c0_19], %20 {strides = array<i32>} : memref<32x128xf32, #tpu.memory_space<vmem>>, vector<32x128xf32>,
    } else {
    }
    return
  }
  func.func @transform_0(%arg0: i32, %arg1: i32, %arg2: i32) -> (i32, i32) {
    %c0_i32 = arith.constant 0 : i32
    return %arg0, %arg2 : i32, i32
  }
  func.func @transform_1(%arg0: i32, %arg1: i32, %arg2: i32) -> (i32, i32) {
    %c0_i32 = arith.constant 0 : i32
    return %arg2, %arg1 : i32, i32
  }
  func.func @transform_2(%arg0: i32, %arg1: i32, %arg2: i32) -> (i32, i32) {
    %c0_i32 = arith.constant 0 : i32
    %c0_i32_0 = arith.constant 0 : i32
    return %c0_i32, %arg1 : i32, i32
  }
  func.func @transform_3(%arg0: i32, %arg1: i32, %arg2: i32) -> (i32, i32) {
    %c0_i32 = arith.constant 0 : i32
    %c0_i32_0 = arith.constant 0 : i32
    return %c0_i32, %arg1 : i32, i32
  }
  func.func @transform_4(%arg0: i32, %arg1: i32, %arg2: i32) -> (i32, i32) {
    %c0_i32 = arith.constant 0 : i32
    return %arg0, %arg1 : i32, i32
  }
  func.func @transform_5(%arg0: i32, %arg1: i32, %arg2: i32) -> (i32, i32) {
    %c0_i32 = arith.constant 0 : i32
    return %arg0, %arg1 : i32, i32
  }
}

module attributes {stable_mosaic.version = 11 : i64} {
  func.func @_gap_fc_kernel(%arg0: i32, %arg1: memref<2x16x128xf32, #tpu.memory_space<vmem>>, %arg2: memref<128x128xf32, #tpu.memory_space<vmem>>, %arg3: memref<1x128xf32, #tpu.memory_space<vmem>>, %arg4: memref<2x128xf32, #tpu.memory_space<vmem>>, %arg5: memref<2x128xf32, #tpu.memory_space<vmem>>) attributes {dimension_semantics = [#tpu.dimension_semantics<arbitrary>], iteration_bounds = array<i64: 1>, scalar_prefetch = 0 : i64, scratch_operands = 1 : i64, tpu.core_type = #tpu.core_type<tc>, window_params = [{transform_indices = @transform_0, window_bounds = array<i64: 2, 16, 128>}, {pipeline_mode = #tpu.pipeline_mode<synchronous>, transform_indices = @transform_1, window_bounds = array<i64: 128, 128>}, {pipeline_mode = #tpu.pipeline_mode<synchronous>, transform_indices = @transform_2, window_bounds = array<i64: 1, 128>}, {pipeline_mode = #tpu.pipeline_mode<synchronous>, transform_indices = @transform_3, window_bounds = array<i64: 2, 128>}]} {
    %c0_i32 = arith.constant 0 : i32
    %0 = arith.cmpi eq, %arg0, %c0_i32 : i32
    %1 = arith.extui %0 : i1 to i32
    %c0_i32_0 = arith.constant 0 : i32
    %2 = arith.cmpi ne, %1, %c0_i32_0 : i32
    scf.if %2 {
      %cst_9 = arith.constant 0.000000e+00 : f32
      %11 = vector.broadcast %cst_9 : f32 to vector<2x128xf32>
      %c0_10 = arith.constant 0 : index
      %c0_11 = arith.constant 0 : index
      %12 = vector.load %arg5[%c0_10, %c0_11] : memref<2x128xf32, #tpu.memory_space<vmem>>, vector<2x128xf32>
      tpu.vector_store %arg5[%c0_10, %c0_11], %11 {strides = array<i32>} : memref<2x128xf32, #tpu.memory_space<vmem>>, vector<2x128xf32>,
    } else {
    }
    %c0 = arith.constant 0 : index
    %c0_1 = arith.constant 0 : index
    %3 = vector.load %arg5[%c0, %c0_1] : memref<2x128xf32, #tpu.memory_space<vmem>>, vector<2x128xf32>
    %c0_2 = arith.constant 0 : index
    %c0_3 = arith.constant 0 : index
    %c0_4 = arith.constant 0 : index
    %4 = vector.load %arg1[%c0_2, %c0_3, %c0_4] : memref<2x16x128xf32, #tpu.memory_space<vmem>>, vector<2x16x128xf32>
    %cst = arith.constant dense<0.000000e+00> : vector<2x128xf32>
    %5 = vector.multi_reduction <add>, %4, %cst [1] : vector<2x16x128xf32> to vector<2x128xf32>
    %6 = arith.addf %3, %5 : vector<2x128xf32>
    %c0_5 = arith.constant 0 : index
    %c0_6 = arith.constant 0 : index
    %7 = vector.load %arg5[%c0_5, %c0_6] : memref<2x128xf32, #tpu.memory_space<vmem>>, vector<2x128xf32>
    tpu.vector_store %arg5[%c0_5, %c0_6], %6 {strides = array<i32>} : memref<2x128xf32, #tpu.memory_space<vmem>>, vector<2x128xf32>,
    %c0_i32_7 = arith.constant 0 : i32
    %8 = arith.cmpi eq, %arg0, %c0_i32_7 : i32
    %9 = arith.extui %8 : i1 to i32
    %c0_i32_8 = arith.constant 0 : i32
    %10 = arith.cmpi ne, %9, %c0_i32_8 : i32
    scf.if %10 {
      %c0_9 = arith.constant 0 : index
      %c0_10 = arith.constant 0 : index
      %11 = vector.load %arg5[%c0_9, %c0_10] : memref<2x128xf32, #tpu.memory_space<vmem>>, vector<2x128xf32>
      %cst_11 = arith.constant 6.250000e-02 : f32
      %12 = vector.broadcast %cst_11 : f32 to vector<2x128xf32>
      %13 = arith.mulf %11, %12 : vector<2x128xf32>
      %c0_12 = arith.constant 0 : index
      %c0_13 = arith.constant 0 : index
      %14 = vector.load %arg2[%c0_12, %c0_13] : memref<128x128xf32, #tpu.memory_space<vmem>>, vector<128x128xf32>
      %cst_14 = arith.constant dense<0.000000e+00> : vector<2x128xf32>
      %15 = tpu.matmul %13, %14, %cst_14 {dimension_numbers = #tpu.dot_dimension_numbers<[1], [0], [0], [1], [0, 0, 1, 1], [], []>} : vector<2x128xf32>, vector<128x128xf32>, vector<2x128xf32> -> vector<2x128xf32>
      %c0_15 = arith.constant 0 : index
      %c0_16 = arith.constant 0 : index
      %16 = vector.load %arg3[%c0_15, %c0_16] : memref<1x128xf32, #tpu.memory_space<vmem>>, vector<1x128xf32>
      %17 = vector.broadcast %16 : vector<1x128xf32> to vector<2x128xf32>
      %18 = arith.addf %15, %17 : vector<2x128xf32>
      %c0_17 = arith.constant 0 : index
      %c0_18 = arith.constant 0 : index
      %19 = vector.load %arg4[%c0_17, %c0_18] : memref<2x128xf32, #tpu.memory_space<vmem>>, vector<2x128xf32>
      tpu.vector_store %arg4[%c0_17, %c0_18], %18 {strides = array<i32>} : memref<2x128xf32, #tpu.memory_space<vmem>>, vector<2x128xf32>,
    } else {
    }
    return
  }
  func.func @transform_0(%arg0: i32) -> (i32, i32, i32) {
    %c0_i32 = arith.constant 0 : i32
    %c0_i32_0 = arith.constant 0 : i32
    %c0_i32_1 = arith.constant 0 : i32
    return %c0_i32, %arg0, %c0_i32_0 : i32, i32, i32
  }
  func.func @transform_1(%arg0: i32) -> (i32, i32) {
    %c0_i32 = arith.constant 0 : i32
    %c0_i32_0 = arith.constant 0 : i32
    %c0_i32_1 = arith.constant 0 : i32
    return %c0_i32, %c0_i32_0 : i32, i32
  }
  func.func @transform_2(%arg0: i32) -> (i32, i32) {
    %c0_i32 = arith.constant 0 : i32
    %c0_i32_0 = arith.constant 0 : i32
    %c0_i32_1 = arith.constant 0 : i32
    return %c0_i32, %c0_i32_0 : i32, i32
  }
  func.func @transform_3(%arg0: i32) -> (i32, i32) {
    %c0_i32 = arith.constant 0 : i32
    %c0_i32_0 = arith.constant 0 : i32
    %c0_i32_1 = arith.constant 0 : i32
    return %c0_i32, %c0_i32_0 : i32, i32
  }
}

</mosaic_0001>

<bundles_post_ra>
// kernel: _lambda_.11
= control target key start
LH: loop header
LB: loop body
LE: loop exit
PB: predicated region body
PF: predicated region fallthrough
CT: control target
= control target key end

     0   :  { %s1233_s1 = inlined_call_operand.vmem [shape: bf16[128,128], index: 1, kind: input, shape index: {}]   ;;  %s1234_s2 = inlined_call_operand.vmem [shape: f32[1,128], index: 2, kind: input, shape index: {}]   ;;  %s1235_s3 = inlined_call_operand.vmem [shape: f32[1,128], index: 3, kind: input, shape index: {}]   ;;  %s1236_s0 = inlined_call_operand.vmem [shape: bf16[128,128], index: 0, kind: input, shape index: {}]   ;;  %s1237_s4 = inlined_call_operand.vmem [shape: f32[128,128], index: 4, kind: output, shape index: {}]  }
   0x1   :  { %v756_v0 = vld [vmem:[%s1233_s1 + $0x38] sm:$0xff]  ;;  %v755_v1 = vld [vmem:[%s1233_s1 + $0x30] sm:$0xff]  ;;  %v754_v2 = vld [vmem:[%s1233_s1 + $0x28] sm:$0xff] }
   0x2   :  { %181 = vmatpush.bf16.msra.mxu0 %v756_v0  ;;  %757 = vmatpush.bf16.msra.mxu1 %v756_v0  ;;  %v753_v3 = vld [vmem:[%s1233_s1 + $0x20] sm:$0xff]  ;;  %v752_v4 = vld [vmem:[%s1233_s1 + $0x18] sm:$0xff]  ;;  %v751_v5 = vld [vmem:[%s1233_s1 + $0x10] sm:$0xff] }
   0x3   :  { %758 = vmatpush.bf16.msra.mxu2 %v756_v0  ;;  %759 = vmatpush.bf16.msra.mxu3 %v756_v0  ;;  %v750_v6 = vld [vmem:[%s1233_s1 + $0x8] sm:$0xff]  ;;  %v749_v7 = vld [vmem:[%s1233_s1] sm:$0xff]  ;;  %v743_v9 = vld [vmem:[%s1236_s0 + $0x10] sm:$0xff] }
   0x4   :  { %v741_v8 = vld [vmem:[%s1236_s0] sm:$0xff]  ;;  %v747_v11 = vld [vmem:[%s1236_s0 + $0x30] sm:$0xff]  ;;  %v742_v12 = vld [vmem:[%s1236_s0 + $0x8] sm:$0xff] }
   0x5   :  { %v745_v10 = vld [vmem:[%s1236_s0 + $0x20] sm:$0xff]  ;;  %v744_v13 = vld [vmem:[%s1236_s0 + $0x18] sm:$0xff]  ;;  %v746_v14 = vld [vmem:[%s1236_s0 + $0x28] sm:$0xff] }
   0x6   :  { %182 = vmatpush.bf16.msra.mxu0 %v755_v1  ;;  %760 = vmatpush.bf16.msra.mxu1 %v755_v1  ;;  %v748_v15 = vld [vmem:[%s1236_s0 + $0x38] sm:$0xff]  ;;  %v923_v16 = vld [vmem:[%s1234_s2] ss:$0 sm:$0xff] }
   0x7   :  { %761 = vmatpush.bf16.msra.mxu2 %v755_v1  ;;  %762 = vmatpush.bf16.msra.mxu3 %v755_v1  ;;  %v928_v17 = vld [vmem:[%s1235_s3] ss:$0 sm:$0xff] }
   0xa   :  { %183 = vmatpush.bf16.msra.mxu0 %v754_v2  ;;  %763 = vmatpush.bf16.msra.mxu1 %v754_v2 }
   0xb   :  { %764 = vmatpush.bf16.msra.mxu2 %v754_v2  ;;  %765 = vmatpush.bf16.msra.mxu3 %v754_v2 }
   0xe   :  { %184 = vmatpush.bf16.msra.mxu0 %v753_v3  ;;  %766 = vmatpush.bf16.msra.mxu1 %v753_v3 }
   0xf   :  { %767 = vmatpush.bf16.msra.mxu2 %v753_v3  ;;  %768 = vmatpush.bf16.msra.mxu3 %v753_v3 }
  0x12   :  { %185 = vmatpush.bf16.msra.mxu0 %v752_v4  ;;  %769 = vmatpush.bf16.msra.mxu1 %v752_v4 }
  0x13   :  { %770 = vmatpush.bf16.msra.mxu2 %v752_v4  ;;  %771 = vmatpush.bf16.msra.mxu3 %v752_v4 }
  0x16   :  { %186 = vmatpush.bf16.msra.mxu0 %v751_v5  ;;  %772 = vmatpush.bf16.msra.mxu1 %v751_v5 }
  0x17   :  { %773 = vmatpush.bf16.msra.mxu2 %v751_v5  ;;  %774 = vmatpush.bf16.msra.mxu3 %v751_v5 }
  0x1a   :  { %187 = vmatpush.bf16.msra.mxu0 %v750_v6  ;;  %775 = vmatpush.bf16.msra.mxu1 %v750_v6 }
  0x1b   :  { %776 = vmatpush.bf16.msra.mxu2 %v750_v6  ;;  %777 = vmatpush.bf16.msra.mxu3 %v750_v6 }
  0x1e   :  { %188 = vmatpush.bf16.msra.mxu0 %v749_v7  ;;  %778 = vmatpush.bf16.msra.mxu1 %v749_v7 }
  0x1f   :  { %779 = vmatpush.bf16.msra.mxu2 %v749_v7  ;;  %780 = vmatpush.bf16.msra.mxu3 %v749_v7 }
  0x21   :  { %189 = vmatmul.bf16.vlgmr.msra.gmra.mxu0 %v741_v8  ;;  %199 = vmatmul.bf16.vlgmr.msra.gmra.mxu1 %v743_v9 }
  0x22   :  { %209 = vmatmul.bf16.vlgmr.msra.gmra.mxu2 %v745_v10  ;;  %219 = vmatmul.bf16.vlgmr.msra.gmra.mxu3 %v747_v11 }
  0x31   :  { %194 = vmatmul.bf16.gmra.mxu0 %v742_v12  ;;  %204 = vmatmul.bf16.gmra.mxu1 %v744_v13 }
  0x32   :  { %214 = vmatmul.bf16.gmra.mxu2 %v746_v14  ;;  %224 = vmatmul.bf16.gmra.mxu3 %v748_v15 }
  0x9e   :  { %v190_v18 = vpop.f32.mrf.mxu0  ;;  %v200_v19 = vpop.f32.mrf.mxu1 }
  0x9f   :  { %v285_v20 = vmul.f32 %v923_v16, %v190_v18  ;;  %v289_v21 = vmul.f32 %v923_v16, %v200_v19 }
  0xa1   :  { %v933_v22 = vadd.f32 %v928_v17, %v285_v20  ;;  %v936_v23 = vadd.f32 %v928_v17, %v289_v21 }
  0xa3   :  { %v725_v24 = vmul.f32 -1.442695, %v933_v22  ;;  %v729_v25 = vmul.f32 -1.442695, %v936_v23 }
  0xa5   :  { %783 = vpow2.f32 %v725_v24  ;;  %v210_v26 = vpop.f32.mrf.mxu2  ;;  %v220_v27 = vpop.f32.mrf.mxu3 }
  0xa6   :  { %785 = vpow2.f32 %v729_v25  ;;  %v293_v28 = vmul.f32 %v923_v16, %v210_v26  ;;  %v297_v29 = vmul.f32 %v923_v16, %v220_v27  ;;  %v192_v30 = vpop.f32.mrf.mxu0  ;;  %v202_v31 = vpop.f32.mrf.mxu1 }
  0xa7   :  { %v286_v32 = vmul.f32 %v923_v16, %v192_v30  ;;  %v290_v33 = vmul.f32 %v923_v16, %v202_v31 }
  0xa8   :  { %v945_v34 = vadd.f32 %v928_v17, %v293_v28  ;;  %v948_v35 = vadd.f32 %v928_v17, %v297_v29 }
  0xa9   :  { %v951_v36 = vadd.f32 %v928_v17, %v286_v32  ;;  %v954_v37 = vadd.f32 %v928_v17, %v290_v33 }
  0xaa   :  { %v733_v38 = vmul.f32 -1.442695, %v945_v34  ;;  %v737_v39 = vmul.f32 -1.442695, %v948_v35 }
  0xab   :  { %v784_v40 = vpop.eup %783  ;;  %v726_v43 = vmul.f32 -1.442695, %v951_v36  ;;  %v730_v45 = vmul.f32 -1.442695, %v954_v37 }
  0xac   :  { %v786_v41 = vpop.eup %785  ;;  %v369_v42 = vadd.f32 1.0, %v784_v40  ;;  %787 = vpow2.f32 %v733_v38 }
  0xad   :  { %v959_v44 = vadd.f32 1.0, %v786_v41  ;;  %789 = vpow2.f32 %v737_v39  ;;  %v212_v46 = vpop.f32.mrf.mxu2  ;;  %v222_v48 = vpop.f32.mrf.mxu3 }
  0xae   :  { %791 = vrcp.f32 %v369_v42  ;;  %v294_v47 = vmul.f32 %v923_v16, %v212_v46  ;;  %v394_v49 = vand.u32 2147483647, %v369_v42  ;;  %v396_v50 = vand.u32 2147483648, %v369_v42  ;;  %v195_v51 = vpop.f32.mrf.mxu0  ;;  %v205_v59 = vpop.f32.mrf.mxu1 }
  0xaf   :  { %793 = vrcp.f32 %v959_v44  ;;  %v454_v53 = vand.u32 2147483647, %v959_v44  ;;  %v456_v56 = vand.u32 2147483648, %v959_v44  ;;  %v298_v58 = vmul.f32 %v923_v16, %v222_v48 }
  0xb0   :  { %795 = vpow2.f32 %v726_v43  ;;  %v966_v54 = vadd.f32 %v928_v17, %v294_v47  ;;  %vm390_vm0 = vweird.f32 %v369_v42  ;;  %vm450_vm1 = vweird.f32 %v959_v44 }
  0xb1   :  { %797 = vpow2.f32 %v730_v45  ;;  %v287_v62 = vmul.f32 %v923_v16, %v195_v51  ;;  %vm976_vm2 = vcmp.eq.f32.partialorder %v394_v49, 8.507059e+37  ;;  %v397_v2 = vor.u32 1.1754944e-38, %v396_v50 }
  0xb2   :  { %v788_v52 = vpop.eup %787  ;;  %vm982_vm3 = vcmp.eq.f32.partialorder %v454_v53, 8.507059e+37  ;;  %v734_v6 = vmul.f32 -1.442695, %v966_v54  ;;  %v291_v7 = vmul.f32 %v923_v16, %v205_v59  ;;  %v457_v10 = vor.u32 1.1754944e-38, %v456_v56 }
  0xb3   :  { %v790_v55 = vpop.eup %789  ;;  %v969_v57 = vadd.f32 1.0, %v788_v52  ;;  %v990_v11 = vadd.f32 %v928_v17, %v298_v58  ;;  %v995_v15 = vadd.f32 %v928_v17, %v287_v62 }
  0xb4   :  { %v792_v60 = vpop.eup %791  ;;  %v973_v61 = vadd.f32 1.0, %v790_v55  ;;  %v1002_v24 = vadd.f32 %v928_v17, %v291_v7 }
  0xb5   :  { %v794_v63 = vpop.eup %793  ;;  %v386_v0 = vmul.f32 %v792_v60, %v369_v42  ;;  %799 = vrcp.f32 %v969_v57  ;;  %v514_v13 = vand.u32 2147483647, %v969_v57  ;;  %v516_v14 = vand.u32 2147483648, %v969_v57 }
  0xb6   :  { %v796_v3 = vpop.eup %795  ;;  %v446_v4 = vmul.f32 %v794_v63, %v959_v44  ;;  %801 = vrcp.f32 %v973_v61  ;;  %vm391_vm4 = vweird.f32 %v792_v60  ;;  %vm451_vm5 = vweird.f32 %v794_v63 }
  0xb7   :  { %v798_v8 = vpop.eup %797  ;;  %v387_v9 = vsub.f32 1.0, %v386_v0  ;;  %v997_v19 = vadd.f32 1.0, %v796_v3  ;;  %803 = vpow2.f32 %v734_v6  ;;  %vm510_vm6 = vweird.f32 %v969_v57  ;;  %vm392_vm7 = vmor %vm390_vm0, %vm391_vm4 }
  0xb8   :  { %v447_v12 = vsub.f32 1.0, %v446_v4  ;;  %v999_v20 = vadd.f32 1.0, %v798_v8  ;;  %v574_v27 = vand.u32 2147483647, %v973_v61  ;;  %vm1009_vm8 = vcmp.eq.f32.partialorder %v514_v13, 8.507059e+37  ;;  %vm452_vm10 = vmor %vm450_vm1, %vm451_vm5 }
  0xb9   :  { %v388_v18 = vmul.f32 %v792_v60, %v387_v9  ;;  %805 = vrcp.f32 %v997_v19  ;;  %v517_v31 = vor.u32 1.1754944e-38, %v516_v14  ;;  %vm570_vm9 = vweird.f32 %v973_v61  ;;  %v215_v9 = vpop.f32.mrf.mxu2 }
  0xba   :  { %v448_v21 = vmul.f32 %v794_v63, %v447_v12  ;;  %v576_v38 = vand.u32 2147483648, %v973_v61  ;;  %807 = vrcp.f32 %v999_v20  ;;  %v738_v39 = vmul.f32 -1.442695, %v990_v11 }
  0xbb   :  { %v800_v25 = vpop.eup %799  ;;  %v389_v26 = vadd.f32 %v792_v60, %v388_v18  ;;  %vm1026_vm11 = vcmp.eq.f32.partialorder %v574_v27, 8.507059e+37  ;;  %v409_v47 = vand.u32 2147483647, %v997_v19  ;;  %vm405_vm13 = vweird.f32 %v997_v19  ;;  %v225_v18 = vpop.f32.mrf.mxu3 }
  0xbc   :  { %v449_v28 = vadd.f32 %v794_v63, %v448_v21  ;;  %v506_v29 = vmul.f32 %v800_v25, %v969_v57  ;;  %v802_v32 = vpop.eup %801  ;;  %vm511_vm12 = vweird.f32 %v800_v25  ;;  %809 = vpow2.f32 %v738_v39  ;;  %v197_v21 = vpop.f32.mrf.mxu0 }
  0xbd   :  { %v393_v33 = vsel %vm392_vm7, %v792_v60, %v389_v26  ;;  %v566_v43 = vmul.f32 %v802_v32, %v973_v61  ;;  %v804_v48 = vpop.eup %803  ;;  %vm571_vm14 = vweird.f32 %v802_v32  ;;  %vm512_vm15 = vmor %vm510_vm6, %vm511_vm12  ;;  %vm1044_vm0 = vcmp.eq.f32.partialorder %v409_v47, 8.507059e+37 }
  0xbe   :  { %v398_v40 = vsel %vm976_vm2, %v397_v2, %v393_v33  ;;  %v453_v41 = vsel %vm452_vm10, %v794_v63, %v449_v28  ;;  %v507_v42 = vsub.f32 1.0, %v506_v29  ;;  %v1036_v53 = vadd.f32 1.0, %v804_v48  ;;  %vm572_vm1 = vmor %vm570_vm9, %vm571_vm14 }
  0xbf   :  { %v625_v45 = vmul.f32 %v398_v40, %v933_v22  ;;  %v458_v46 = vsel %vm982_vm3, %v457_v10, %v453_v41  ;;  %v567_v51 = vsub.f32 1.0, %v566_v43  ;;  %v806_v52 = vpop.eup %805  ;;  %v577_v22 = vor.u32 1.1754944e-38, %v576_v38  ;;  %v207_v43 = vpop.f32.mrf.mxu1 }
  0xc0   :  { %v629_v49 = vmul.f32 %v458_v46, %v936_v23  ;;  %v508_v50 = vmul.f32 %v800_v25, %v507_v42  ;;  %v401_v56 = vmul.f32 %v806_v52, %v997_v19  ;;  %v808_v58 = vpop.eup %807  ;;  %v411_v60 = vand.u32 2147483648, %v997_v19 }
  0xc1   :  { %641 = vst [vmem:[%s1237_s4] sm:$0xff] %v625_v45  ;;  %v568_v23 = vmul.f32 %v802_v32, %v567_v51  ;;  %811 = vrcp.f32 %v1036_v53  ;;  %v727_v62 = vmul.f32 -1.442695, %v995_v15  ;;  %v461_v2 = vmul.f32 %v808_v58, %v999_v20 }
  0xc2   :  { %645 = vst [vmem:[%s1237_s4 + $0x20] sm:$0xff] %v629_v49  ;;  %v509_v55 = vadd.f32 %v800_v25, %v508_v50  ;;  %v402_v1 = vsub.f32 1.0, %v401_v56  ;;  %vm406_vm2 = vweird.f32 %v806_v52  ;;  %v469_v57 = vand.u32 2147483647, %v999_v20  ;;  %v810_v10 = vpop.eup %809 }
  0xc3   :  { %v569_v0 = vadd.f32 %v802_v32, %v568_v23  ;;  %v471_v4 = vand.u32 2147483648, %v999_v20  ;;  %v462_v8 = vsub.f32 1.0, %v461_v2  ;;  %vm465_vm3 = vweird.f32 %v999_v20  ;;  %vm407_vm5 = vmor %vm405_vm13, %vm406_vm2  ;;  %v217_v2 = vpop.f32.mrf.mxu2 }
  0xc4   :  { %v513_v63 = vsel %vm512_vm15, %v800_v25, %v509_v55  ;;  %v403_v7 = vmul.f32 %v806_v52, %v402_v1  ;;  %vm466_vm4 = vweird.f32 %v808_v58  ;;  %813 = vpow2.f32 %v727_v62  ;;  %v227_v62 = vpop.f32.mrf.mxu3 }
  0xc5   :  { %v518_v3 = vsel %vm1009_vm8, %v517_v31, %v513_v63  ;;  %v573_v6 = vsel %vm572_vm1, %v802_v32, %v569_v0  ;;  %v1066_v14 = vadd.f32 1.0, %v810_v10  ;;  %v412_v26 = vor.u32 1.1754944e-38, %v411_v60  ;;  %vm467_vm7 = vmor %vm465_vm3, %vm466_vm4 }
  0xc6   :  { %v633_v5 = vmul.f32 %v518_v3, %v945_v34  ;;  %v578_v12 = vsel %vm1026_vm11, %v577_v22, %v573_v6  ;;  %v404_v13 = vadd.f32 %v806_v52, %v403_v7  ;;  %v463_v34 = vmul.f32 %v808_v58, %v462_v8 }
  0xc7   :  { %v637_v61 = vmul.f32 %v578_v12, %v948_v35  ;;  %v812_v25 = vpop.eup %811  ;;  %vm1071_vm6 = vcmp.eq.f32.partialorder %v469_v57, 8.507059e+37  ;;  %v731_v28 = vmul.f32 -1.442695, %v1002_v24  ;;  %v295_v35 = vmul.f32 %v923_v16, %v215_v9 }
  0xc8   :  { %649 = vst [vmem:[%s1237_s4 + $0x40] sm:$0xff] %v633_v5  ;;  %v408_v29 = vsel %vm407_vm5, %v806_v52, %v404_v13  ;;  %v464_v30 = vadd.f32 %v808_v58, %v463_v34  ;;  %v472_v31 = vor.u32 1.1754944e-38, %v471_v4  ;;  %v521_v32 = vmul.f32 %v812_v25, %v1036_v53 }
  0xc9   :  { %653 = vst [vmem:[%s1237_s4 + $0x60] sm:$0xff] %v637_v61  ;;  %v413_v19 = vsel %vm1044_vm0, %v412_v26, %v408_v29  ;;  %815 = vrcp.f32 %v1066_v14  ;;  %v299_v33 = vmul.f32 %v923_v16, %v225_v18  ;;  %v288_v38 = vmul.f32 %v923_v16, %v197_v21 }
  0xca   :  { %v626_v39 = vmul.f32 %v413_v19, %v951_v36  ;;  %v468_v40 = vsel %vm467_vm7, %v808_v58, %v464_v30  ;;  %v522_v41 = vsub.f32 1.0, %v521_v32  ;;  %v529_v42 = vand.u32 2147483647, %v1036_v53  ;;  %v814_v45 = vpop.eup %813 }
  0xcb   :  { %v473_v46 = vsel %vm1071_vm6, %v472_v31, %v468_v40  ;;  %v531_v20 = vand.u32 2147483648, %v1036_v53  ;;  %817 = vpow2.f32 %v731_v28  ;;  %v1095_v44 = vadd.f32 %v928_v17, %v295_v35 }
  0xcc   :  { %642 = vst [vmem:[%s1237_s4 + $0x8] sm:$0xff] %v626_v39  ;;  %v630_v36 = vmul.f32 %v473_v46, %v954_v37  ;;  %v523_v47 = vmul.f32 %v812_v25, %v522_v41  ;;  %vm526_vm8 = vweird.f32 %v812_v25  ;;  %v1101_v48 = vadd.f32 1.0, %v814_v45 }
  0xcd   :  { %v735_v49 = vmul.f32 -1.442695, %v1095_v44  ;;  %v1105_v50 = vadd.f32 %v928_v17, %v299_v33  ;;  %v1108_v51 = vadd.f32 %v928_v17, %v288_v38  ;;  %v292_v52 = vmul.f32 %v923_v16, %v207_v43 }
  0xce   :  { %646 = vst [vmem:[%s1237_s4 + $0x28] sm:$0xff] %v630_v36  ;;  %v524_v22 = vadd.f32 %v812_v25, %v523_v47  ;;  %vm525_vm9 = vweird.f32 %v1036_v53  ;;  %819 = vrcp.f32 %v1101_v48  ;;  %v532_v55 = vor.u32 1.1754944e-38, %v531_v20 }
  0xcf   :  { %v816_v37 = vpop.eup %815  ;;  %vm527_vm10 = vmor %vm525_vm9, %vm526_vm8  ;;  %821 = vpow2.f32 %v735_v49  ;;  %v739_v23 = vmul.f32 -1.442695, %v1105_v50  ;;  %v728_v56 = vmul.f32 -1.442695, %v1108_v51  ;;  %vm530_vm11 = vcmp.eq.f32.partialorder %v529_v42, 8.507059e+37 }
  0xd0   :  { %v528_v58 = vsel %vm527_vm10, %v812_v25, %v524_v22  ;;  %v581_v59 = vmul.f32 %v816_v37, %v1066_v14  ;;  %v589_v60 = vand.u32 2147483647, %v1066_v14  ;;  %v591_v53 = vand.u32 2147483648, %v1066_v14 }
  0xd1   :  { %v818_v63 = vpop.eup %817  ;;  %v533_v0 = vsel %vm530_vm11, %v532_v55, %v528_v58  ;;  %823 = vpow2.f32 %v739_v23  ;;  %v1122_v1 = vadd.f32 %v928_v17, %v292_v52  ;;  %v300_v6 = vmul.f32 %v923_v16, %v227_v62 }
  0xd2   :  { %v634_v3 = vmul.f32 %v533_v0, %v966_v54  ;;  %v582_v57 = vsub.f32 1.0, %v581_v59  ;;  %v1125_v4 = vadd.f32 1.0, %v818_v63  ;;  %825 = vpow2.f32 %v728_v56 }
  0xd3   :  { %v732_v5 = vmul.f32 -1.442695, %v1122_v1  ;;  %vm586_vm12 = vweird.f32 %v816_v37  ;;  %v296_v9 = vmul.f32 %v923_v16, %v217_v2  ;;  %vm585_vm13 = vweird.f32 %v1066_v14 }
  0xd4   :  { %v820_v7 = vpop.eup %819  ;;  %650 = vst [vmem:[%s1237_s4 + $0x48] sm:$0xff] %v634_v3  ;;  %v583_v8 = vmul.f32 %v816_v37, %v582_v57  ;;  %827 = vrcp.f32 %v1125_v4  ;;  %vm1135_vm14 = vcmp.eq.f32.partialorder %v589_v60, 8.507059e+37  ;;  %v592_v13 = vor.u32 1.1754944e-38, %v591_v53  ;;  %vm587_vm0 = vmor %vm585_vm13, %vm586_vm12 }
  0xd5   :  { %v822_v54 = vpop.eup %821  ;;  %v416_v12 = vmul.f32 %v820_v7, %v1101_v48  ;;  %vm420_vm15 = vweird.f32 %v1101_v48  ;;  %v424_v16 = vand.u32 2147483647, %v1101_v48  ;;  %829 = vpow2.f32 %v732_v5 }
  0xd6   :  { %v584_v61 = vadd.f32 %v816_v37, %v583_v8  ;;  %v1141_v34 = vadd.f32 1.0, %v822_v54  ;;  %v1145_v14 = vadd.f32 %v928_v17, %v300_v6  ;;  %v426_v27 = vand.u32 2147483648, %v1101_v48 }
  0xd7   :  { %v824_v18 = vpop.eup %823  ;;  %v417_v21 = vsub.f32 1.0, %v416_v12  ;;  %v1150_v28 = vadd.f32 %v928_v17, %v296_v9  ;;  %vm421_vm1 = vweird.f32 %v820_v7  ;;  %vm425_vm2 = vcmp.eq.f32.partialorder %v424_v16, 8.507059e+37 }
  0xd8   :  { %v826_v25 = vpop.eup %825  ;;  %v588_v26 = vsel %vm587_vm0, %v816_v37, %v584_v61  ;;  %831 = vrcp.f32 %v1141_v34  ;;  %v1154_v30 = vadd.f32 1.0, %v824_v18  ;;  %vm422_vm3 = vmor %vm420_vm15, %vm421_vm1  ;;  %v427_v17 = vor.u32 1.1754944e-38, %v426_v27 }
  0xd9   :  { %v593_v35 = vsel %vm1135_vm14, %v592_v13, %v588_v26  ;;  %v418_v29 = vmul.f32 %v820_v7, %v417_v21  ;;  %v1157_v19 = vadd.f32 1.0, %v826_v25  ;;  %v484_v39 = vand.u32 2147483647, %v1125_v4 }
  0xda   :  { %v828_v31 = vpop.eup %827  ;;  %v638_v32 = vmul.f32 %v593_v35, %v990_v11  ;;  %833 = vrcp.f32 %v1154_v30  ;;  %v736_v11 = vmul.f32 -1.442695, %v1150_v28  ;;  %v486_v43 = vand.u32 2147483648, %v1125_v4 }
  0xdb   :  { %v419_v33 = vadd.f32 %v820_v7, %v418_v29  ;;  %v476_v38 = vmul.f32 %v828_v31, %v1125_v4  ;;  %v830_v40 = vpop.eup %829  ;;  %835 = vrcp.f32 %v1157_v19  ;;  %vm480_vm4 = vweird.f32 %v1125_v4 }
  0xdc   :  { %654 = vst [vmem:[%s1237_s4 + $0x68] sm:$0xff] %v638_v32  ;;  %v544_v20 = vand.u32 2147483647, %v1141_v34  ;;  %vm481_vm5 = vweird.f32 %v828_v31  ;;  %v546_v49 = vand.u32 2147483648, %v1141_v34  ;;  %v1175_v52 = vadd.f32 1.0, %v830_v40 }
  0xdd   :  { %v423_v41 = vsel %vm422_vm3, %v820_v7, %v419_v33  ;;  %v477_v42 = vsub.f32 1.0, %v476_v38  ;;  %837 = vpow2.f32 %v736_v11  ;;  %vm485_vm6 = vcmp.eq.f32.partialorder %v484_v39, 8.507059e+37  ;;  %vm482_vm7 = vmor %vm480_vm4, %vm481_vm5 }
  0xde   :  { %v832_v45 = vpop.eup %831  ;;  %v428_v46 = vsel %vm425_vm2, %v427_v17, %v423_v41  ;;  %v487_v37 = vor.u32 1.1754944e-38, %v486_v43  ;;  %vm540_vm8 = vweird.f32 %v1141_v34  ;;  %vm1183_vm9 = vcmp.eq.f32.partialorder %v544_v20, 8.507059e+37 }
  0xdf   :  { %v627_v36 = vmul.f32 %v428_v46, %v995_v15  ;;  %v478_v47 = vmul.f32 %v828_v31, %v477_v42  ;;  %v536_v48 = vmul.f32 %v832_v45, %v1141_v34  ;;  %839 = vrcp.f32 %v1175_v52 }
  0xe0   :  { %v834_v23 = vpop.eup %833  ;;  %v740_v56 = vmul.f32 -1.442695, %v1145_v14  ;;  %vm541_vm10 = vweird.f32 %v832_v45  ;;  %v547_v0 = vor.u32 1.1754944e-38, %v546_v49  ;;  %v604_v53 = vand.u32 2147483647, %v1154_v30 }
  0xe1   :  { %643 = vst [vmem:[%s1237_s4 + $0x10] sm:$0xff] %v627_v36  ;;  %v479_v22 = vadd.f32 %v828_v31, %v478_v47  ;;  %v537_v55 = vsub.f32 1.0, %v536_v48  ;;  %v836_v58 = vpop.eup %835  ;;  %v596_v62 = vmul.f32 %v834_v23, %v1154_v30  ;;  %v606_v5 = vand.u32 2147483648, %v1154_v30  ;;  %vm542_vm11 = vmor %vm540_vm8, %vm541_vm10 }
  0xe2   :  { %v431_v2 = vmul.f32 %v836_v58, %v1157_v19  ;;  %v439_v8 = vand.u32 2147483647, %v1157_v19  ;;  %v441_v9 = vand.u32 2147483648, %v1157_v19  ;;  %841 = vpow2.f32 %v740_v56 }
  0xe3   :  { %v483_v59 = vsel %vm482_vm7, %v828_v31, %v479_v22  ;;  %v538_v60 = vmul.f32 %v832_v45, %v537_v55  ;;  %v597_v4 = vsub.f32 1.0, %v596_v62  ;;  %v838_v6 = vpop.eup %837  ;;  %vm601_vm12 = vweird.f32 %v834_v23 }
  0xe4   :  { %v488_v63 = vsel %vm485_vm6, %v487_v37, %v483_v59  ;;  %v432_v7 = vsub.f32 1.0, %v431_v2  ;;  %v380_v10 = vadd.f32 1.0, %v838_v6  ;;  %vm600_vm13 = vweird.f32 %v1154_v30 }
  0xe5   :  { %v631_v3 = vmul.f32 %v488_v63, %v1002_v24  ;;  %v539_v57 = vadd.f32 %v832_v45, %v538_v60  ;;  %v598_v24 = vmul.f32 %v834_v23, %v597_v4  ;;  %v840_v12 = vpop.eup %839  ;;  %vm436_vm14 = vweird.f32 %v836_v58  ;;  %vm602_vm0 = vmor %vm600_vm13, %vm601_vm12 }
  0xe6   :  { %v433_v13 = vmul.f32 %v836_v58, %v432_v7  ;;  %vm435_vm15 = vweird.f32 %v1157_v19  ;;  %v491_v21 = vmul.f32 %v840_v12, %v1175_v52  ;;  %vm605_vm1 = vcmp.eq.f32.partialorder %v604_v53, 8.507059e+37 }
  0xe7   :  { %647 = vst [vmem:[%s1237_s4 + $0x30] sm:$0xff] %v631_v3  ;;  %v543_v54 = vsel %vm542_vm11, %v832_v45, %v539_v57  ;;  %v599_v18 = vadd.f32 %v834_v23, %v598_v24  ;;  %v607_v16 = vor.u32 1.1754944e-38, %v606_v5  ;;  %843 = vrcp.f32 %v380_v10  ;;  %vm437_vm2 = vmor %vm435_vm15, %vm436_vm14 }
  0xe8   :  { %v548_v61 = vsel %vm1183_vm9, %v547_v0, %v543_v54  ;;  %v434_v25 = vadd.f32 %v836_v58, %v433_v13  ;;  %vm440_vm3 = vcmp.eq.f32.partialorder %v439_v8, 8.507059e+37  ;;  %v442_v27 = vor.u32 1.1754944e-38, %v441_v9 }
  0xe9   :  { %v635_v34 = vmul.f32 %v548_v61, %v1095_v44  ;;  %v603_v26 = vsel %vm602_vm0, %v834_v23, %v599_v18  ;;  %v492_v35 = vsub.f32 1.0, %v491_v21  ;;  %v842_v44 = vpop.eup %841  ;;  %v499_v31 = vand.u32 2147483647, %v1175_v52 }
  0xea   :  { %v608_v29 = vsel %vm605_vm1, %v607_v16, %v603_v26  ;;  %v438_v30 = vsel %vm437_vm2, %v836_v58, %v434_v25  ;;  %v501_v32 = vand.u32 2147483648, %v1175_v52  ;;  %vm496_vm4 = vweird.f32 %v840_v12 }
  0xeb   :  { %651 = vst [vmem:[%s1237_s4 + $0x50] sm:$0xff] %v635_v34  ;;  %v639_v19 = vmul.f32 %v608_v29, %v1105_v50  ;;  %v443_v33 = vsel %vm440_vm3, %v442_v27, %v438_v30  ;;  %v493_v38 = vmul.f32 %v840_v12, %v492_v35  ;;  %v384_v39 = vadd.f32 1.0, %v842_v44 }
  0xec   :  { %v628_v17 = vmul.f32 %v443_v33, %v1108_v51  ;;  %vm495_vm5 = vweird.f32 %v1175_v52  ;;  %v502_v50 = vor.u32 1.1754944e-38, %v501_v32  ;;  %vm500_vm7 = vcmp.eq.f32.partialorder %v499_v31, 8.507059e+37 }
  0xed   :  { %655 = vst [vmem:[%s1237_s4 + $0x70] sm:$0xff] %v639_v19  ;;  %v494_v11 = vadd.f32 %v840_v12, %v493_v38  ;;  %v844_v40 = vpop.eup %843  ;;  %vm497_vm6 = vmor %vm495_vm5, %vm496_vm4  ;;  %845 = vrcp.f32 %v384_v39  ;;  %v561_v46 = vand.u32 2147483648, %v380_v10  ;;  %v559_v36 = vand.u32 2147483647, %v380_v10 }
  0xee   :  { %644 = vst [vmem:[%s1237_s4 + $0x18] sm:$0xff] %v628_v17  ;;  %v551_v42 = vmul.f32 %v844_v40, %v380_v10  ;;  %vm556_vm8 = vweird.f32 %v844_v40  ;;  %vm555_vm9 = vweird.f32 %v380_v10  ;;  %v619_v56 = vand.u32 2147483647, %v384_v39 }
  0xef   :  { %v498_v41 = vsel %vm497_vm6, %v840_v12, %v494_v11  ;;  %vm557_vm10 = vmor %vm555_vm9, %vm556_vm8  ;;  %v562_v52 = vor.u32 1.1754944e-38, %v561_v46  ;;  %vm560_vm11 = vcmp.eq.f32.partialorder %v559_v36, 8.507059e+37  ;;  %vm615_vm13 = vweird.f32 %v384_v39 }
  0xf0   :  { %v503_v51 = vsel %vm500_vm7, %v502_v50, %v498_v41  ;;  %v552_v45 = vsub.f32 1.0, %v551_v42  ;;  %vm620_vm15 = vcmp.eq.f32.partialorder %v619_v56, 8.507059e+37 }
  0xf1   :  { %v632_v43 = vmul.f32 %v503_v51, %v1122_v1  ;;  %v621_v1 = vand.u32 2147483648, %v384_v39 }
  0xf2   :  { %v553_v20 = vmul.f32 %v844_v40, %v552_v45 }
  0xf3   :  { %648 = vst [vmem:[%s1237_s4 + $0x38] sm:$0xff] %v632_v43  ;;  %v846_v47 = vpop.eup %845  ;;  %v622_v59 = vor.u32 1.1754944e-38, %v621_v1 }
  0xf4   :  { %v554_v48 = vadd.f32 %v844_v40, %v553_v20  ;;  %v611_v49 = vmul.f32 %v846_v47, %v384_v39  ;;  %vm616_vm12 = vweird.f32 %v846_v47 }
  0xf5   :  { %vm617_vm14 = vmor %vm615_vm13, %vm616_vm12 }
  0xf6   :  { %v558_v22 = vsel %vm557_vm10, %v844_v40, %v554_v48  ;;  %v612_v37 = vsub.f32 1.0, %v611_v49 }
  0xf7   :  { %v563_v55 = vsel %vm560_vm11, %v562_v52, %v558_v22 }
  0xf8   :  { %v636_v23 = vmul.f32 %v563_v55, %v1150_v28  ;;  %v613_v15 = vmul.f32 %v846_v47, %v612_v37 }
  0xfa   :  { %652 = vst [vmem:[%s1237_s4 + $0x58] sm:$0xff] %v636_v23  ;;  %v614_v58 = vadd.f32 %v846_v47, %v613_v15 }
  0xfc   :  { %v618_v60 = vsel %vm617_vm14, %v846_v47, %v614_v58 }
  0xfd   :  { %v623_v62 = vsel %vm620_vm15, %v622_v59, %v618_v60 }
  0xfe   :  { %v640_v63 = vmul.f32 %v623_v62, %v1145_v14 }
 0x100   :  { %656 = vst [vmem:[%s1237_s4 + $0x78] sm:$0xff] %v640_v63 }

// kernel: _lambda_.12
= control target key start
LH: loop header
LB: loop body
LE: loop exit
PB: predicated region body
PF: predicated region fallthrough
CT: control target
= control target key end

     0   :  { %s1585_s18 = smov 0   ;;  %s1587_s19 = smov 0   ;;  %s2231_s0 = inlined_call_operand.vmem [shape: bf16[128,256], index: 0, kind: input, shape index: {}]   ;;  %s2232_s1 = inlined_call_operand.vmem [shape: bf16[256,128], index: 1, kind: input, shape index: {}]   ;;  %s2233_s2 = inlined_call_operand.vmem [shape: f32[1,128], index: 2, kind: input, shape index: {}]   ;;  %s2234_s3 = inlined_call_operand.vmem [shape: f32[1,128], index: 3, kind: input, shape index: {}]   ;;  %s2235_s4 = inlined_call_operand.vmem [shape: f32[128,128], index: 4, kind: input, shape index: {}]   ;;  %s2236_s5 = inlined_call_operand.vmem [shape: f32[128,128], index: 5, kind: output, shape index: {}]  }
   0x1   :  { %s1589_s20 = smov 0   ;;  %s1591_s21 = smov 0  }
   0x2   :  { %s1593_s22 = smov 0  }
   0x3 LB: > { %s27_s23 = sadd.s32 1, %s1548_s21  ;;  %p50_p1 = scmp.ne.s32.totalorder %s1540_s19, %s1536_s18  ;;  %s1552_s22 = sphi %s1593_s22, %s15_s22   ;;  %s1548_s21 = sphi %s1591_s21, %s2297_s21   ;;  %s1544_s20 = sphi %s1589_s20, %s2296_s20   ;;  %s1540_s19 = sphi %s1587_s19, %s2295_s19   ;;  %s1536_s18 = sphi %s1585_s18, %s2294_s18  }
   0x4   : > { %p28_p0 = scmp.ge.s32.totalorder %s27_s23, 2  ;;  %p51_p2 = scmp.eq.s32.totalorder %s1552_s22, 0 }
   0x5   : > { %s43_s25 = sadd.s32 1, %s1540_s19  ;;  %p1274_p5 = scmp.ge.s32.totalorder %s1552_s22, 2 }
   0x6   : > { %s2299_s23 = smov (%p28_p0, %s27_s23), 0  ;;  %p52_p3 = por %p51_p2, %p50_p1 }
   0x7   : > { %s39_s24 = ssub.s32 %s1548_s21, %s2299_s23  ;;  %236 = sbr.rel (%p1274_p5) target bundleno = 32 (0x20), region = 28 }
   0x8   : > { %p41_p4 = scmp.eq.s32.totalorder %s39_s24, 0 }
   0xa   : > { %s1620_s26 = scalar_select %p41_p4, %s1540_s19, %s43_s25  }
   0xc   : > { %239 = sbr.rel (!%p52_p3) target bundleno = 32 (0x20), region = 32  ;;  %s241_s27 = sand.u32 (%p52_p3), 1, %s1540_s19  }
   0xd   : > { %s1276_s28 = sshll.u32 (%p52_p3), %s1548_s21, 2  ;;  %s1275_s29 = sshll.u32 (%p52_p3), %s241_s27, 6 }
   0xe   : > { %s1628_s7 = scalar_lea.vmem (%p52_p3), %s2231_s0, %s1276_s28  ;;  %s243_s8 = scalar_lea.vmem (%p52_p3), [#allocation3], %s1275_s29 }
   0xf   : > { %v265_v0 = vld [vmem:[%s1628_s7] sm:$0xf] (%p52_p3)  ;;  %v267_v1 = vld [vmem:[%s1628_s7 + $0x8] sm:$0xf] (%p52_p3)  ;;  %v269_v2 = vld [vmem:[%s1628_s7 + $0x10] sm:$0xf] (%p52_p3) }
  0x10   : > { %266 = vst [vmem:[%s243_s8] sm:$0xf] (%p52_p3), %v265_v0  ;;  %v271_v3 = vld [vmem:[%s1628_s7 + $0x18] sm:$0xf] (%p52_p3)  ;;  %v273_v4 = vld [vmem:[%s1628_s7 + $0x20] sm:$0xf] (%p52_p3) }
  0x11   : > { %268 = vst [vmem:[%s243_s8 + $0x4] sm:$0xf] %v267_v1  ;;  %v275_v5 = vld [vmem:[%s1628_s7 + $0x28] sm:$0xf]  ;;  %v277_v6 = vld [vmem:[%s1628_s7 + $0x30] sm:$0xf] }
  0x12   : > { %270 = vst [vmem:[%s243_s8 + $0x8] sm:$0xf] %v269_v2  ;;  %v279_v7 = vld [vmem:[%s1628_s7 + $0x38] sm:$0xf]  ;;  %v281_v8 = vld [vmem:[%s1628_s7 + $0x40] sm:$0xf] }
  0x13   : > { %272 = vst [vmem:[%s243_s8 + $0xc] sm:$0xf] %v271_v3  ;;  %v283_v9 = vld [vmem:[%s1628_s7 + $0x48] sm:$0xf]  ;;  %v285_v10 = vld [vmem:[%s1628_s7 + $0x50] sm:$0xf] }
  0x14   : > { %274 = vst [vmem:[%s243_s8 + $0x10] sm:$0xf] %v273_v4  ;;  %v287_v11 = vld [vmem:[%s1628_s7 + $0x58] sm:$0xf]  ;;  %v289_v12 = vld [vmem:[%s1628_s7 + $0x60] sm:$0xf] }
  0x15   : > { %276 = vst [vmem:[%s243_s8 + $0x14] sm:$0xf] %v275_v5  ;;  %v291_v13 = vld [vmem:[%s1628_s7 + $0x68] sm:$0xf]  ;;  %v293_v14 = vld [vmem:[%s1628_s7 + $0x70] sm:$0xf] }
  0x16   : > { %278 = vst [vmem:[%s243_s8 + $0x18] sm:$0xf] %v277_v6  ;;  %v295_v15 = vld [vmem:[%s1628_s7 + $0x78] sm:$0xf] }
  0x17   : > { %280 = vst [vmem:[%s243_s8 + $0x1c] sm:$0xf] %v279_v7 }
  0x18   : > { %282 = vst [vmem:[%s243_s8 + $0x20] sm:$0xf] %v281_v8 }
  0x19   : > { %284 = vst [vmem:[%s243_s8 + $0x24] sm:$0xf] %v283_v9 }
  0x1a   : > { %286 = vst [vmem:[%s243_s8 + $0x28] sm:$0xf] %v285_v10 }
  0x1b   : > { %288 = vst [vmem:[%s243_s8 + $0x2c] sm:$0xf] %v287_v11 }
  0x1c   : > { %290 = vst [vmem:[%s243_s8 + $0x30] sm:$0xf] %v289_v12 }
  0x1d   : > { %292 = vst [vmem:[%s243_s8 + $0x34] sm:$0xf] %v291_v13 }
  0x1e   : > { %294 = vst [vmem:[%s243_s8 + $0x38] sm:$0xf] %v293_v14 }
  0x1f   : > { %296 = vst [vmem:[%s243_s8 + $0x3c] sm:$0xf] %v295_v15 }
  0x20 PF: > { %p1277_p6 = scmp.ge.s32.totalorder %s1552_s22, 1  ;;  %p363_p7 = scmp.lt.s32.totalorder %s1552_s22, 3 }
  0x22   : > { %p364_p8 = pnand %p1277_p6, %p363_p7 }
  0x23   : > { %s370_s9 = sand.u32 (!%p364_p8), 1, %s1536_s18   ;;  %s1279_s10 = sshll.u32 (!%p364_p8), %s1544_s20, 4 }
  0x24   : > { %367 = sbr.rel (%p364_p8) target bundleno = 349 (0x15d), region = 77  ;;  %s1278_s11 = sshll.u32 (!%p364_p8), %s370_s9, 6 }
  0x25   : > { %p424_p9 = scmp.lt.s32.totalorder (!%p364_p8), %s1279_s10, 31  ;;  %s1655_s16 = scalar_lea.vmem (!%p364_p8), [#allocation3], %s1278_s11 }
  0x26   : > { %p1281_p10 = scmp.ne.s32.totalorder (!%p364_p8), %s1544_s20, 0 }
  0x29   : > { %s2301_s10 = smov (!%p424_p9, %s1279_s10), 31  ;;  %459 = sbr.rel (%p1281_p10) target bundleno = 63 (0x3f), region = 85 }
  0x2a   : > { %s1280_s12 = sshll.u32 %s2301_s10, 2 }
  0x2b   : > { %s1653_s15 = scalar_lea.vmem %s2232_s1, %s1280_s12 }
  0x2e   : > { %v1554_v16 = vmov 0.0  }
  0x2f   : > { %460 = vst [vmem:[#allocation2 + $0x30] sm:$0xff] %v1554_v16 }
  0x30   : > { %461 = vst [vmem:[#allocation2] sm:$0xff] %v1554_v16 }
  0x31   : > { %462 = vst [vmem:[#allocation2 + $0x58] sm:$0xff] %v1554_v16 }
  0x32   : > { %463 = vst [vmem:[#allocation2 + $0x18] sm:$0xff] %v1554_v16 }
  0x33   : > { %464 = vst [vmem:[#allocation2 + $0x50] sm:$0xff] %v1554_v16 }
  0x34   : > { %465 = vst [vmem:[#allocation2 + $0x68] sm:$0xff] %v1554_v16 }
  0x35   : > { %466 = vst [vmem:[#allocation2 + $0x8] sm:$0xff] %v1554_v16 }
  0x36   : > { %467 = vst [vmem:[#allocation2 + $0x48] sm:$0xff] %v1554_v16 }
  0x37   : > { %468 = vst [vmem:[#allocation2 + $0x40] sm:$0xff] %v1554_v16 }
  0x38   : > { %469 = vst [vmem:[#allocation2 + $0x20] sm:$0xff] %v1554_v16 }
  0x39   : > { %470 = vst [vmem:[#allocation2 + $0x10] sm:$0xff] %v1554_v16 }
  0x3a   : > { %471 = vst [vmem:[#allocation2 + $0x38] sm:$0xff] %v1554_v16 }
  0x3b   : > { %472 = vst [vmem:[#allocation2 + $0x60] sm:$0xff] %v1554_v16 }
  0x3c   : > { %473 = vst [vmem:[#allocation2 + $0x70] sm:$0xff] %v1554_v16 }
  0x3d   : > { %474 = vst [vmem:[#allocation2 + $0x78] sm:$0xff] %v1554_v16 }
  0x3e   : > { %475 = vst [vmem:[#allocation2 + $0x28] sm:$0xff] %v1554_v16 }
  0x3f PF: > { %v1382_v17 = vld [vmem:[%s1653_s15 + $0x38] sm:$0xff]  ;;  %v1381_v18 = vld [vmem:[%s1653_s15 + $0x30] sm:$0xff]  ;;  %v1380_v19 = vld [vmem:[%s1653_s15 + $0x28] sm:$0xff]  ;;  %p1346_p11 = scmp.ne.s32.totalorder %s1544_s20, 1 }
  0x40   : > { %620 = vmatpush.bf16.msra.mxu0 %v1382_v17  ;;  %1383 = vmatpush.bf16.msra.mxu1 %v1382_v17  ;;  %v1379_v20 = vld [vmem:[%s1653_s15 + $0x20] sm:$0xff]  ;;  %v1378_v21 = vld [vmem:[%s1653_s15 + $0x18] sm:$0xff]  ;;  %v1377_v22 = vld [vmem:[%s1653_s15 + $0x10] sm:$0xff] }
  0x41   : > { %1384 = vmatpush.bf16.msra.mxu2 %v1382_v17  ;;  %1385 = vmatpush.bf16.msra.mxu3 %v1382_v17  ;;  %v1376_v23 = vld [vmem:[%s1653_s15 + $0x8] sm:$0xff]  ;;  %v1375_v24 = vld [vmem:[%s1653_s15] sm:$0xff]  ;;  %v1369_v26 = vld [vmem:[%s1655_s16 + $0x10] sm:$0xff] }
  0x42   : > { %v1367_v25 = vld [vmem:[%s1655_s16] sm:$0xff]  ;;  %v1373_v28 = vld [vmem:[%s1655_s16 + $0x30] sm:$0xff]  ;;  %v1368_v29 = vld [vmem:[%s1655_s16 + $0x8] sm:$0xff] }
  0x43   : > { %v1371_v27 = vld [vmem:[%s1655_s16 + $0x20] sm:$0xff]  ;;  %v1370_v30 = vld [vmem:[%s1655_s16 + $0x18] sm:$0xff]  ;;  %v1372_v31 = vld [vmem:[%s1655_s16 + $0x28] sm:$0xff] }
  0x44   : > { %621 = vmatpush.bf16.msra.mxu0 %v1381_v18  ;;  %1386 = vmatpush.bf16.msra.mxu1 %v1381_v18  ;;  %v1374_v32 = vld [vmem:[%s1655_s16 + $0x38] sm:$0xff]  ;;  %v476_v33 = vld [vmem:[#allocation2 + $0x30] sm:$0xff]  ;;  %v484_v39 = vld [vmem:[#allocation2 + $0x40] sm:$0xff] }
  0x45   : > { %1387 = vmatpush.bf16.msra.mxu2 %v1381_v18  ;;  %1388 = vmatpush.bf16.msra.mxu3 %v1381_v18  ;;  %v480_v34 = vld [vmem:[#allocation2 + $0x50] sm:$0xff]  ;;  %v488_v40 = vld [vmem:[#allocation2 + $0x60] sm:$0xff]  ;;  %v481_v42 = vld [vmem:[#allocation2 + $0x68] sm:$0xff] }
  0x46   : > { %v477_v41 = vld [vmem:[#allocation2] sm:$0xff]  ;;  %v489_v52 = vld [vmem:[#allocation2 + $0x70] sm:$0xff]  ;;  %v478_v53 = vld [vmem:[#allocation2 + $0x58] sm:$0xff] }
  0x47   : > { %v485_v51 = vld [vmem:[#allocation2 + $0x20] sm:$0xff]  ;;  %v482_v54 = vld [vmem:[#allocation2 + $0x8] sm:$0xff]  ;;  %v486_v63 = vld [vmem:[#allocation2 + $0x10] sm:$0xff] }
  0x48   : > { %622 = vmatpush.bf16.msra.mxu0 %v1380_v19  ;;  %1389 = vmatpush.bf16.msra.mxu1 %v1380_v19  ;;  %v490_v0 = vld [vmem:[#allocation2 + $0x78] sm:$0xff]  ;;  %v483_v2 = vld [vmem:[#allocation2 + $0x48] sm:$0xff] }
  0x49   : > { %1390 = vmatpush.bf16.msra.mxu2 %v1380_v19  ;;  %1391 = vmatpush.bf16.msra.mxu3 %v1380_v19  ;;  %v479_v1 = vld [vmem:[#allocation2 + $0x18] sm:$0xff]  ;;  %v491_v12 = vld [vmem:[#allocation2 + $0x28] sm:$0xff] }
  0x4a   : > { %v487_v11 = vld [vmem:[#allocation2 + $0x38] sm:$0xff] }
  0x4c   : > { %623 = vmatpush.bf16.msra.mxu0 %v1379_v20  ;;  %1392 = vmatpush.bf16.msra.mxu1 %v1379_v20 }
  0x4d   : > { %1393 = vmatpush.bf16.msra.mxu2 %v1379_v20  ;;  %1394 = vmatpush.bf16.msra.mxu3 %v1379_v20 }
  0x50   : > { %624 = vmatpush.bf16.msra.mxu0 %v1378_v21  ;;  %1395 = vmatpush.bf16.msra.mxu1 %v1378_v21 }
  0x51   : > { %1396 = vmatpush.bf16.msra.mxu2 %v1378_v21  ;;  %1397 = vmatpush.bf16.msra.mxu3 %v1378_v21 }
  0x54   : > { %625 = vmatpush.bf16.msra.mxu0 %v1377_v22  ;;  %1398 = vmatpush.bf16.msra.mxu1 %v1377_v22 }
  0x55   : > { %1399 = vmatpush.bf16.msra.mxu2 %v1377_v22  ;;  %1400 = vmatpush.bf16.msra.mxu3 %v1377_v22 }
  0x58   : > { %626 = vmatpush.bf16.msra.mxu0 %v1376_v23  ;;  %1401 = vmatpush.bf16.msra.mxu1 %v1376_v23 }
  0x59   : > { %1402 = vmatpush.bf16.msra.mxu2 %v1376_v23  ;;  %1403 = vmatpush.bf16.msra.mxu3 %v1376_v23 }
  0x5c   : > { %627 = vmatpush.bf16.msra.mxu0 %v1375_v24  ;;  %1404 = vmatpush.bf16.msra.mxu1 %v1375_v24 }
  0x5d   : > { %1405 = vmatpush.bf16.msra.mxu2 %v1375_v24  ;;  %1406 = vmatpush.bf16.msra.mxu3 %v1375_v24 }
  0x5f   : > { %628 = vmatmul.bf16.vlgmr.msra.gmra.mxu0 %v1367_v25  ;;  %638 = vmatmul.bf16.vlgmr.msra.gmra.mxu1 %v1369_v26 }
  0x60   : > { %648 = vmatmul.bf16.vlgmr.msra.gmra.mxu2 %v1371_v27  ;;  %658 = vmatmul.bf16.vlgmr.msra.gmra.mxu3 %v1373_v28 }
  0x6f   : > { %633 = vmatmul.bf16.gmra.mxu0 %v1368_v29  ;;  %643 = vmatmul.bf16.gmra.mxu1 %v1370_v30 }
  0x70   : > { %653 = vmatmul.bf16.gmra.mxu2 %v1372_v31  ;;  %663 = vmatmul.bf16.gmra.mxu3 %v1374_v32 }
  0xdc   : > { %v629_v35 = vpop.f32.mrf.mxu0  ;;  %v639_v36 = vpop.f32.mrf.mxu1 }
  0xdd   : > { %v669_v37 = vadd.f32 %v629_v35, %v476_v33  ;;  %v673_v38 = vadd.f32 %v639_v36, %v480_v34 }
  0xdf   : > { %685 = vst [vmem:[#allocation2 + $0x30] sm:$0xff] %v669_v37 }
  0xe0   : > { %689 = vst [vmem:[#allocation2 + $0x50] sm:$0xff] %v673_v38 }
  0xe3   : > { %v649_v43 = vpop.f32.mrf.mxu2  ;;  %v659_v44 = vpop.f32.mrf.mxu3 }
  0xe4   : > { %v677_v45 = vadd.f32 %v649_v43, %v484_v39  ;;  %v681_v46 = vadd.f32 %v659_v44, %v488_v40  ;;  %v631_v47 = vpop.f32.mrf.mxu0  ;;  %v641_v48 = vpop.f32.mrf.mxu1 }
  0xe5   : > { %v670_v49 = vadd.f32 %v631_v47, %v477_v41  ;;  %v674_v50 = vadd.f32 %v641_v48, %v481_v42 }
  0xe6   : > { %693 = vst [vmem:[#allocation2 + $0x40] sm:$0xff] %v677_v45 }
  0xe7   : > { %697 = vst [vmem:[#allocation2 + $0x60] sm:$0xff] %v681_v46 }
  0xe8   : > { %686 = vst [vmem:[#allocation2] sm:$0xff] %v670_v49 }
  0xe9   : > { %690 = vst [vmem:[#allocation2 + $0x68] sm:$0xff] %v674_v50 }
  0xeb   : > { %v651_v55 = vpop.f32.mrf.mxu2  ;;  %v661_v56 = vpop.f32.mrf.mxu3 }
  0xec   : > { %v678_v57 = vadd.f32 %v651_v55, %v485_v51  ;;  %v682_v58 = vadd.f32 %v661_v56, %v489_v52  ;;  %v634_v59 = vpop.f32.mrf.mxu0  ;;  %v644_v60 = vpop.f32.mrf.mxu1 }
  0xed   : > { %v671_v61 = vadd.f32 %v634_v59, %v478_v53  ;;  %v675_v62 = vadd.f32 %v644_v60, %v482_v54 }
  0xee   : > { %694 = vst [vmem:[#allocation2 + $0x20] sm:$0xff] %v678_v57 }
  0xef   : > { %698 = vst [vmem:[#allocation2 + $0x70] sm:$0xff] %v682_v58 }
  0xf0   : > { %687 = vst [vmem:[#allocation2 + $0x58] sm:$0xff] %v671_v61 }
  0xf1   : > { %691 = vst [vmem:[#allocation2 + $0x8] sm:$0xff] %v675_v62 }
  0xf3   : > { %v654_v3 = vpop.f32.mrf.mxu2  ;;  %v664_v4 = vpop.f32.mrf.mxu3 }
  0xf4   : > { %v679_v5 = vadd.f32 %v654_v3, %v486_v63  ;;  %v683_v6 = vadd.f32 %v664_v4, %v490_v0  ;;  %v636_v7 = vpop.f32.mrf.mxu0  ;;  %v646_v8 = vpop.f32.mrf.mxu1 }
  0xf5   : > { %v672_v9 = vadd.f32 %v636_v7, %v479_v1  ;;  %v676_v10 = vadd.f32 %v646_v8, %v483_v2 }
  0xf6   : > { %695 = vst [vmem:[#allocation2 + $0x10] sm:$0xff] %v679_v5 }
  0xf7   : > { %699 = vst [vmem:[#allocation2 + $0x78] sm:$0xff] %v683_v6 }
  0xf8   : > { %688 = vst [vmem:[#allocation2 + $0x18] sm:$0xff] %v672_v9 }
  0xf9   : > { %692 = vst [vmem:[#allocation2 + $0x48] sm:$0xff] %v676_v10 }
  0xfb   : > { %v656_v13 = vpop.f32.mrf.mxu2  ;;  %v666_v14 = vpop.f32.mrf.mxu3  ;;  %704 = sbr.rel (%p1346_p11) target bundleno = 349 (0x15d), region = 89 }
  0xfc   : > { %v680_v15 = vadd.f32 %v656_v13, %v487_v11  ;;  %v684_v16 = vadd.f32 %v666_v14, %v491_v12 }
  0xfe   : > { %696 = vst [vmem:[#allocation2 + $0x38] sm:$0xff] %v680_v15 }
  0xff   : > { %700 = vst [vmem:[#allocation2 + $0x28] sm:$0xff] %v684_v16 }
 0x100   : > { %v705_v17 = vld [vmem:[#allocation2 + $0x30] sm:$0xff]  ;;  %v1678_v18 = vld [vmem:[%s2233_s2] ss:$0 sm:$0xff]  ;;  %v707_v23 = vld [vmem:[#allocation2 + $0x58] sm:$0xff] }
 0x101   : > { %v1683_v19 = vld [vmem:[%s2234_s3] ss:$0 sm:$0xff]  ;;  %v725_v21 = vmul.f32 %v1678_v18, %v705_v17  ;;  %v708_v24 = vld [vmem:[#allocation2 + $0x18] sm:$0xff]  ;;  %v727_v25 = vmul.f32 %v1678_v18, %v707_v23  ;;  %v709_v27 = vld [vmem:[#allocation2 + $0x50] sm:$0xff] }
 0x102   : > { %v706_v20 = vld [vmem:[#allocation2] sm:$0xff]  ;;  %v728_v26 = vmul.f32 %v1678_v18, %v708_v24  ;;  %v710_v28 = vld [vmem:[#allocation2 + $0x68] sm:$0xff]  ;;  %v729_v32 = vmul.f32 %v1678_v18, %v709_v27  ;;  %v715_v53 = vld [vmem:[#allocation2 + $0x10] sm:$0xff] }
 0x103   : > { %v726_v22 = vmul.f32 %v1678_v18, %v706_v20  ;;  %v711_v29 = vld [vmem:[#allocation2 + $0x8] sm:$0xff]  ;;  %v1690_v30 = vadd.f32 %v1683_v19, %v725_v21  ;;  %v730_v33 = vmul.f32 %v1678_v18, %v710_v28  ;;  %v1698_v35 = vadd.f32 %v1683_v19, %v727_v25  ;;  %v713_v39 = vld [vmem:[#allocation2 + $0x40] sm:$0xff] }
 0x104   : > { %v712_v34 = vld [vmem:[#allocation2 + $0x48] sm:$0xff]  ;;  %v1701_v36 = vadd.f32 %v1683_v19, %v728_v26  ;;  %v731_v37 = vmul.f32 %v1678_v18, %v711_v29  ;;  %v1708_v42 = vadd.f32 %v1683_v19, %v729_v32  ;;  %v714_v47 = vld [vmem:[#allocation2 + $0x20] sm:$0xff]  ;;  %v733_v50 = vmul.f32 %v1678_v18, %v713_v39 }
 0x105   : > { %v1693_v31 = vadd.f32 %v1683_v19, %v726_v22  ;;  %v732_v38 = vmul.f32 %v1678_v18, %v712_v34  ;;  %v1347_v40 = vmul.f32 -1.442695, %v1690_v30  ;;  %v1711_v43 = vadd.f32 %v1683_v19, %v730_v33  ;;  %v716_v58 = vld [vmem:[#allocation2 + $0x38] sm:$0xff]  ;;  %v717_v63 = vld [vmem:[#allocation2 + $0x60] sm:$0xff] }
 0x106   : > { %v1349_v44 = vmul.f32 -1.442695, %v1698_v35  ;;  %v1350_v45 = vmul.f32 -1.442695, %v1701_v36  ;;  %v1716_v46 = vadd.f32 %v1683_v19, %v731_v37  ;;  %v1351_v48 = vmul.f32 -1.442695, %v1708_v42 }
 0x107   : > { %v1348_v41 = vmul.f32 -1.442695, %v1693_v31  ;;  %1450 = vpow2.f32 %v1347_v40  ;;  %v1720_v49 = vadd.f32 %v1683_v19, %v732_v38  ;;  %v1352_v51 = vmul.f32 -1.442695, %v1711_v43 }
 0x108   : > { %v734_v52 = vmul.f32 %v1678_v18, %v714_v47  ;;  %v1353_v54 = vmul.f32 -1.442695, %v1716_v46  ;;  %v1728_v56 = vadd.f32 %v1683_v19, %v733_v50  ;;  %v735_v57 = vmul.f32 %v1678_v18, %v715_v53 }
 0x109   : > { %1452 = vpow2.f32 %v1348_v41  ;;  %v1354_v55 = vmul.f32 -1.442695, %v1720_v49  ;;  %v736_v3 = vmul.f32 %v1678_v18, %v716_v58  ;;  %v1751_v10 = vmul.f32 %v1678_v18, %v717_v63 }
 0x10a   : > { %1454 = vpow2.f32 %v1349_v44  ;;  %v1732_v60 = vadd.f32 %v1683_v19, %v734_v52  ;;  %v1355_v2 = vmul.f32 -1.442695, %v1728_v56  ;;  %v1743_v6 = vadd.f32 %v1683_v19, %v735_v57  ;;  %v1085_v52 = vld [vmem:[%s2235_s4 + $0x20] sm:$0xff] }
 0x10b   : > { %1456 = vpow2.f32 %v1350_v45  ;;  %v1763_v17 = vadd.f32 %v1683_v19, %v736_v3 }
 0x10c   : > { %1458 = vpow2.f32 %v1351_v48  ;;  %v1748_v9 = vmul.f32 -1.442695, %v1732_v60 }
 0x10d   : > { %1460 = vpow2.f32 %v1352_v51  ;;  %v1451_v59 = vpop.eup %1450 }
 0x10e   : > { %v1734_v62 = vadd.f32 1.0, %v1451_v59  ;;  %1462 = vpow2.f32 %v1353_v54 }
 0x10f   : > { %v1453_v61 = vpop.eup %1452  ;;  %1464 = vpow2.f32 %v1354_v55 }
 0x110   : > { %v1455_v0 = vpop.eup %1454  ;;  %v1736_v1 = vadd.f32 1.0, %v1453_v61  ;;  %1466 = vrcp.f32 %v1734_v62  ;;  %v836_v5 = vand.u32 2147483648, %v1734_v62  ;;  %v834_v8 = vand.u32 2147483647, %v1734_v62 }
 0x111   : > { %v1457_v4 = vpop.eup %1456  ;;  %v1755_v14 = vadd.f32 1.0, %v1455_v0  ;;  %vm830_vm0 = vweird.f32 %v1734_v62 }
 0x112   : > { %v1459_v7 = vpop.eup %1458  ;;  %1468 = vrcp.f32 %v1736_v1  ;;  %v849_v12 = vand.u32 2147483647, %v1736_v1  ;;  %v851_v13 = vand.u32 2147483648, %v1736_v1  ;;  %v1757_v15 = vadd.f32 1.0, %v1457_v4 }
 0x113   : > { %v1461_v11 = vpop.eup %1460  ;;  %v1760_v16 = vadd.f32 1.0, %v1459_v7  ;;  %1470 = vpow2.f32 %v1355_v2  ;;  %v1765_v21 = vor.u32 1.1754944e-38, %v836_v5  ;;  %vm845_vm1 = vweird.f32 %v1736_v1  ;;  %v718_v5 = vld [vmem:[#allocation2 + $0x70] sm:$0xff] }
 0x114   : > { %v1463_v20 = vpop.eup %1462  ;;  %1472 = vrcp.f32 %v1755_v14  ;;  %v866_v22 = vand.u32 2147483648, %v1755_v14  ;;  %vm1770_vm2 = vcmp.eq.f32.partialorder %v834_v8, 8.507059e+37  ;;  %v864_v25 = vand.u32 2147483647, %v1755_v14 }
 0x115   : > { %v1465_v23 = vpop.eup %1464  ;;  %1474 = vrcp.f32 %v1757_v15  ;;  %v881_v26 = vand.u32 2147483648, %v1757_v15  ;;  %v1777_v27 = vadd.f32 1.0, %v1461_v11  ;;  %vm1779_vm3 = vcmp.eq.f32.partialorder %v849_v12, 8.507059e+37 }
 0x116   : > { %v1467_v28 = vpop.eup %1466  ;;  %v852_v32 = vor.u32 1.1754944e-38, %v851_v13  ;;  %v879_v33 = vand.u32 2147483647, %v1757_v15  ;;  %1476 = vrcp.f32 %v1760_v16  ;;  %vm860_vm4 = vweird.f32 %v1755_v14 }
 0x117   : > { %v826_v37 = vmul.f32 %v1467_v28, %v1734_v62  ;;  %v1787_v38 = vor.u32 1.1754944e-38, %v866_v22  ;;  %vm875_vm5 = vweird.f32 %v1757_v15  ;;  %vm890_vm6 = vweird.f32 %v1760_v16 }
 0x118   : > { %v1469_v34 = vpop.eup %1468  ;;  %v894_v40 = vand.u32 2147483647, %v1760_v16  ;;  %v896_v41 = vand.u32 2147483648, %v1760_v16  ;;  %vm831_vm7 = vweird.f32 %v1467_v28  ;;  %vm1796_vm8 = vcmp.eq.f32.partialorder %v864_v25, 8.507059e+37 }
 0x119   : > { %v841_v39 = vmul.f32 %v1469_v34, %v1736_v1  ;;  %v1794_v44 = vpop.eup %1470  ;;  %v827_v45 = vsub.f32 1.0, %v826_v37  ;;  %v1800_v48 = vor.u32 1.1754944e-38, %v881_v26  ;;  %1478 = vrcp.f32 %v1777_v27  ;;  %vm1817_vm13 = vmor %vm830_vm0, %vm831_vm7 }
 0x11a   : > { %v1473_v50 = vpop.eup %1472  ;;  %vm846_vm9 = vweird.f32 %v1469_v34  ;;  %vm1803_vm10 = vcmp.eq.f32.partialorder %v879_v33, 8.507059e+37  ;;  %v909_v53 = vand.u32 2147483647, %v1777_v27  ;;  %vm1810_vm12 = vcmp.eq.f32.partialorder %v894_v40, 8.507059e+37 }
 0x11b   : > { %v842_v51 = vsub.f32 1.0, %v841_v39  ;;  %v1475_v54 = vpop.eup %1474  ;;  %v828_v55 = vmul.f32 %v1467_v28, %v827_v45  ;;  %v856_v57 = vmul.f32 %v1473_v50, %v1755_v14  ;;  %v897_v59 = vor.u32 1.1754944e-38, %v896_v41  ;;  %vm1826_vm15 = vmor %vm845_vm1, %vm846_vm9  ;;  %v1081_v39 = vld [vmem:[%s2235_s4] sm:$0xff]  ;;  %v1082_v41 = vld [vmem:[%s2235_s4 + $0x8] sm:$0xff] }
 0x11c   : > { %v1477_v61 = vpop.eup %1476  ;;  %vm861_vm14 = vweird.f32 %v1473_v50  ;;  %v871_v2 = vmul.f32 %v1475_v54, %v1757_v15  ;;  %v911_v3 = vand.u32 2147483648, %v1777_v27  ;;  %vm876_vm11 = vweird.f32 %v1475_v54 }
 0x11d   : > { %v843_v0 = vmul.f32 %v1469_v34, %v842_v51  ;;  %v829_v4 = vadd.f32 %v1467_v28, %v828_v55  ;;  %v857_v7 = vsub.f32 1.0, %v856_v57  ;;  %v886_v62 = vmul.f32 %v1477_v61, %v1760_v16  ;;  %vm1852_vm1 = vmor %vm860_vm4, %vm861_vm14  ;;  %v1083_v16 = vld [vmem:[%s2235_s4 + $0x10] sm:$0xff] }
 0x11e   : > { %v872_v11 = vsub.f32 1.0, %v871_v2  ;;  %vm891_vm0 = vweird.f32 %v1477_v61  ;;  %vm1831_vm7 = vcmp.eq.f32.partialorder %v909_v53, 8.507059e+37  ;;  %v1835_v13 = vadd.f32 1.0, %v1463_v20 }
 0x11f   : > { %v844_v8 = vadd.f32 %v1469_v34, %v843_v0  ;;  %v1479_v22 = vpop.eup %1478  ;;  %v833_v1 = vsel %vm1817_vm13, %v1467_v28, %v829_v4  ;;  %v858_v25 = vmul.f32 %v1473_v50, %v857_v7  ;;  %v887_v26 = vsub.f32 1.0, %v886_v62 }
 0x120   : > { %v1839_v33 = vadd.f32 1.0, %v1465_v23  ;;  %v838_v37 = vsel %vm1770_vm2, %v1765_v21, %v833_v1  ;;  %v873_v23 = vmul.f32 %v1475_v54, %v872_v11  ;;  %v901_v40 = vmul.f32 %v1479_v22, %v1777_v27  ;;  %vm1866_vm2 = vmor %vm875_vm5, %vm876_vm11  ;;  %v1086_v1 = vld [vmem:[%s2235_s4 + $0x28] sm:$0xff] }
 0x121   : > { %v848_v20 = vsel %vm1826_vm15, %v1469_v34, %v844_v8  ;;  %v1065_v24 = vmul.f32 %v838_v37, %v1690_v30  ;;  %v859_v34 = vadd.f32 %v1473_v50, %v858_v25  ;;  %v888_v45 = vmul.f32 %v1477_v61, %v887_v26 }
 0x122   : > { %v853_v21 = vsel %vm1779_vm3, %v852_v32, %v848_v20  ;;  %v874_v53 = vadd.f32 %v1475_v54, %v873_v23  ;;  %vm1874_vm3 = vmor %vm890_vm6, %vm891_vm0  ;;  %v902_v29 = vsub.f32 1.0, %v901_v40  ;;  %vm906_vm4 = vweird.f32 %v1479_v22  ;;  %v719_v23 = vld [vmem:[#allocation2 + $0x78] sm:$0xff]  ;;  %v720_v40 = vld [vmem:[#allocation2 + $0x28] sm:$0xff] }
 0x123   : > { %v1066_v51 = vmul.f32 %v853_v21, %v1693_v31  ;;  %v1097_v32 = vadd.f32 %v1081_v39, %v1065_v24  ;;  %v863_v15 = vsel %vm1852_vm1, %v1473_v50, %v859_v34  ;;  %v889_v55 = vadd.f32 %v1477_v61, %v888_v45 }
 0x124   : > { %1480 = vrcp.f32 %v1835_v13  ;;  %v868_v31 = vsel %vm1796_vm8, %v1787_v38, %v863_v15  ;;  %v878_v63 = vsel %vm1866_vm2, %v1475_v54, %v874_v53  ;;  %v903_v0 = vmul.f32 %v1479_v22, %v902_v29  ;;  %v1084_v38 = vld [vmem:[%s2235_s4 + $0x18] sm:$0xff] }
 0x125   : > { %v1098_v57 = vadd.f32 %v1082_v41, %v1066_v51  ;;  %1113 = vst [vmem:[%s2236_s5] sm:$0xff] %v1097_v32  ;;  %v1067_v50 = vmul.f32 %v868_v31, %v1698_v35  ;;  %v883_v2 = vsel %vm1803_vm10, %v1800_v48, %v878_v63  ;;  %v893_v47 = vsel %vm1874_vm3, %v1477_v61, %v889_v55 }
 0x126   : > { %vm2259_vm5 = vweird.f32 %v1777_v27  ;;  %v912_v4 = vor.u32 1.1754944e-38, %v911_v3  ;;  %v1068_v35 = vmul.f32 %v883_v2, %v1701_v36  ;;  %v898_v48 = vsel %vm1810_vm12, %v897_v59, %v893_v47 }
 0x127   : > { %vm1904_vm6 = vmor %vm2259_vm5, %vm906_vm4  ;;  %1114 = vst [vmem:[%s2236_s5 + $0x8] sm:$0xff] %v1098_v57  ;;  %v904_v61 = vadd.f32 %v1479_v22, %v903_v0  ;;  %v1918_v27 = vadd.f32 1.0, %v1794_v44  ;;  %v1099_v7 = vadd.f32 %v1083_v16, %v1067_v50  ;;  %v1069_v3 = vmul.f32 %v898_v48, %v1708_v42 }
 0x128   : > { %v924_v62 = vand.u32 2147483647, %v1835_v13  ;;  %1482 = vrcp.f32 %v1839_v33  ;;  %v1100_v36 = vadd.f32 %v1084_v38, %v1068_v35  ;;  %v926_v59 = vand.u32 2147483648, %v1835_v13  ;;  %v1087_v38 = vld [vmem:[%s2235_s4 + $0x30] sm:$0xff] }
 0x129   : > { %v908_v58 = vsel %vm1904_vm6, %v1479_v22, %v904_v61  ;;  %v1357_v8 = vmul.f32 -1.442695, %v1743_v6  ;;  %1115 = vst [vmem:[%s2236_s5 + $0x10] sm:$0xff] %v1099_v7  ;;  %v1101_v44 = vadd.f32 %v1085_v52, %v1069_v3  ;;  %v1937_v22 = vadd.f32 %v1683_v19, %v1751_v10 }
 0x12a   : > { %v1481_v11 = vpop.eup %1480  ;;  %v913_v42 = vsel %vm1831_vm7, %v912_v4, %v908_v58  ;;  %v738_v25 = vmul.f32 %v1678_v18, %v718_v5  ;;  %1116 = vst [vmem:[%s2236_s5 + $0x18] sm:$0xff] %v1100_v36  ;;  %v939_v12 = vand.u32 2147483647, %v1839_v33  ;;  %v1358_v39 = vmul.f32 -1.442695, %v1763_v17  ;;  %v1088_v58 = vld [vmem:[%s2235_s4 + $0x38] sm:$0xff] }
 0x12b   : > { %v1070_v26 = vmul.f32 %v913_v42, %v1711_v43  ;;  %v916_v37 = vmul.f32 %v1481_v11, %v1835_v13  ;;  %1117 = vst [vmem:[%s2236_s5 + $0x20] sm:$0xff] %v1101_v44  ;;  %vm920_vm8 = vweird.f32 %v1835_v13  ;;  %vm1951_vm9 = vcmp.eq.f32.partialorder %v924_v62, 8.507059e+37 }
 0x12c   : > { %vm935_vm10 = vweird.f32 %v1839_v33  ;;  %1484 = vrcp.f32 %v1918_v27  ;;  %vm921_vm11 = vweird.f32 %v1481_v11  ;;  %v927_v28 = vor.u32 1.1754944e-38, %v926_v59 }
 0x12d   : > { %v1102_v43 = vadd.f32 %v1086_v1, %v1070_v26  ;;  %v917_v20 = vsub.f32 1.0, %v916_v37  ;;  %v941_v21 = vand.u32 2147483648, %v1839_v33  ;;  %1486 = vpow2.f32 %v1748_v9  ;;  %vm1974_vm14 = vmor %vm920_vm8, %vm921_vm11 }
 0x12e   : > { %v1483_v24 = vpop.eup %1482  ;;  %v1359_v41 = vmul.f32 -1.442695, %v1937_v22  ;;  %v1961_v34 = vadd.f32 %v1683_v19, %v738_v25  ;;  %vm1967_vm12 = vcmp.eq.f32.partialorder %v939_v12, 8.507059e+37  ;;  %vm950_vm13 = vweird.f32 %v1918_v27 }
 0x12f   : > { %1118 = vst [vmem:[%s2236_s5 + $0x28] sm:$0xff] %v1102_v43  ;;  %v918_v14 = vmul.f32 %v1481_v11, %v917_v20  ;;  %v931_v45 = vmul.f32 %v1483_v24, %v1839_v33  ;;  %v954_v53 = vand.u32 2147483647, %v1918_v27  ;;  %1488 = vpow2.f32 %v1357_v8  ;;  %v1089_v43 = vld [vmem:[%s2235_s4 + $0x40] sm:$0xff] }
 0x130   : > { %v739_v30 = vmul.f32 %v1678_v18, %v719_v23  ;;  %v740_v29 = vmul.f32 %v1678_v18, %v720_v40  ;;  %vm936_vm15 = vweird.f32 %v1483_v24  ;;  %1490 = vpow2.f32 %v1358_v39 }
 0x131   : > { %v919_v32 = vadd.f32 %v1481_v11, %v918_v14  ;;  %v932_v15 = vsub.f32 1.0, %v931_v45  ;;  %1492 = vpow2.f32 %v1359_v41  ;;  %v1360_v57 = vmul.f32 -1.442695, %v1961_v34  ;;  %vm1998_vm0 = vmor %vm935_vm10, %vm936_vm15 }
 0x132   : > { %v1485_v55 = vpop.eup %1484  ;;  %v1983_v13 = vadd.f32 %v1683_v19, %v739_v30  ;;  %v1986_v31 = vadd.f32 %v1683_v19, %v740_v29  ;;  %v942_v0 = vor.u32 1.1754944e-38, %v941_v21  ;;  %v956_v47 = vand.u32 2147483648, %v1918_v27 }
 0x133   : > { %v923_v16 = vsel %vm1974_vm14, %v1481_v11, %v919_v32  ;;  %v933_v63 = vmul.f32 %v1483_v24, %v932_v15  ;;  %v946_v18 = vmul.f32 %v1485_v55, %v1918_v27  ;;  %v1487_v50 = vpop.eup %1486  ;;  %vm951_vm7 = vweird.f32 %v1485_v55 }
 0x134   : > { %v928_v2 = vsel %vm1951_vm9, %v927_v28, %v923_v16  ;;  %v1361_v54 = vmul.f32 -1.442695, %v1983_v13  ;;  %v2005_v52 = vadd.f32 1.0, %v1487_v50  ;;  %1494 = vpow2.f32 %v1360_v57  ;;  %vm2019_vm1 = vmor %vm950_vm13, %vm951_vm7 }
 0x135   : > { %v1071_v4 = vmul.f32 %v928_v2, %v1716_v46  ;;  %v934_v35 = vadd.f32 %v1483_v24, %v933_v63  ;;  %v947_v48 = vsub.f32 1.0, %v946_v18  ;;  %v1489_v61 = vpop.eup %1488  ;;  %v1362_v5 = vmul.f32 -1.442695, %v1986_v31 }
 0x136   : > { %v1491_v33 = vpop.eup %1490  ;;  %1496 = vrcp.f32 %v2005_v52  ;;  %vm2023_vm2 = vcmp.eq.f32.partialorder %v954_v53, 8.507059e+37  ;;  %v957_v11 = vor.u32 1.1754944e-38, %v956_v47  ;;  %v2031_v1 = vadd.f32 1.0, %v1489_v61 }
 0x137   : > { %v1103_v7 = vadd.f32 %v1087_v38, %v1071_v4  ;;  %v938_v3 = vsel %vm1998_vm0, %v1483_v24, %v934_v35  ;;  %v948_v62 = vmul.f32 %v1485_v55, %v947_v48  ;;  %v1493_v36 = vpop.eup %1492  ;;  %1498 = vpow2.f32 %v1361_v54 }
 0x138   : > { %v943_v46 = vsel %vm1967_vm12, %v942_v0, %v938_v3  ;;  %v2033_v27 = vadd.f32 1.0, %v1491_v33  ;;  %v969_v25 = vand.u32 2147483647, %v2005_v52  ;;  %v971_v26 = vand.u32 2147483648, %v2005_v52 }
 0x139   : > { %1119 = vst [vmem:[%s2236_s5 + $0x30] sm:$0xff] %v1103_v7  ;;  %v1072_v44 = vmul.f32 %v943_v46, %v1720_v49  ;;  %v949_v42 = vadd.f32 %v1485_v55, %v948_v62  ;;  %1500 = vpow2.f32 %v1362_v5  ;;  %v2040_v39 = vadd.f32 1.0, %v1493_v36  ;;  %v1090_v62 = vld [vmem:[%s2235_s4 + $0x48] sm:$0xff] }
 0x13a   : > { %1502 = vrcp.f32 %v2031_v1  ;;  %v1495_v10 = vpop.eup %1494  ;;  %v984_v20 = vand.u32 2147483647, %v2031_v1  ;;  %vm965_vm3 = vweird.f32 %v2005_v52  ;;  %v986_v40 = vand.u32 2147483648, %v2031_v1 }
 0x13b   : > { %v1104_v37 = vadd.f32 %v1088_v58, %v1072_v44  ;;  %v953_v12 = vsel %vm2019_vm1, %v1485_v55, %v949_v42  ;;  %1504 = vrcp.f32 %v2033_v27  ;;  %vm2056_vm4 = vcmp.eq.f32.partialorder %v969_v25, 8.507059e+37 }
 0x13c   : > { %v958_v49 = vsel %vm2023_vm2, %v957_v11, %v953_v12  ;;  %v1497_v28 = vpop.eup %1496  ;;  %v972_v14 = vor.u32 1.1754944e-38, %v971_v26  ;;  %v999_v45 = vand.u32 2147483647, %v2033_v27  ;;  %vm980_vm5 = vweird.f32 %v2031_v1 }
 0x13d   : > { %1120 = vst [vmem:[%s2236_s5 + $0x38] sm:$0xff] %v1104_v37  ;;  %v1073_v23 = vmul.f32 %v958_v49, %v1728_v56  ;;  %v1499_v24 = vpop.eup %1498  ;;  %v961_v21 = vmul.f32 %v1497_v28, %v2005_v52  ;;  %v1001_v9 = vand.u32 2147483648, %v2033_v27  ;;  %1506 = vrcp.f32 %v2040_v39  ;;  %v1091_v49 = vld [vmem:[%s2235_s4 + $0x50] sm:$0xff] }
 0x13e   : > { %vm966_vm6 = vweird.f32 %v1497_v28  ;;  %vm2064_vm8 = vcmp.eq.f32.partialorder %v984_v20, 8.507059e+37  ;;  %vm995_vm9 = vweird.f32 %v2033_v27  ;;  %v987_v32 = vor.u32 1.1754944e-38, %v986_v40 }
 0x13f   : > { %v1105_v51 = vadd.f32 %v1089_v43, %v1073_v23  ;;  %v1501_v56 = vpop.eup %1500  ;;  %v962_v53 = vsub.f32 1.0, %v961_v21  ;;  %v1014_v15 = vand.u32 2147483647, %v2040_v39  ;;  %v2073_v55 = vadd.f32 1.0, %v1495_v10  ;;  %vm2085_vm11 = vmor %vm965_vm3, %vm966_vm6 }
 0x140   : > { %v1503_v29 = vpop.eup %1502  ;;  %v2075_v57 = vadd.f32 1.0, %v1499_v24  ;;  %vm2078_vm10 = vcmp.eq.f32.partialorder %v999_v45, 8.507059e+37  ;;  %v1016_v50 = vand.u32 2147483648, %v2040_v39  ;;  %v1002_v19 = vor.u32 1.1754944e-38, %v1001_v9 }
 0x141   : > { %1121 = vst [vmem:[%s2236_s5 + $0x40] sm:$0xff] %v1105_v51  ;;  %v1505_v16 = vpop.eup %1504  ;;  %v963_v63 = vmul.f32 %v1497_v28, %v962_v53  ;;  %v976_v0 = vmul.f32 %v1503_v29, %v2031_v1  ;;  %vm1010_vm12 = vweird.f32 %v2040_v39  ;;  %1508 = vrcp.f32 %v2073_v55 }
 0x142   : > { %v991_v38 = vmul.f32 %v1505_v16, %v2033_v27  ;;  %vm981_vm13 = vweird.f32 %v1503_v29  ;;  %v2092_v4 = vadd.f32 1.0, %v1501_v56  ;;  %vm996_vm14 = vweird.f32 %v1505_v16 }
 0x143   : > { %v964_v47 = vadd.f32 %v1497_v28, %v963_v63  ;;  %v977_v54 = vsub.f32 1.0, %v976_v0  ;;  %v1507_v35 = vpop.eup %1506  ;;  %vm2094_vm15 = vcmp.eq.f32.partialorder %v1014_v15, 8.507059e+37  ;;  %1510 = vrcp.f32 %v2075_v57  ;;  %vm2109_vm0 = vmor %vm980_vm5, %vm981_vm13 }
 0x144   : > { %v992_v48 = vsub.f32 1.0, %v991_v38  ;;  %v1006_v33 = vmul.f32 %v1507_v35, %v2040_v39  ;;  %v1017_v7 = vor.u32 1.1754944e-38, %v1016_v50  ;;  %vm1025_vm7 = vweird.f32 %v2073_v55  ;;  %vm2119_vm1 = vmor %vm995_vm9, %vm996_vm14  ;;  %v1092_v39 = vld [vmem:[%s2235_s4 + $0x58] sm:$0xff] }
 0x145   : > { %v968_v61 = vsel %vm2085_vm11, %v1497_v28, %v964_v47  ;;  %v978_v5 = vmul.f32 %v1503_v29, %v977_v54  ;;  %v1029_v58 = vand.u32 2147483647, %v2073_v55  ;;  %vm1011_vm2 = vweird.f32 %v1507_v35 }
 0x146   : > { %v973_v3 = vsel %vm2056_vm4, %v972_v14, %v968_v61  ;;  %v993_v46 = vmul.f32 %v1505_v16, %v992_v48  ;;  %v1007_v44 = vsub.f32 1.0, %v1006_v33  ;;  %v1031_v25 = vand.u32 2147483648, %v2073_v55  ;;  %vm2138_vm4 = vmor %vm1010_vm12, %vm1011_vm2 }
 0x147   : > { %v1074_v59 = vmul.f32 %v973_v3, %v1732_v60  ;;  %v979_v8 = vadd.f32 %v1503_v29, %v978_v5  ;;  %v1509_v42 = vpop.eup %1508  ;;  %vm1040_vm3 = vweird.f32 %v2075_v57  ;;  %1512 = vrcp.f32 %v2092_v4  ;;  %v1095_v3 = vld [vmem:[%s2235_s4 + $0x70] sm:$0xff] }
 0x148   : > { %v994_v1 = vadd.f32 %v1505_v16, %v993_v46  ;;  %v1008_v37 = vmul.f32 %v1507_v35, %v1007_v44  ;;  %v1021_v27 = vmul.f32 %v1509_v42, %v2073_v55  ;;  %vm1026_vm5 = vweird.f32 %v1509_v42 }
 0x149   : > { %v1106_v26 = vadd.f32 %v1090_v62, %v1074_v59  ;;  %v983_v60 = vsel %vm2109_vm0, %v1503_v29, %v979_v8  ;;  %v1511_v12 = vpop.eup %1510  ;;  %vm2142_vm6 = vcmp.eq.f32.partialorder %v1029_v58, 8.507059e+37  ;;  %v1032_v14 = vor.u32 1.1754944e-38, %v1031_v25 }
 0x14a   : > { %v988_v10 = vsel %vm2064_vm8, %v987_v32, %v983_v60  ;;  %v998_v43 = vsel %vm2119_vm1, %v1505_v16, %v994_v1  ;;  %v1009_v24 = vadd.f32 %v1507_v35, %v1008_v37  ;;  %v1022_v21 = vsub.f32 1.0, %v1021_v27  ;;  %vm2169_vm8 = vmor %vm1025_vm7, %vm1026_vm5 }
 0x14b   : > { %1122 = vst [vmem:[%s2236_s5 + $0x48] sm:$0xff] %v1106_v26  ;;  %v1075_v23 = vmul.f32 %v988_v10, %v1743_v6  ;;  %v1003_v40 = vsel %vm2078_vm10, %v1002_v19, %v998_v43  ;;  %v1036_v45 = vmul.f32 %v1511_v12, %v2075_v57  ;;  %v1046_v51 = vand.u32 2147483648, %v2075_v57 }
 0x14c   : > { %v1076_v41 = vmul.f32 %v1003_v40, %v1763_v17  ;;  %v1013_v6 = vsel %vm2138_vm4, %v1507_v35, %v1009_v24  ;;  %v1023_v56 = vmul.f32 %v1509_v42, %v1022_v21  ;;  %v1044_v53 = vand.u32 2147483647, %v2075_v57  ;;  %v1093_v17 = vld [vmem:[%s2235_s4 + $0x60] sm:$0xff]  ;;  %v1094_v35 = vld [vmem:[%s2235_s4 + $0x68] sm:$0xff] }
 0x14d   : > { %v1107_v9 = vadd.f32 %v1091_v49, %v1075_v23  ;;  %v1513_v30 = vpop.eup %1512  ;;  %v1018_v32 = vsel %vm2094_vm15, %v1017_v7, %v1013_v6  ;;  %v1037_v16 = vsub.f32 1.0, %v1036_v45  ;;  %vm1041_vm9 = vweird.f32 %v1511_v12 }
 0x14e   : > { %v1108_v29 = vadd.f32 %v1092_v39, %v1076_v41  ;;  %v1077_v63 = vmul.f32 %v1018_v32, %v1937_v22  ;;  %v1024_v0 = vadd.f32 %v1509_v42, %v1023_v56  ;;  %v1051_v18 = vmul.f32 %v1513_v30, %v2092_v4  ;;  %vm1042_vm11 = vmor %vm1040_vm3, %vm1041_vm9 }
 0x14f   : > { %1123 = vst [vmem:[%s2236_s5 + $0x50] sm:$0xff] %v1107_v9  ;;  %vm1055_vm10 = vweird.f32 %v2092_v4  ;;  %v1038_v55 = vmul.f32 %v1511_v12, %v1037_v16  ;;  %v1047_v50 = vor.u32 1.1754944e-38, %v1046_v51  ;;  %v1059_v2 = vand.u32 2147483647, %v2092_v4 }
 0x150   : > { %1124 = vst [vmem:[%s2236_s5 + $0x58] sm:$0xff] %v1108_v29  ;;  %v1061_v38 = vand.u32 2147483648, %v2092_v4  ;;  %v1109_v19 = vadd.f32 %v1093_v17, %v1077_v63  ;;  %v1028_v47 = vsel %vm2169_vm8, %v1509_v42, %v1024_v0  ;;  %v1052_v22 = vsub.f32 1.0, %v1051_v18  ;;  %v1096_v4 = vld [vmem:[%s2235_s4 + $0x78] sm:$0xff] }
 0x151   : > { %vm1056_vm12 = vweird.f32 %v1513_v30  ;;  %v1033_v54 = vsel %vm2142_vm6, %v1032_v14, %v1028_v47  ;;  %v1039_v48 = vadd.f32 %v1511_v12, %v1038_v55  ;;  %vm1045_vm13 = vcmp.eq.f32.partialorder %v1044_v53, 8.507059e+37 }
 0x152   : > { %1125 = vst [vmem:[%s2236_s5 + $0x60] sm:$0xff] %v1109_v19  ;;  %v1078_v52 = vmul.f32 %v1033_v54, %v1961_v34  ;;  %v1053_v61 = vmul.f32 %v1513_v30, %v1052_v22  ;;  %vm1057_vm14 = vmor %vm1055_vm10, %vm1056_vm12  ;;  %v1062_v5 = vor.u32 1.1754944e-38, %v1061_v38  ;;  %vm1060_vm15 = vcmp.eq.f32.partialorder %v1059_v2, 8.507059e+37 }
 0x153   : > { %v1043_v57 = vsel %vm1042_vm11, %v1511_v12, %v1039_v48 }
 0x154   : > { %v1110_v33 = vadd.f32 %v1094_v35, %v1078_v52  ;;  %v1048_v7 = vsel %vm1045_vm13, %v1047_v50, %v1043_v57  ;;  %v1054_v62 = vadd.f32 %v1513_v30, %v1053_v61 }
 0x155   : > { %v1079_v36 = vmul.f32 %v1048_v7, %v1983_v13 }
 0x156   : > { %1126 = vst [vmem:[%s2236_s5 + $0x68] sm:$0xff] %v1110_v33  ;;  %v1058_v34 = vsel %vm1057_vm14, %v1513_v30, %v1054_v62 }
 0x157   : > { %v1111_v46 = vadd.f32 %v1095_v3, %v1079_v36  ;;  %v1063_v58 = vsel %vm1060_vm15, %v1062_v5, %v1058_v34 }
 0x158   : > { %v1080_v59 = vmul.f32 %v1063_v58, %v1986_v31 }
 0x159   : > { %1127 = vst [vmem:[%s2236_s5 + $0x70] sm:$0xff] %v1111_v46 }
 0x15a   : > { %v1112_v8 = vadd.f32 %v1096_v4, %v1080_v59 }
 0x15c   : > { %1128 = vst [vmem:[%s2236_s5 + $0x78] sm:$0xff] %v1112_v8 }
 0x15d PF: > { %s15_s22 = sadd.s32 1, %s1552_s22   ;;  %s2294_s18 = smov %s1540_s19 }
 0x15e   : > { %p12_p12 = scmp.ge.s32.totalorder %s15_s22, 4   ;;  %s2295_s19 = smov %s1620_s26 }
 0x15f   : > { %s2296_s20 = smov %s1548_s21  ;;  %s2297_s21 = smov %s2299_s23 }
 0x160   :  { %14 = sbr.rel (!%p12_p12) target bundleno = 3 (0x3), region = 136 }

// kernel: _lambda_.13
= control target key start
LH: loop header
LB: loop body
LE: loop exit
PB: predicated region body
PF: predicated region fallthrough
CT: control target
= control target key end

     0   :  { %s901_s15 = smov 0   ;;  %s903_s16 = smov 0   ;;  %s1053_s0 = inlined_call_operand.vmem [shape: bf16[32,256], index: 0, kind: input, shape index: {}]   ;;  %s1054_s1 = inlined_call_operand.vmem [shape: bf16[256,128], index: 1, kind: input, shape index: {}]   ;;  %s1055_s2 = inlined_call_operand.vmem [shape: f32[1,128], index: 2, kind: input, shape index: {}]   ;;  %s1056_s3 = inlined_call_operand.vmem [shape: f32[1,128], index: 3, kind: input, shape index: {}]   ;;  %s1057_s4 = inlined_call_operand.vmem [shape: f32[32,128], index: 4, kind: output, shape index: {}]  }
   0x1   :  { %s905_s17 = smov 0   ;;  %s907_s18 = smov 0  }
   0x2   :  { %s909_s19 = smov 0  }
   0x3 LB: > { %s26_s20 = sadd.s32 1, %s869_s18  ;;  %p49_p1 = scmp.ne.s32.totalorder %s861_s16, %s857_s15  ;;  %s873_s19 = sphi %s909_s19, %s14_s19   ;;  %s869_s18 = sphi %s907_s18, %s1071_s18   ;;  %s865_s17 = sphi %s905_s17, %s1070_s17   ;;  %s861_s16 = sphi %s903_s16, %s1069_s16   ;;  %s857_s15 = sphi %s901_s15, %s1068_s15  }
   0x4   : > { %p27_p0 = scmp.ge.s32.totalorder %s26_s20, 2  ;;  %p50_p2 = scmp.eq.s32.totalorder %s873_s19, 0 }
   0x5   : > { %s42_s22 = sadd.s32 1, %s861_s16  ;;  %p701_p5 = scmp.ge.s32.totalorder %s873_s19, 2 }
   0x6   : > { %s1073_s20 = smov (%p27_p0, %s26_s20), 0  ;;  %p51_p3 = por %p50_p2, %p49_p1 }
   0x7   : > { %s38_s21 = ssub.s32 %s869_s18, %s1073_s20  ;;  %195 = sbr.rel (%p701_p5) target bundleno = 20 (0x14), region = 24 }
   0x8   : > { %p40_p4 = scmp.eq.s32.totalorder %s38_s21, 0 }
   0xa   : > { %s936_s23 = scalar_select %p40_p4, %s861_s16, %s42_s22  }
   0xc   : > { %198 = sbr.rel (!%p51_p3) target bundleno = 20 (0x14), region = 28  ;;  %s200_s24 = sand.u32 (%p51_p3), 1, %s861_s16  }
   0xd   : > { %s703_s25 = sshll.u32 (%p51_p3), %s869_s18, 2  ;;  %s702_s26 = sshll.u32 (%p51_p3), %s200_s24, 4 }
   0xe   : > { %s207_s29 = scalar_lea.vmem (%p51_p3), %s1053_s0, %s703_s25  ;;  %s202_s30 = scalar_lea.vmem (%p51_p3), [#allocation3], %s702_s26 }
   0xf   : > { %v224_v0 = vld [vmem:[%s207_s29] sm:$0xf] (%p51_p3)  ;;  %v226_v1 = vld [vmem:[%s207_s29 + $0x8] sm:$0xf] (%p51_p3)  ;;  %v228_v2 = vld [vmem:[%s207_s29 + $0x10] sm:$0xf] (%p51_p3) }
  0x10   : > { %225 = vst [vmem:[%s202_s30] sm:$0xf] (%p51_p3), %v224_v0  ;;  %v230_v3 = vld [vmem:[%s207_s29 + $0x18] sm:$0xf] (%p51_p3) }
  0x11   : > { %227 = vst [vmem:[%s202_s30 + $0x4] sm:$0xf] %v226_v1 }
  0x12   : > { %229 = vst [vmem:[%s202_s30 + $0x8] sm:$0xf] %v228_v2 }
  0x13   : > { %231 = vst [vmem:[%s202_s30 + $0xc] sm:$0xf] %v230_v3 }
  0x14 PF: > { %p704_p6 = scmp.ge.s32.totalorder %s873_s19, 1  ;;  %p274_p7 = scmp.lt.s32.totalorder %s873_s19, 3 }
  0x16   : > { %p275_p8 = pnand %p704_p6, %p274_p7 }
  0x17   : > { %s281_s5 = sand.u32 (!%p275_p8), 1, %s857_s15   ;;  %s706_s6 = sshll.u32 (!%p275_p8), %s865_s17, 4 }
  0x18   : > { %278 = sbr.rel (%p275_p8) target bundleno = 252 (0xfc), region = 73  ;;  %s948_s7 = sshll.u32 (!%p275_p8), %s281_s5, 4 }
  0x19   : > { %p325_p9 = scmp.lt.s32.totalorder (!%p275_p8), %s706_s6, 31  ;;  %s283_s12 = scalar_lea.vmem (!%p275_p8), [#allocation3], %s948_s7 }
  0x1a   : > { %p708_p10 = scmp.ne.s32.totalorder (!%p275_p8), %s865_s17, 0 }
  0x1d   : > { %s1075_s6 = smov (!%p325_p9, %s706_s6), 31  ;;  %351 = sbr.rel (%p708_p10) target bundleno = 39 (0x27), region = 81 }
  0x1e   : > { %s707_s8 = sshll.u32 %s1075_s6, 2 }
  0x1f   : > { %s953_s11 = scalar_lea.vmem %s1054_s1, %s707_s8 }
  0x22   : > { %v875_v4 = vmov 0.0  }
  0x23   : > { %352 = vst [vmem:[#allocation2 + $0x10] sm:$0xff] %v875_v4 }
  0x24   : > { %353 = vst [vmem:[#allocation2] sm:$0xff] %v875_v4 }
  0x25   : > { %354 = vst [vmem:[#allocation2 + $0x18] sm:$0xff] %v875_v4 }
  0x26   : > { %355 = vst [vmem:[#allocation2 + $0x8] sm:$0xff] %v875_v4 }
  0x27 PF: > { %v767_v5 = vld [vmem:[%s953_s11 + $0x38] sm:$0xff]  ;;  %v766_v6 = vld [vmem:[%s953_s11 + $0x30] sm:$0xff]  ;;  %v765_v7 = vld [vmem:[%s953_s11 + $0x28] sm:$0xff]  ;;  %p749_p11 = scmp.ne.s32.totalorder %s865_s17, 1 }
  0x28   : > { %440 = vmatpush.bf16.msra.mxu0 %v767_v5  ;;  %768 = vmatpush.bf16.msra.mxu1 %v767_v5  ;;  %v764_v8 = vld [vmem:[%s953_s11 + $0x20] sm:$0xff]  ;;  %v763_v9 = vld [vmem:[%s953_s11 + $0x18] sm:$0xff]  ;;  %v762_v10 = vld [vmem:[%s953_s11 + $0x10] sm:$0xff] }
  0x29   : > { %v761_v11 = vld [vmem:[%s953_s11 + $0x8] sm:$0xff]  ;;  %v760_v12 = vld [vmem:[%s953_s11] sm:$0xff] }
  0x2a   : > { %v758_v13 = vld [vmem:[%s283_s12] sm:$0xff]  ;;  %v759_v14 = vld [vmem:[%s283_s12 + $0x8] sm:$0xff] }
  0x2b   : > { %v356_v15 = vld [vmem:[#allocation2 + $0x10] sm:$0xff]  ;;  %v357_v21 = vld [vmem:[#allocation2] sm:$0xff] }
  0x2c   : > { %441 = vmatpush.bf16.msra.mxu0 %v766_v6  ;;  %769 = vmatpush.bf16.msra.mxu1 %v766_v6  ;;  %v358_v16 = vld [vmem:[#allocation2 + $0x18] sm:$0xff] }
  0x2d   : > { %v359_v22 = vld [vmem:[#allocation2 + $0x8] sm:$0xff] }
  0x30   : > { %442 = vmatpush.bf16.msra.mxu0 %v765_v7  ;;  %770 = vmatpush.bf16.msra.mxu1 %v765_v7 }
  0x34   : > { %443 = vmatpush.bf16.msra.mxu0 %v764_v8  ;;  %771 = vmatpush.bf16.msra.mxu1 %v764_v8 }
  0x38   : > { %444 = vmatpush.bf16.msra.mxu0 %v763_v9  ;;  %772 = vmatpush.bf16.msra.mxu1 %v763_v9 }
  0x3c   : > { %445 = vmatpush.bf16.msra.mxu0 %v762_v10  ;;  %773 = vmatpush.bf16.msra.mxu1 %v762_v10 }
  0x40   : > { %446 = vmatpush.bf16.msra.mxu0 %v761_v11  ;;  %774 = vmatpush.bf16.msra.mxu1 %v761_v11 }
  0x44   : > { %447 = vmatpush.bf16.msra.mxu0 %v760_v12  ;;  %775 = vmatpush.bf16.msra.mxu1 %v760_v12 }
  0x47   : > { %448 = vmatmul.bf16.vlgmr.msra.gmra.mxu0 %v758_v13  ;;  %453 = vmatmul.bf16.vlgmr.msra.gmra.mxu1 %v759_v14 }
  0xc4   : > { %v449_v17 = vpop.f32.mrf.mxu0  ;;  %v454_v18 = vpop.f32.mrf.mxu1 }
  0xc5   : > { %v459_v19 = vadd.f32 %v449_v17, %v356_v15  ;;  %v461_v20 = vadd.f32 %v454_v18, %v358_v16 }
  0xc7   : > { %463 = vst [vmem:[#allocation2 + $0x10] sm:$0xff] %v459_v19 }
  0xc8   : > { %465 = vst [vmem:[#allocation2 + $0x18] sm:$0xff] %v461_v20 }
  0xcc   : > { %v451_v23 = vpop.f32.mrf.mxu0  ;;  %v456_v24 = vpop.f32.mrf.mxu1  ;;  %470 = sbr.rel (%p749_p11) target bundleno = 252 (0xfc), region = 85 }
  0xcd   : > { %v460_v25 = vadd.f32 %v451_v23, %v357_v21  ;;  %v462_v26 = vadd.f32 %v456_v24, %v359_v22 }
  0xcf   : > { %464 = vst [vmem:[#allocation2] sm:$0xff] %v460_v25 }
  0xd0   : > { %466 = vst [vmem:[#allocation2 + $0x8] sm:$0xff] %v462_v26 }
  0xd1   : > { %v471_v27 = vld [vmem:[#allocation2 + $0x10] sm:$0xff]  ;;  %v817_v28 = vld [vmem:[%s1055_s2] ss:$0 sm:$0xff]  ;;  %v473_v33 = vld [vmem:[#allocation2 + $0x18] sm:$0xff] }
  0xd2   : > { %v818_v29 = vld [vmem:[%s1056_s3] ss:$0 sm:$0xff]  ;;  %v479_v31 = vmul.f32 %v817_v28, %v471_v27  ;;  %v481_v35 = vmul.f32 %v817_v28, %v473_v33 }
  0xd4   : > { %v976_v37 = vadd.f32 %v818_v29, %v479_v31  ;;  %v980_v39 = vadd.f32 %v818_v29, %v481_v35 }
  0xd6   : > { %v472_v30 = vld [vmem:[#allocation2] sm:$0xff]  ;;  %v750_v41 = vmul.f32 -1.442695, %v976_v37  ;;  %v752_v43 = vmul.f32 -1.442695, %v980_v39 }
  0xd7   : > { %v480_v32 = vmul.f32 %v817_v28, %v472_v30  ;;  %v474_v34 = vld [vmem:[#allocation2 + $0x8] sm:$0xff] }
  0xd8   : > { %v482_v36 = vmul.f32 %v817_v28, %v474_v34  ;;  %819 = vpow2.f32 %v750_v41 }
  0xd9   : > { %v978_v38 = vadd.f32 %v818_v29, %v480_v32 }
  0xda   : > { %v982_v40 = vadd.f32 %v818_v29, %v482_v36 }
  0xdb   : > { %v751_v42 = vmul.f32 -1.442695, %v978_v38 }
  0xdc   : > { %v753_v44 = vmul.f32 -1.442695, %v982_v40 }
  0xdd   : > { %821 = vpow2.f32 %v751_v42 }
  0xde   : > { %823 = vpow2.f32 %v752_v43  ;;  %v820_v45 = vpop.eup %819 }
  0xdf   : > { %825 = vpow2.f32 %v753_v44  ;;  %v503_v47 = vadd.f32 1.0, %v820_v45 }
  0xe1   : > { %827 = vrcp.f32 %v503_v47  ;;  %v516_v53 = vand.u32 2147483647, %v503_v47  ;;  %v518_v54 = vand.u32 2147483648, %v503_v47  ;;  %vm512_vm0 = vweird.f32 %v503_v47 }
  0xe3   : > { %v822_v46 = vpop.eup %821  ;;  %vm988_vm3 = vcmp.eq.f32.partialorder %v516_v53, 8.507059e+37  ;;  %v519_v63 = vor.u32 1.1754944e-38, %v518_v54 }
  0xe4   : > { %v824_v48 = vpop.eup %823  ;;  %v504_v49 = vadd.f32 1.0, %v822_v46 }
  0xe5   : > { %v826_v50 = vpop.eup %825  ;;  %v505_v51 = vadd.f32 1.0, %v824_v48 }
  0xe6   : > { %829 = vrcp.f32 %v504_v49  ;;  %v506_v52 = vadd.f32 1.0, %v826_v50  ;;  %v531_v56 = vand.u32 2147483647, %v504_v49  ;;  %v533_v57 = vand.u32 2147483648, %v504_v49 }
  0xe7   : > { %831 = vrcp.f32 %v505_v51  ;;  %v828_v55 = vpop.eup %827  ;;  %vm527_vm1 = vweird.f32 %v504_v49  ;;  %vm542_vm6 = vweird.f32 %v505_v51  ;;  %v546_v7 = vand.u32 2147483647, %v505_v51 }
  0xe8   : > { %833 = vrcp.f32 %v506_v52  ;;  %v508_v59 = vmul.f32 %v828_v55, %v503_v47  ;;  %vm513_vm2 = vweird.f32 %v828_v55  ;;  %vm992_vm5 = vcmp.eq.f32.partialorder %v531_v56, 8.507059e+37 }
  0xe9   : > { %v534_v3 = vor.u32 1.1754944e-38, %v533_v57  ;;  %vm997_vm7 = vmor %vm512_vm0, %vm513_vm2  ;;  %v548_v10 = vand.u32 2147483648, %v505_v51  ;;  %vm557_vm8 = vweird.f32 %v506_v52  ;;  %v563_v15 = vand.u32 2147483648, %v506_v52 }
  0xea   : > { %v509_v61 = vsub.f32 1.0, %v508_v59  ;;  %v561_v18 = vand.u32 2147483647, %v506_v52  ;;  %vm1008_vm12 = vcmp.eq.f32.partialorder %v546_v7, 8.507059e+37 }
  0xeb   : > { %v549_v24 = vor.u32 1.1754944e-38, %v548_v10  ;;  %v564_v29 = vor.u32 1.1754944e-38, %v563_v15 }
  0xec   : > { %v830_v58 = vpop.eup %829  ;;  %v510_v5 = vmul.f32 %v828_v55, %v509_v61  ;;  %vm562_vm15 = vcmp.eq.f32.partialorder %v561_v18, 8.507059e+37 }
  0xed   : > { %v523_v60 = vmul.f32 %v830_v58, %v504_v49  ;;  %v832_v0 = vpop.eup %831  ;;  %vm528_vm4 = vweird.f32 %v830_v58 }
  0xee   : > { %v834_v4 = vpop.eup %833  ;;  %v538_v6 = vmul.f32 %v832_v0, %v505_v51  ;;  %v511_v12 = vadd.f32 %v828_v55, %v510_v5  ;;  %vm1002_vm9 = vmor %vm527_vm1, %vm528_vm4  ;;  %vm543_vm10 = vweird.f32 %v832_v0 }
  0xef   : > { %v524_v1 = vsub.f32 1.0, %v523_v60  ;;  %v553_v11 = vmul.f32 %v834_v4, %v506_v52  ;;  %vm558_vm11 = vweird.f32 %v834_v4  ;;  %vm544_vm13 = vmor %vm542_vm6, %vm543_vm10 }
  0xf0   : > { %v539_v14 = vsub.f32 1.0, %v538_v6  ;;  %v515_v19 = vsel %vm997_vm7, %v828_v55, %v511_v12  ;;  %vm559_vm14 = vmor %vm557_vm8, %vm558_vm11 }
  0xf1   : > { %v525_v9 = vmul.f32 %v830_v58, %v524_v1  ;;  %v554_v17 = vsub.f32 1.0, %v553_v11  ;;  %v520_v22 = vsel %vm988_vm3, %v519_v63, %v515_v19 }
  0xf2   : > { %v540_v20 = vmul.f32 %v832_v0, %v539_v14  ;;  %v567_v26 = vmul.f32 %v520_v22, %v976_v37 }
  0xf3   : > { %v526_v16 = vadd.f32 %v830_v58, %v525_v9  ;;  %v555_v25 = vmul.f32 %v834_v4, %v554_v17 }
  0xf4   : > { %v541_v28 = vadd.f32 %v832_v0, %v540_v20  ;;  %571 = vst [vmem:[%s1057_s4] sm:$0xff] %v567_v26 }
  0xf5   : > { %v530_v23 = vsel %vm1002_vm9, %v830_v58, %v526_v16  ;;  %v556_v31 = vadd.f32 %v834_v4, %v555_v25 }
  0xf6   : > { %v535_v27 = vsel %vm992_vm5, %v534_v3, %v530_v23  ;;  %v545_v32 = vsel %vm544_vm13, %v832_v0, %v541_v28 }
  0xf7   : > { %v568_v30 = vmul.f32 %v535_v27, %v978_v38  ;;  %v550_v33 = vsel %vm1008_vm12, %v549_v24, %v545_v32  ;;  %v560_v34 = vsel %vm559_vm14, %v834_v4, %v556_v31 }
  0xf8   : > { %v569_v35 = vmul.f32 %v550_v33, %v980_v39  ;;  %v565_v36 = vsel %vm562_vm15, %v564_v29, %v560_v34 }
  0xf9   : > { %572 = vst [vmem:[%s1057_s4 + $0x8] sm:$0xff] %v568_v30  ;;  %v570_v37 = vmul.f32 %v565_v36, %v982_v40 }
  0xfa   : > { %573 = vst [vmem:[%s1057_s4 + $0x10] sm:$0xff] %v569_v35 }
  0xfb   : > { %574 = vst [vmem:[%s1057_s4 + $0x18] sm:$0xff] %v570_v37 }
  0xfc PF: > { %s14_s19 = sadd.s32 1, %s873_s19   ;;  %s1068_s15 = smov %s861_s16 }
  0xfd   : > { %p11_p12 = scmp.ge.s32.totalorder %s14_s19, 4   ;;  %s1069_s16 = smov %s936_s23 }
  0xfe   : > { %s1070_s17 = smov %s869_s18  ;;  %s1071_s18 = smov %s1073_s20 }
  0xff   :  { %13 = sbr.rel (!%p11_p12) target bundleno = 3 (0x3), region = 129 }

// kernel: _lambda_.14
= control target key start
LH: loop header
LB: loop body
LE: loop exit
PB: predicated region body
PF: predicated region fallthrough
CT: control target
= control target key end

     0   :  { %s300_s1 = inlined_call_operand.vmem [shape: bf16[128,128], index: 1, kind: input, shape index: {}]   ;;  %s301_s2 = inlined_call_operand.vmem [shape: f32[1,128], index: 2, kind: input, shape index: {}]   ;;  %s302_s3 = inlined_call_operand.vmem [shape: f32[1,128], index: 3, kind: input, shape index: {}]   ;;  %s303_s0 = inlined_call_operand.vmem [shape: bf16[32,128], index: 0, kind: input, shape index: {}]   ;;  %s304_s4 = inlined_call_operand.vmem [shape: f32[32,128], index: 4, kind: output, shape index: {}]  }
   0x1   :  { %v216_v0 = vld [vmem:[%s300_s1 + $0x38] sm:$0xff]  ;;  %v215_v1 = vld [vmem:[%s300_s1 + $0x30] sm:$0xff]  ;;  %v214_v2 = vld [vmem:[%s300_s1 + $0x28] sm:$0xff] }
   0x2   :  { %109 = vmatpush.bf16.msra.mxu0 %v216_v0  ;;  %217 = vmatpush.bf16.msra.mxu1 %v216_v0  ;;  %v213_v3 = vld [vmem:[%s300_s1 + $0x20] sm:$0xff]  ;;  %v212_v4 = vld [vmem:[%s300_s1 + $0x18] sm:$0xff]  ;;  %v211_v5 = vld [vmem:[%s300_s1 + $0x10] sm:$0xff] }
   0x3   :  { %v210_v6 = vld [vmem:[%s300_s1 + $0x8] sm:$0xff]  ;;  %v209_v7 = vld [vmem:[%s300_s1] sm:$0xff] }
   0x4   :  { %v207_v8 = vld [vmem:[%s303_s0] sm:$0xff]  ;;  %v208_v9 = vld [vmem:[%s303_s0 + $0x8] sm:$0xff] }
   0x5   :  { %v225_v10 = vld [vmem:[%s301_s2] ss:$0 sm:$0xff] }
   0x6   :  { %110 = vmatpush.bf16.msra.mxu0 %v215_v1  ;;  %218 = vmatpush.bf16.msra.mxu1 %v215_v1  ;;  %v226_v11 = vld [vmem:[%s302_s3] ss:$0 sm:$0xff] }
   0xa   :  { %111 = vmatpush.bf16.msra.mxu0 %v214_v2  ;;  %219 = vmatpush.bf16.msra.mxu1 %v214_v2 }
   0xe   :  { %112 = vmatpush.bf16.msra.mxu0 %v213_v3  ;;  %220 = vmatpush.bf16.msra.mxu1 %v213_v3 }
  0x12   :  { %113 = vmatpush.bf16.msra.mxu0 %v212_v4  ;;  %221 = vmatpush.bf16.msra.mxu1 %v212_v4 }
  0x16   :  { %114 = vmatpush.bf16.msra.mxu0 %v211_v5  ;;  %222 = vmatpush.bf16.msra.mxu1 %v211_v5 }
  0x1a   :  { %115 = vmatpush.bf16.msra.mxu0 %v210_v6  ;;  %223 = vmatpush.bf16.msra.mxu1 %v210_v6 }
  0x1e   :  { %116 = vmatpush.bf16.msra.mxu0 %v209_v7  ;;  %224 = vmatpush.bf16.msra.mxu1 %v209_v7 }
  0x21   :  { %117 = vmatmul.bf16.vlgmr.msra.gmra.mxu0 %v207_v8  ;;  %122 = vmatmul.bf16.vlgmr.msra.gmra.mxu1 %v208_v9 }
  0x9e   :  { %v118_v12 = vpop.f32.mrf.mxu0  ;;  %v123_v13 = vpop.f32.mrf.mxu1 }
  0x9f   :  { %v147_v14 = vmul.f32 %v225_v10, %v118_v12  ;;  %v149_v15 = vmul.f32 %v225_v10, %v123_v13 }
  0xa1   :  { %v155_v16 = vadd.f32 %v226_v11, %v147_v14  ;;  %v157_v17 = vadd.f32 %v226_v11, %v149_v15 }
  0xa3   :  { %159 = vst [vmem:[%s304_s4] sm:$0xff] %v155_v16 }
  0xa4   :  { %161 = vst [vmem:[%s304_s4 + $0x10] sm:$0xff] %v157_v17 }
  0xa6   :  { %v120_v18 = vpop.f32.mrf.mxu0  ;;  %v125_v19 = vpop.f32.mrf.mxu1 }
  0xa7   :  { %v148_v20 = vmul.f32 %v225_v10, %v120_v18  ;;  %v150_v21 = vmul.f32 %v225_v10, %v125_v19 }
  0xa9   :  { %v156_v22 = vadd.f32 %v226_v11, %v148_v20  ;;  %v158_v23 = vadd.f32 %v226_v11, %v150_v21 }
  0xab   :  { %160 = vst [vmem:[%s304_s4 + $0x8] sm:$0xff] %v156_v22 }
  0xac   :  { %162 = vst [vmem:[%s304_s4 + $0x18] sm:$0xff] %v158_v23 }

// kernel: _lambda_.15
= control target key start
LH: loop header
LB: loop body
LE: loop exit
PB: predicated region body
PF: predicated region fallthrough
CT: control target
= control target key end

     0   :  { %s408_s1 = inlined_call_operand.vmem [shape: bf16[128,128], index: 1, kind: input, shape index: {}]   ;;  %s409_s2 = inlined_call_operand.vmem [shape: f32[1,128], index: 2, kind: input, shape index: {}]   ;;  %s410_s3 = inlined_call_operand.vmem [shape: f32[1,128], index: 3, kind: input, shape index: {}]   ;;  %s411_s0 = inlined_call_operand.vmem [shape: bf16[32,128], index: 0, kind: input, shape index: {}]   ;;  %s412_s4 = inlined_call_operand.vmem [shape: f32[32,128], index: 4, kind: output, shape index: {}]  }
   0x1   :  { %v300_v0 = vld [vmem:[%s408_s1 + $0x38] sm:$0xff]  ;;  %v299_v1 = vld [vmem:[%s408_s1 + $0x30] sm:$0xff]  ;;  %v298_v2 = vld [vmem:[%s408_s1 + $0x28] sm:$0xff] }
   0x2   :  { %109 = vmatpush.bf16.msra.mxu0 %v300_v0  ;;  %301 = vmatpush.bf16.msra.mxu1 %v300_v0  ;;  %v297_v3 = vld [vmem:[%s408_s1 + $0x20] sm:$0xff]  ;;  %v296_v4 = vld [vmem:[%s408_s1 + $0x18] sm:$0xff]  ;;  %v295_v5 = vld [vmem:[%s408_s1 + $0x10] sm:$0xff] }
   0x3   :  { %v294_v6 = vld [vmem:[%s408_s1 + $0x8] sm:$0xff]  ;;  %v293_v7 = vld [vmem:[%s408_s1] sm:$0xff] }
   0x4   :  { %v291_v8 = vld [vmem:[%s411_s0] sm:$0xff]  ;;  %v292_v9 = vld [vmem:[%s411_s0 + $0x8] sm:$0xff] }
   0x5   :  { %v309_v10 = vld [vmem:[%s409_s2] ss:$0 sm:$0xff] }
   0x6   :  { %110 = vmatpush.bf16.msra.mxu0 %v299_v1  ;;  %302 = vmatpush.bf16.msra.mxu1 %v299_v1  ;;  %v310_v11 = vld [vmem:[%s410_s3] ss:$0 sm:$0xff] }
   0xa   :  { %111 = vmatpush.bf16.msra.mxu0 %v298_v2  ;;  %303 = vmatpush.bf16.msra.mxu1 %v298_v2 }
   0xe   :  { %112 = vmatpush.bf16.msra.mxu0 %v297_v3  ;;  %304 = vmatpush.bf16.msra.mxu1 %v297_v3 }
  0x12   :  { %113 = vmatpush.bf16.msra.mxu0 %v296_v4  ;;  %305 = vmatpush.bf16.msra.mxu1 %v296_v4 }
  0x16   :  { %114 = vmatpush.bf16.msra.mxu0 %v295_v5  ;;  %306 = vmatpush.bf16.msra.mxu1 %v295_v5 }
  0x1a   :  { %115 = vmatpush.bf16.msra.mxu0 %v294_v6  ;;  %307 = vmatpush.bf16.msra.mxu1 %v294_v6 }
  0x1e   :  { %116 = vmatpush.bf16.msra.mxu0 %v293_v7  ;;  %308 = vmatpush.bf16.msra.mxu1 %v293_v7 }
  0x21   :  { %117 = vmatmul.bf16.vlgmr.msra.gmra.mxu0 %v291_v8  ;;  %122 = vmatmul.bf16.vlgmr.msra.gmra.mxu1 %v292_v9 }
  0x9e   :  { %v118_v12 = vpop.f32.mrf.mxu0  ;;  %v123_v13 = vpop.f32.mrf.mxu1 }
  0x9f   :  { %v147_v14 = vmul.f32 %v309_v10, %v118_v12  ;;  %v149_v15 = vmul.f32 %v309_v10, %v123_v13 }
  0xa1   :  { %v155_v16 = vadd.f32 %v310_v11, %v147_v14  ;;  %v157_v17 = vadd.f32 %v310_v11, %v149_v15 }
  0xa3   :  { %v287_v18 = vmul.f32 -1.442695, %v155_v16  ;;  %v289_v19 = vmul.f32 -1.442695, %v157_v17 }
  0xa5   :  { %311 = vpow2.f32 %v287_v18 }
  0xa6   :  { %313 = vpow2.f32 %v289_v19  ;;  %v120_v20 = vpop.f32.mrf.mxu0  ;;  %v125_v21 = vpop.f32.mrf.mxu1 }
  0xa7   :  { %v148_v22 = vmul.f32 %v309_v10, %v120_v20  ;;  %v150_v23 = vmul.f32 %v309_v10, %v125_v21 }
  0xa9   :  { %v388_v24 = vadd.f32 %v310_v11, %v148_v22  ;;  %v390_v25 = vadd.f32 %v310_v11, %v150_v23 }
  0xab   :  { %v312_v26 = vpop.eup %311  ;;  %v288_v27 = vmul.f32 -1.442695, %v388_v24  ;;  %v290_v30 = vmul.f32 -1.442695, %v390_v25 }
  0xac   :  { %v314_v28 = vpop.eup %313  ;;  %v171_v29 = vadd.f32 1.0, %v312_v26 }
  0xad   :  { %v173_v31 = vadd.f32 1.0, %v314_v28  ;;  %315 = vpow2.f32 %v288_v27 }
  0xae   :  { %317 = vrcp.f32 %v171_v29  ;;  %v184_v41 = vand.u32 2147483647, %v171_v29  ;;  %v186_v42 = vand.u32 2147483648, %v171_v29  ;;  %vm180_vm2 = vweird.f32 %v171_v29 }
  0xaf   :  { %319 = vrcp.f32 %v173_v31  ;;  %v216_v45 = vand.u32 2147483648, %v173_v31  ;;  %v214_v47 = vand.u32 2147483647, %v173_v31  ;;  %vm210_vm4 = vweird.f32 %v173_v31 }
  0xb0   :  { %321 = vpow2.f32 %v290_v30  ;;  %v187_v50 = vor.u32 1.1754944e-38, %v186_v42  ;;  %vm185_vm5 = vcmp.eq.f32.partialorder %v184_v41, 8.507059e+37 }
  0xb1   :  { %v217_v53 = vor.u32 1.1754944e-38, %v216_v45  ;;  %vm215_vm7 = vcmp.eq.f32.partialorder %v214_v47, 8.507059e+37 }
  0xb3   :  { %v316_v32 = vpop.eup %315 }
  0xb4   :  { %v318_v33 = vpop.eup %317  ;;  %v172_v34 = vadd.f32 1.0, %v316_v32 }
  0xb5   :  { %v320_v35 = vpop.eup %319  ;;  %v176_v36 = vmul.f32 %v318_v33, %v171_v29  ;;  %vm181_vm0 = vweird.f32 %v318_v33 }
  0xb6   :  { %v322_v37 = vpop.eup %321  ;;  %v206_v38 = vmul.f32 %v320_v35, %v173_v31  ;;  %323 = vrcp.f32 %v172_v34  ;;  %vm211_vm1 = vweird.f32 %v320_v35  ;;  %vm182_vm3 = vmor %vm180_vm2, %vm181_vm0  ;;  %v201_v62 = vand.u32 2147483648, %v172_v34 }
  0xb7   :  { %v177_v39 = vsub.f32 1.0, %v176_v36  ;;  %v174_v40 = vadd.f32 1.0, %v322_v37  ;;  %vm212_vm6 = vmor %vm210_vm4, %vm211_vm1  ;;  %v199_v1 = vand.u32 2147483647, %v172_v34  ;;  %vm195_vm9 = vweird.f32 %v172_v34 }
  0xb8   :  { %v207_v43 = vsub.f32 1.0, %v206_v38  ;;  %v202_v5 = vor.u32 1.1754944e-38, %v201_v62 }
  0xb9   :  { %v178_v44 = vmul.f32 %v318_v33, %v177_v39  ;;  %325 = vrcp.f32 %v174_v40  ;;  %v231_v4 = vand.u32 2147483648, %v174_v40  ;;  %v229_v7 = vand.u32 2147483647, %v174_v40 }
  0xba   :  { %v208_v46 = vmul.f32 %v320_v35, %v207_v43  ;;  %vm200_vm12 = vcmp.eq.f32.partialorder %v199_v1, 8.507059e+37  ;;  %vm225_vm13 = vweird.f32 %v174_v40 }
  0xbb   :  { %v179_v48 = vadd.f32 %v318_v33, %v178_v44  ;;  %v232_v12 = vor.u32 1.1754944e-38, %v231_v4  ;;  %vm230_vm15 = vcmp.eq.f32.partialorder %v229_v7, 8.507059e+37 }
  0xbc   :  { %v324_v49 = vpop.eup %323  ;;  %v209_v51 = vadd.f32 %v320_v35, %v208_v46 }
  0xbd   :  { %v183_v52 = vsel %vm182_vm3, %v318_v33, %v179_v48  ;;  %v191_v54 = vmul.f32 %v324_v49, %v172_v34  ;;  %vm196_vm8 = vweird.f32 %v324_v49 }
  0xbe   :  { %v188_v55 = vsel %vm185_vm5, %v187_v50, %v183_v52  ;;  %v213_v56 = vsel %vm212_vm6, %v320_v35, %v209_v51  ;;  %vm197_vm10 = vmor %vm195_vm9, %vm196_vm8 }
  0xbf   :  { %v326_v57 = vpop.eup %325  ;;  %v235_v58 = vmul.f32 %v188_v55, %v155_v16  ;;  %v218_v59 = vsel %vm215_vm7, %v217_v53, %v213_v56  ;;  %v192_v60 = vsub.f32 1.0, %v191_v54 }
  0xc0   :  { %v237_v61 = vmul.f32 %v218_v59, %v157_v17  ;;  %v221_v63 = vmul.f32 %v326_v57, %v174_v40  ;;  %vm226_vm11 = vweird.f32 %v326_v57 }
  0xc1   :  { %239 = vst [vmem:[%s412_s4] sm:$0xff] %v235_v58  ;;  %v193_v0 = vmul.f32 %v324_v49, %v192_v60  ;;  %vm227_vm14 = vmor %vm225_vm13, %vm226_vm11 }
  0xc2   :  { %241 = vst [vmem:[%s412_s4 + $0x10] sm:$0xff] %v237_v61  ;;  %v222_v2 = vsub.f32 1.0, %v221_v63 }
  0xc3   :  { %v194_v3 = vadd.f32 %v324_v49, %v193_v0 }
  0xc4   :  { %v223_v6 = vmul.f32 %v326_v57, %v222_v2 }
  0xc5   :  { %v198_v8 = vsel %vm197_vm10, %v324_v49, %v194_v3 }
  0xc6   :  { %v203_v9 = vsel %vm200_vm12, %v202_v5, %v198_v8  ;;  %v224_v10 = vadd.f32 %v326_v57, %v223_v6 }
  0xc7   :  { %v236_v11 = vmul.f32 %v203_v9, %v388_v24 }
  0xc8   :  { %v228_v13 = vsel %vm227_vm14, %v326_v57, %v224_v10 }
  0xc9   :  { %240 = vst [vmem:[%s412_s4 + $0x8] sm:$0xff] %v236_v11  ;;  %v233_v14 = vsel %vm230_vm15, %v232_v12, %v228_v13 }
  0xca   :  { %v238_v15 = vmul.f32 %v233_v14, %v390_v25 }
  0xcc   :  { %242 = vst [vmem:[%s412_s4 + $0x18] sm:$0xff] %v238_v15 }

// kernel: _lambda_.18
= control target key start
LH: loop header
LB: loop body
LE: loop exit
PB: predicated region body
PF: predicated region fallthrough
CT: control target
= control target key end

     0   :  { %s380_s9 = smov 0   ;;  %s382_s10 = smov 0   ;;  %s404_s0 = inlined_call_operand.vmem [shape: f32[2,16,128], index: 0, kind: input, shape index: {}]   ;;  %s405_s1 = inlined_call_operand.vmem [shape: f32[2,1,128], index: 1, kind: input, shape index: {}]   ;;  %s406_s2 = inlined_call_operand.vmem [shape: f32[2,16,128], index: 2, kind: output, shape index: {}]  }
   0x1   :  { %s384_s11 = smov 0  }
   0x2 LB: > { %s24_s12 = sadd.s32 1, %s359_s10  ;;  %p307_p0 = scmp.ge.s32.totalorder %s363_s11, 1  ;;  %s363_s11 = sphi %s384_s11, %s12_s11   ;;  %s359_s10 = sphi %s382_s10, %s408_s10   ;;  %s355_s9 = sphi %s380_s9, %s407_s9  }
   0x3   : > { %p26_p1 = scmp.ge.s32.totalorder %s24_s12, 2  ;;  %p141_p2 = scmp.lt.s32.totalorder %s363_s11, 3 }
   0x5   : > { %s410_s12 = smov (%p26_p1, %s24_s12), 0  ;;  %p142_p3 = pnand %p307_p0, %p141_p2 }
   0x6   : > { %p175_p4 = scmp.lt.s32.totalorder (!%p142_p3), %s355_s9, 1 }
   0x7   : > { %145 = sbr.rel (%p142_p3) target bundleno = 20 (0x14), region = 28 }
   0xc   : > { %s412_s9 = smov (!%p175_p4, %s355_s9), 1 }
   0xd   : > { %s314_s13 = sshll.u32 %s412_s9, 4  ;;  %s186_s16 = scalar_lea.vmem %s405_s1, %s412_s9 }
   0xe   : > { %s182_s19 = scalar_lea.vmem %s404_s0, %s314_s13  ;;  %v340_v0 = vld [vmem:[%s186_s16] ss:$0 sm:$0xff]  ;;  %s195_s22 = scalar_lea.vmem %s406_s2, %s314_s13 }
   0xf   : > { %v197_v1 = vld [vmem:[%s182_s19] sm:$0xff]  ;;  %v198_v2 = vld [vmem:[%s182_s19 + $0x8] sm:$0xff] }
  0x10   : > { %v203_v3 = vmul.f32 %v340_v0, %v197_v1  ;;  %v204_v4 = vmul.f32 %v340_v0, %v198_v2 }
  0x12   : > { %205 = vst [vmem:[%s195_s22] sm:$0xff] %v203_v3 }
  0x13   : > { %206 = vst [vmem:[%s195_s22 + $0x8] sm:$0xff] %v204_v4 }
  0x14 PF: > { %s12_s11 = sadd.s32 1, %s363_s11   ;;  %s407_s9 = smov %s359_s10 }
  0x15   : > { %p9_p5 = scmp.ge.s32.totalorder %s12_s11, 4   ;;  %s408_s10 = smov %s410_s12 }
  0x17   :  { %11 = sbr.rel (!%p9_p5) target bundleno = 2 (0x2), region = 61 }

// kernel: _lambda_.16
= control target key start
LH: loop header
LB: loop body
LE: loop exit
PB: predicated region body
PF: predicated region fallthrough
CT: control target
= control target key end

     0   :  { %s542_s0 = inlined_call_operand.vmem [shape: f32[9,32,128], index: 0, kind: input, shape index: {}]   ;;  %s543_s1 = inlined_call_operand.vmem [shape: f32[9,128], index: 1, kind: input, shape index: {}]   ;;  %s544_s2 = inlined_call_operand.vmem [shape: f32[1,128], index: 2, kind: input, shape index: {}]   ;;  %s545_s3 = inlined_call_operand.vmem [shape: f32[1,128], index: 3, kind: input, shape index: {}]   ;;  %s546_s4 = inlined_call_operand.vmem [shape: f32[32,128], index: 4, kind: output, shape index: {}]  }
   0x1   :  { %v17_v0 = vld [vmem:[%s543_s1] sm:$0xff]  ;;  %v20_v14 = vld [vmem:[%s542_s0 + $0x8] sm:$0xff]  ;;  %v21_v35 = vld [vmem:[%s542_s0 + $0x10] sm:$0xff] }
   0x2   :  { %v19_v1 = vld [vmem:[%s542_s0] sm:$0xff]  ;;  %v23_v2 = vperm.slane %v17_v0, 0  ;;  %v337_v4 = vperm.slane %v17_v0, 1  ;;  %v342_v6 = vperm.slane %v17_v0, 2  ;;  %v347_v8 = vperm.slane %v17_v0, 3  ;;  %v249_v19 = vld [vmem:[%s542_s0 + $0x28] sm:$0xff] }
   0x3   :  { %v248_v3 = vld [vmem:[%s542_s0 + $0x20] sm:$0xff]  ;;  %v351_v12 = vperm.slane %v17_v0, 4  ;;  %v360_v17 = vperm.slane %v17_v0, 5  ;;  %v368_v21 = vperm.slane %v17_v0, 6  ;;  %v253_v23 = vld [vmem:[%s542_s0 + $0x48] sm:$0xff]  ;;  %v384_v29 = vperm.slane %v17_v0, 7 }
   0x4   :  { %v252_v5 = vld [vmem:[%s542_s0 + $0x40] sm:$0xff]  ;;  %v24_v9 = vmul.f32 %v23_v2, %v19_v1  ;;  %v38_v10 = vmul.f32 %v248_v3, %v337_v4  ;;  %v25_v18 = vmul.f32 %v23_v2, %v20_v14  ;;  %v39_v22 = vmul.f32 %v249_v19, %v337_v4  ;;  %v257_v24 = vld [vmem:[%s542_s0 + $0x68] sm:$0xff]  ;;  %v250_v36 = vld [vmem:[%s542_s0 + $0x30] sm:$0xff] }
   0x5   :  { %v256_v7 = vld [vmem:[%s542_s0 + $0x60] sm:$0xff]  ;;  %v52_v11 = vmul.f32 %v252_v5, %v342_v6  ;;  %v53_v30 = vmul.f32 %v253_v23, %v342_v6  ;;  %v261_v31 = vld [vmem:[%s542_s0 + $0x88] sm:$0xff]  ;;  %v67_v33 = vmul.f32 %v257_v24, %v347_v8  ;;  %v26_v39 = vmul.f32 %v23_v2, %v21_v35  ;;  %v254_v41 = vld [vmem:[%s542_s0 + $0x50] sm:$0xff] }
   0x6   :  { %v260_v13 = vld [vmem:[%s542_s0 + $0x80] sm:$0xff]  ;;  %v42_v15 = vadd.f32 %v38_v10, %v24_v9  ;;  %v66_v16 = vmul.f32 %v256_v7, %v347_v8  ;;  %v43_v32 = vadd.f32 %v39_v22, %v25_v18  ;;  %v265_v34 = vld [vmem:[%s542_s0 + $0xa8] sm:$0xff]  ;;  %v40_v40 = vmul.f32 %v250_v36, %v337_v4  ;;  %v258_v42 = vld [vmem:[%s542_s0 + $0x70] sm:$0xff] }
   0x7   :  { %v264_v20 = vld [vmem:[%s542_s0 + $0xa0] sm:$0xff]  ;;  %v80_v26 = vmul.f32 %v260_v13, %v351_v12  ;;  %v262_v43 = vld [vmem:[%s542_s0 + $0x90] sm:$0xff]  ;;  %v418_v46 = vld [vmem:[%s543_s1 + $0x8] ss:$0 sm:$0xff]  ;;  %v81_v48 = vmul.f32 %v261_v31, %v351_v12  ;;  %v54_v50 = vmul.f32 %v254_v41, %v342_v6  ;;  %v68_v54 = vmul.f32 %v258_v42, %v347_v8 }
   0x8   :  { %v56_v25 = vadd.f32 %v52_v11, %v42_v15  ;;  %v268_v27 = vld [vmem:[%s542_s0 + $0xc0] sm:$0xff]  ;;  %v94_v38 = vmul.f32 %v264_v20, %v360_v17  ;;  %v57_v47 = vadd.f32 %v53_v30, %v43_v32  ;;  %v269_v49 = vld [vmem:[%s542_s0 + $0xc8] sm:$0xff]  ;;  %v44_v53 = vadd.f32 %v40_v40, %v26_v39  ;;  %v266_v55 = vld [vmem:[%s542_s0 + $0xb0] sm:$0xff] }
   0x9   :  { %v272_v28 = vld [vmem:[%s542_s0 + $0xe0] sm:$0xff]  ;;  %v108_v44 = vmul.f32 %v268_v27, %v368_v21  ;;  %v22_v56 = vld [vmem:[%s542_s0 + $0x18] sm:$0xff]  ;;  %v95_v59 = vmul.f32 %v265_v34, %v360_v17  ;;  %v82_v60 = vmul.f32 %v262_v43, %v351_v12  ;;  %v273_v1 = vld [vmem:[%s542_s0 + $0xe8] sm:$0xff]  ;;  %v109_v11 = vmul.f32 %v269_v49, %v368_v21 }
   0xa   :  { %v70_v37 = vadd.f32 %v66_v16, %v56_v25  ;;  %v276_v45 = vld [vmem:[%s542_s0 + $0x100] sm:$0xff]  ;;  %v122_v52 = vmul.f32 %v272_v28, %v384_v29  ;;  %v251_v57 = vld [vmem:[%s542_s0 + $0x38] sm:$0xff]  ;;  %v71_v58 = vadd.f32 %v67_v33, %v57_v47  ;;  %v27_v61 = vmul.f32 %v23_v2, %v22_v56  ;;  %v270_v5 = vld [vmem:[%s542_s0 + $0xd0] sm:$0xff] }
   0xb   :  { %v255_v62 = vld [vmem:[%s542_s0 + $0x58] sm:$0xff]  ;;  %v58_v3 = vadd.f32 %v54_v50, %v44_v53  ;;  %v41_v2 = vmul.f32 %v251_v57, %v337_v4  ;;  %v136_v9 = vmul.f32 %v418_v46, %v276_v45  ;;  %v96_v13 = vmul.f32 %v266_v55, %v360_v17  ;;  %v277_v16 = vld [vmem:[%s542_s0 + $0x108] sm:$0xff]  ;;  %v274_v4 = vld [vmem:[%s542_s0 + $0xf0] sm:$0xff] }
   0xc   :  { %v84_v51 = vadd.f32 %v80_v26, %v70_v37  ;;  %v259_v63 = vld [vmem:[%s542_s0 + $0x78] sm:$0xff]  ;;  %v55_v7 = vmul.f32 %v255_v62, %v342_v6  ;;  %v85_v10 = vadd.f32 %v81_v48, %v71_v58  ;;  %v123_v22 = vmul.f32 %v273_v1, %v384_v29  ;;  %v285_v26 = vld [vmem:[%s544_s2] ss:$0 sm:$0xff]  ;;  %v278_v28 = vld [vmem:[%s542_s0 + $0x110] sm:$0xff] }
   0xd   :  { %v263_v14 = vld [vmem:[%s542_s0 + $0x98] sm:$0xff]  ;;  %v72_v18 = vadd.f32 %v68_v54, %v58_v3  ;;  %v45_v6 = vadd.f32 %v41_v2, %v27_v61  ;;  %v69_v19 = vmul.f32 %v259_v63, %v347_v8  ;;  %v110_v23 = vmul.f32 %v270_v5, %v368_v21  ;;  %v286_v36 = vld [vmem:[%s545_s3] ss:$0 sm:$0xff] }
   0xe   :  { %v98_v0 = vadd.f32 %v94_v38, %v84_v51  ;;  %v99_v20 = vadd.f32 %v95_v59, %v85_v10  ;;  %v267_v24 = vld [vmem:[%s542_s0 + $0xb8] sm:$0xff]  ;;  %v83_v30 = vmul.f32 %v263_v14, %v351_v12  ;;  %v137_v32 = vmul.f32 %v418_v46, %v277_v16 }
   0xf   :  { %v86_v27 = vadd.f32 %v82_v60, %v72_v18  ;;  %v59_v8 = vadd.f32 %v55_v7, %v45_v6  ;;  %v124_v33 = vmul.f32 %v274_v4, %v384_v29  ;;  %v271_v34 = vld [vmem:[%s542_s0 + $0xd8] sm:$0xff]  ;;  %v97_v39 = vmul.f32 %v267_v24, %v360_v17 }
  0x10   :  { %v112_v15 = vadd.f32 %v108_v44, %v98_v0  ;;  %v113_v31 = vadd.f32 %v109_v11, %v99_v20  ;;  %v138_v12 = vmul.f32 %v418_v46, %v278_v28  ;;  %v275_v41 = vld [vmem:[%s542_s0 + $0xf8] sm:$0xff]  ;;  %v111_v45 = vmul.f32 %v271_v34, %v368_v21 }
  0x11   :  { %v100_v37 = vadd.f32 %v96_v13, %v86_v27  ;;  %v73_v38 = vadd.f32 %v69_v19, %v59_v8  ;;  %v279_v48 = vld [vmem:[%s542_s0 + $0x118] sm:$0xff]  ;;  %v125_v51 = vmul.f32 %v275_v41, %v384_v29 }
  0x12   :  { %v126_v25 = vadd.f32 %v122_v52, %v112_v15  ;;  %v127_v40 = vadd.f32 %v123_v22, %v113_v31  ;;  %v139_v56 = vmul.f32 %v418_v46, %v279_v48 }
  0x13   :  { %v114_v43 = vadd.f32 %v110_v23, %v100_v37  ;;  %v87_v44 = vadd.f32 %v83_v30, %v73_v38 }
  0x14   :  { %v140_v35 = vadd.f32 %v136_v9, %v126_v25  ;;  %v141_v47 = vadd.f32 %v137_v32, %v127_v40 }
  0x15   :  { %v128_v17 = vadd.f32 %v124_v33, %v114_v43  ;;  %v101_v50 = vadd.f32 %v97_v39, %v87_v44 }
  0x16   :  { %v148_v42 = vmul.f32 %v285_v26, %v140_v35  ;;  %v149_v52 = vmul.f32 %v285_v26, %v141_v47 }
  0x17   :  { %v142_v54 = vadd.f32 %v138_v12, %v128_v17  ;;  %v115_v55 = vadd.f32 %v111_v45, %v101_v50 }
  0x18   :  { %v494_v49 = vadd.f32 %v286_v36, %v148_v42  ;;  %v499_v57 = vadd.f32 %v286_v36, %v149_v52 }
  0x19   :  { %v150_v21 = vmul.f32 %v285_v26, %v142_v54  ;;  %v129_v58 = vadd.f32 %v125_v51, %v115_v55 }
  0x1a   :  { %v280_v53 = vmul.f32 -1.442695, %v494_v49  ;;  %v281_v59 = vmul.f32 -1.442695, %v499_v57 }
  0x1b   :  { %v502_v60 = vadd.f32 %v286_v36, %v150_v21  ;;  %v143_v61 = vadd.f32 %v139_v56, %v129_v58 }
  0x1c   :  { %287 = vpow2.f32 %v280_v53 }
  0x1d   :  { %289 = vpow2.f32 %v281_v59  ;;  %v282_v29 = vmul.f32 -1.442695, %v502_v60  ;;  %v151_v62 = vmul.f32 %v285_v26, %v143_v61 }
  0x1f   :  { %291 = vpow2.f32 %v282_v29  ;;  %v505_v0 = vadd.f32 %v286_v36, %v151_v62 }
  0x21   :  { %v283_v46 = vmul.f32 -1.442695, %v505_v0 }
  0x22   :  { %v288_v63 = vpop.eup %287 }
  0x23   :  { %v172_v1 = vadd.f32 1.0, %v288_v63  ;;  %v290_v3 = vpop.eup %289 }
  0x24   :  { %v173_v5 = vadd.f32 1.0, %v290_v3 }
  0x25   :  { %293 = vrcp.f32 %v172_v1  ;;  %v292_v2 = vpop.eup %291  ;;  %v187_v13 = vand.u32 2147483648, %v172_v1  ;;  %vm181_vm0 = vweird.f32 %v172_v1  ;;  %v185_v18 = vand.u32 2147483647, %v172_v1 }
  0x26   :  { %295 = vpow2.f32 %v283_v46  ;;  %v174_v7 = vadd.f32 1.0, %v292_v2  ;;  %v202_v6 = vand.u32 2147483648, %v173_v5  ;;  %vm196_vm2 = vweird.f32 %v173_v5 }
  0x27   :  { %297 = vrcp.f32 %v173_v5  ;;  %v188_v20 = vor.u32 1.1754944e-38, %v187_v13  ;;  %v200_v25 = vand.u32 2147483647, %v173_v5  ;;  %vm186_vm5 = vcmp.eq.f32.partialorder %v185_v18, 8.507059e+37 }
  0x28   :  { %299 = vrcp.f32 %v174_v7  ;;  %v215_v26 = vand.u32 2147483647, %v174_v7  ;;  %v217_v8 = vand.u32 2147483648, %v174_v7  ;;  %v203_v31 = vor.u32 1.1754944e-38, %v202_v6 }
  0x29   :  { %vm211_vm7 = vweird.f32 %v174_v7  ;;  %vm201_vm9 = vcmp.eq.f32.partialorder %v200_v25, 8.507059e+37 }
  0x2a   :  { %vm518_vm10 = vcmp.eq.f32.partialorder %v215_v26, 8.507059e+37  ;;  %v218_v12 = vor.u32 1.1754944e-38, %v217_v8 }
  0x2b   :  { %v294_v9 = vpop.eup %293 }
  0x2c   :  { %v296_v10 = vpop.eup %295  ;;  %v177_v11 = vmul.f32 %v294_v9, %v172_v1  ;;  %vm182_vm1 = vweird.f32 %v294_v9 }
  0x2d   :  { %v175_v14 = vadd.f32 1.0, %v296_v10  ;;  %v298_v15 = vpop.eup %297  ;;  %vm508_vm3 = vmor %vm181_vm0, %vm182_vm1 }
  0x2e   :  { %v178_v16 = vsub.f32 1.0, %v177_v11  ;;  %v192_v4 = vmul.f32 %v298_v15, %v173_v5  ;;  %v300_v22 = vpop.eup %299  ;;  %vm197_vm4 = vweird.f32 %v298_v15 }
  0x2f   :  { %301 = vrcp.f32 %v175_v14  ;;  %v207_v28 = vmul.f32 %v300_v22, %v174_v7  ;;  %vm514_vm6 = vmor %vm196_vm2, %vm197_vm4  ;;  %vm212_vm8 = vweird.f32 %v300_v22  ;;  %vm226_vm12 = vweird.f32 %v175_v14 }
  0x30   :  { %v179_v19 = vmul.f32 %v294_v9, %v178_v16  ;;  %v193_v24 = vsub.f32 1.0, %v192_v4  ;;  %vm213_vm11 = vmor %vm211_vm7, %vm212_vm8  ;;  %v230_v43 = vand.u32 2147483647, %v175_v14  ;;  %v232_v44 = vand.u32 2147483648, %v175_v14 }
  0x31   :  { %v208_v34 = vsub.f32 1.0, %v207_v28 }
  0x32   :  { %v180_v27 = vadd.f32 %v294_v9, %v179_v19  ;;  %v194_v30 = vmul.f32 %v298_v15, %v193_v24  ;;  %v233_v52 = vor.u32 1.1754944e-38, %v232_v44  ;;  %vm231_vm15 = vcmp.eq.f32.partialorder %v230_v43, 8.507059e+37 }
  0x33   :  { %v209_v40 = vmul.f32 %v300_v22, %v208_v34 }
  0x34   :  { %v184_v32 = vsel %vm508_vm3, %v294_v9, %v180_v27  ;;  %v195_v37 = vadd.f32 %v298_v15, %v194_v30 }
  0x35   :  { %v302_v35 = vpop.eup %301  ;;  %v189_v36 = vsel %vm186_vm5, %v188_v20, %v184_v32  ;;  %v210_v47 = vadd.f32 %v300_v22, %v209_v40 }
  0x36   :  { %v236_v39 = vmul.f32 %v189_v36, %v494_v49  ;;  %v222_v41 = vmul.f32 %v302_v35, %v175_v14  ;;  %v199_v42 = vsel %vm514_vm6, %v298_v15, %v195_v37  ;;  %vm227_vm13 = vweird.f32 %v302_v35 }
  0x37   :  { %v204_v45 = vsel %vm201_vm9, %v203_v31, %v199_v42  ;;  %v214_v17 = vsel %vm213_vm11, %v300_v22, %v210_v47  ;;  %vm228_vm14 = vmor %vm226_vm12, %vm227_vm13 }
  0x38   :  { %240 = vst [vmem:[%s546_s4] sm:$0xff] %v236_v39  ;;  %v223_v48 = vsub.f32 1.0, %v222_v41  ;;  %v237_v49 = vmul.f32 %v204_v45, %v499_v57  ;;  %v219_v51 = vsel %vm518_vm10, %v218_v12, %v214_v17 }
  0x39   :  { %v238_v53 = vmul.f32 %v219_v51, %v502_v60 }
  0x3a   :  { %v224_v50 = vmul.f32 %v302_v35, %v223_v48  ;;  %241 = vst [vmem:[%s546_s4 + $0x8] sm:$0xff] %v237_v49 }
  0x3b   :  { %242 = vst [vmem:[%s546_s4 + $0x10] sm:$0xff] %v238_v53 }
  0x3c   :  { %v225_v54 = vadd.f32 %v302_v35, %v224_v50 }
  0x3e   :  { %v229_v55 = vsel %vm228_vm14, %v302_v35, %v225_v54 }
  0x3f   :  { %v234_v56 = vsel %vm231_vm15, %v233_v52, %v229_v55 }
  0x40   :  { %v239_v57 = vmul.f32 %v234_v56, %v505_v0 }
  0x42   :  { %243 = vst [vmem:[%s546_s4 + $0x18] sm:$0xff] %v239_v57 }

// kernel: _lambda_.17
= control target key start
LH: loop header
LB: loop body
LE: loop exit
PB: predicated region body
PF: predicated region fallthrough
CT: control target
= control target key end

     0   :  { %v193_v2 = vmov 0.0   ;;  %vm46_vm0 = vcmask 1041409   ;;  %s341_s1 = inlined_call_operand.vmem [shape: f32[128,128], index: 1, kind: input, shape index: {}]   ;;  %s342_s0 = inlined_call_operand.vmem [shape: f32[2,16,128], index: 0, kind: input, shape index: {}]   ;;  %s343_s2 = inlined_call_operand.vmem [shape: f32[1,128], index: 2, kind: input, shape index: {}]   ;;  %s344_s4 = inlined_call_operand.vmem [shape: f32[1,128], index: 4, kind: input, shape index: {}]   ;;  %s345_s3 = inlined_call_operand.vmem [shape: f32[128,128], index: 3, kind: input, shape index: {}]   ;;  %s346_s5 = inlined_call_operand.vmem [shape: f32[2,128], index: 5, kind: output, shape index: {}]  }
   0x1   :  { %v71_v0 = vld [vmem:[%s341_s1 + $0x78] sm:$0xff]  ;;  %v70_v1 = vld [vmem:[%s341_s1 + $0x70] sm:$0xff]  ;;  %24 = vst [vmem:[#allocation2] sm:$0x3] %v193_v2  ;;  %v69_v3 = vld [vmem:[%s341_s1 + $0x68] sm:$0xff] }
   0x2   :  { %76 = vmatpush.msra.mxu0 %v71_v0  ;;  %v68_v4 = vld [vmem:[%s341_s1 + $0x60] sm:$0xff]  ;;  %v67_v5 = vld [vmem:[%s341_s1 + $0x58] sm:$0xff]  ;;  %v27_v7 = vld [vmem:[%s342_s0 + $0x8] sm:$0xff] }
   0x3   :  { %v26_v6 = vld [vmem:[%s342_s0] sm:$0xff]  ;;  %v28_v8 = vld [vmem:[%s342_s0 + $0x10] sm:$0xff]  ;;  %v29_v9 = vld [vmem:[%s342_s0 + $0x18] sm:$0xff] }
   0x4   :  { %77 = vmatpush.msra.mxu0 %v70_v1  ;;  %v30_v10 = vadd.f32 %v27_v7, %v26_v6  ;;  %v37_v11 = vadd.f32 %v29_v9, %v28_v8  ;;  %v66_v12 = vld [vmem:[%s341_s1 + $0x50] sm:$0xff]  ;;  %v65_v15 = vld [vmem:[%s341_s1 + $0x48] sm:$0xff]  ;;  %v64_v18 = vld [vmem:[%s341_s1 + $0x40] sm:$0xff] }
   0x5   :  { %v63_v21 = vld [vmem:[%s341_s1 + $0x38] sm:$0xff]  ;;  %v62_v24 = vld [vmem:[%s341_s1 + $0x30] sm:$0xff]  ;;  %v61_v27 = vld [vmem:[%s341_s1 + $0x28] sm:$0xff] }
   0x6   :  { %78 = vmatpush.msra.mxu0 %v69_v3  ;;  %v31_v13 = vrot.slane %v30_v10, 4  ;;  %v38_v14 = vrot.slane %v37_v11, 4  ;;  %v60_v31 = vld [vmem:[%s341_s1 + $0x20] sm:$0xff]  ;;  %v59_v33 = vld [vmem:[%s341_s1 + $0x18] sm:$0xff]  ;;  %v58_v35 = vld [vmem:[%s341_s1 + $0x10] sm:$0xff] }
   0x7   :  { %v57_v36 = vld [vmem:[%s341_s1 + $0x8] sm:$0xff]  ;;  %v56_v37 = vld [vmem:[%s341_s1] sm:$0xff]  ;;  %v131_v40 = vld [vmem:[%s345_s3 + $0x78] sm:$0xff] }
   0x8   :  { %79 = vmatpush.msra.mxu0 %v68_v4  ;;  %v32_v16 = vadd.f32 %v31_v13, %v30_v10  ;;  %v39_v17 = vadd.f32 %v38_v14, %v37_v11  ;;  %v25_v29 = vld [vmem:[#allocation2] sm:$0x3]  ;;  %136 = vmatpush.msra.mxu1 %v131_v40  ;;  %v130_v41 = vld [vmem:[%s345_s3 + $0x70] sm:$0xff]  ;;  %v129_v42 = vld [vmem:[%s345_s3 + $0x68] sm:$0xff] }
   0x9   :  { %v128_v43 = vld [vmem:[%s345_s3 + $0x60] sm:$0xff]  ;;  %v127_v44 = vld [vmem:[%s345_s3 + $0x58] sm:$0xff]  ;;  %v126_v45 = vld [vmem:[%s345_s3 + $0x50] sm:$0xff] }
   0xa   :  { %80 = vmatpush.msra.mxu0 %v67_v5  ;;  %v33_v19 = vrot.slane %v32_v16, 2  ;;  %v40_v20 = vrot.slane %v39_v17, 2  ;;  %137 = vmatpush.msra.mxu1 %v130_v41  ;;  %v125_v46 = vld [vmem:[%s345_s3 + $0x48] sm:$0xff]  ;;  %v124_v47 = vld [vmem:[%s345_s3 + $0x40] sm:$0xff]  ;;  %v123_v48 = vld [vmem:[%s345_s3 + $0x38] sm:$0xff] }
   0xb   :  { %v122_v49 = vld [vmem:[%s345_s3 + $0x30] sm:$0xff]  ;;  %v121_v50 = vld [vmem:[%s345_s3 + $0x28] sm:$0xff]  ;;  %v120_v51 = vld [vmem:[%s345_s3 + $0x20] sm:$0xff] }
   0xc   :  { %81 = vmatpush.msra.mxu0 %v66_v12  ;;  %v34_v22 = vadd.f32 %v33_v19, %v32_v16  ;;  %v41_v23 = vadd.f32 %v40_v20, %v39_v17  ;;  %138 = vmatpush.msra.mxu1 %v129_v42  ;;  %v119_v52 = vld [vmem:[%s345_s3 + $0x18] sm:$0xff]  ;;  %v118_v53 = vld [vmem:[%s345_s3 + $0x10] sm:$0xff]  ;;  %v117_v54 = vld [vmem:[%s345_s3 + $0x8] sm:$0xff] }
   0xd   :  { %v183_v55 = vld [vmem:[%s343_s2] ss:$0 sm:$0xff] }
   0xe   :  { %82 = vmatpush.msra.mxu0 %v65_v15  ;;  %v35_v25 = vrot.slane %v34_v22, 1  ;;  %v42_v26 = vrot.slane %v41_v23, 1  ;;  %139 = vmatpush.msra.mxu1 %v128_v43  ;;  %v116_v56 = vld [vmem:[%s345_s3] sm:$0xff] }
   0xf   :  { %v184_v9 = vld [vmem:[%s344_s4] ss:$0 sm:$0xff] }
  0x10   :  { %83 = vmatpush.msra.mxu0 %v64_v18  ;;  %v36_v28 = vadd.f32 %v35_v25, %v34_v22  ;;  %v43_v30 = vadd.f32 %v42_v26, %v41_v23  ;;  %140 = vmatpush.msra.mxu1 %v127_v44 }
  0x12   :  { %84 = vmatpush.msra.mxu0 %v63_v21  ;;  %v47_v32 = vsel %vm46_vm0, %v43_v30, %v36_v28  ;;  %141 = vmatpush.msra.mxu1 %v126_v45 }
  0x13   :  { %v49_v34 = vadd.f32 %v47_v32, %v25_v29 }
  0x14   :  { %85 = vmatpush.msra.mxu0 %v62_v24  ;;  %142 = vmatpush.msra.mxu1 %v125_v46 }
  0x15   :  { %50 = vst [vmem:[#allocation2] sm:$0x3] %v49_v34 }
  0x16   :  { %86 = vmatpush.msra.mxu0 %v61_v27  ;;  %143 = vmatpush.msra.mxu1 %v124_v47 }
  0x18   :  { %87 = vmatpush.msra.mxu0 %v60_v31  ;;  %144 = vmatpush.msra.mxu1 %v123_v48 }
  0x1a   :  { %88 = vmatpush.msra.mxu0 %v59_v33  ;;  %145 = vmatpush.msra.mxu1 %v122_v49 }
  0x1c   :  { %89 = vmatpush.msra.mxu0 %v58_v35  ;;  %v54_v38 = vld [vmem:[#allocation2] sm:$0x3]  ;;  %146 = vmatpush.msra.mxu1 %v121_v50 }
  0x1d   :  { %v55_v39 = vmul.f32 0.0625, %v54_v38 }
  0x1e   :  { %90 = vmatpush.msra.mxu0 %v57_v36  ;;  %147 = vmatpush.msra.mxu1 %v120_v51 }
  0x20   :  { %91 = vmatpush.msra.mxu0 %v56_v37  ;;  %148 = vmatpush.msra.mxu1 %v119_v52 }
  0x21   :  { %92 = vmatmul.f32.vlgmr.msra.gmra.mxu0 %v55_v39 }
  0x22   :  { %149 = vmatpush.msra.mxu1 %v118_v53 }
  0x24   :  { %150 = vmatpush.msra.mxu1 %v117_v54 }
  0x26   :  { %151 = vmatpush.msra.mxu1 %v116_v56 }
  0x9e   :  { %v93_v57 = vpop.f32.mrf.mxu0 }
  0x9f   :  { %v94_v58 = vadd.f32 %v183_v55, %v93_v57 }
  0xa1   :  { %v180_v59 = vmul.f32 -1.442695, %v94_v58 }
  0xa3   :  { %185 = vpow2.f32 %v180_v59 }
  0xa9   :  { %v186_v60 = vpop.eup %185 }
  0xaa   :  { %v99_v61 = vadd.f32 1.0, %v186_v60 }
  0xac   :  { %187 = vrcp.f32 %v99_v61  ;;  %v111_v1 = vand.u32 2147483648, %v99_v61  ;;  %v109_v3 = vand.u32 2147483647, %v99_v61  ;;  %vm105_vm2 = vweird.f32 %v99_v61 }
  0xae   :  { %v112_v5 = vor.u32 1.1754944e-38, %v111_v1  ;;  %vm110_vm4 = vcmp.eq.f32.partialorder %v109_v3, 8.507059e+37 }
  0xb2   :  { %v188_v62 = vpop.eup %187 }
  0xb3   :  { %v101_v63 = vmul.f32 %v188_v62, %v99_v61  ;;  %vm106_vm1 = vweird.f32 %v188_v62 }
  0xb4   :  { %vm107_vm3 = vmor %vm105_vm2, %vm106_vm1 }
  0xb5   :  { %v102_v0 = vsub.f32 1.0, %v101_v63 }
  0xb7   :  { %v103_v2 = vmul.f32 %v188_v62, %v102_v0 }
  0xb9   :  { %v104_v4 = vadd.f32 %v188_v62, %v103_v2 }
  0xbb   :  { %v108_v6 = vsel %vm107_vm3, %v188_v62, %v104_v4 }
  0xbc   :  { %v113_v7 = vsel %vm110_vm4, %v112_v5, %v108_v6 }
  0xbd   :  { %v115_v8 = vmul.f32 %v113_v7, %v94_v58 }
  0xbf   :  { %152 = vmatmul.f32.vlgmr.msra.gmra.mxu1 %v115_v8 }
 0x13c   :  { %v153_v10 = vpop.f32.mrf.mxu1 }
 0x13d   :  { %v154_v11 = vadd.f32 %v184_v9, %v153_v10 }
 0x13f   :  { %v181_v12 = vmul.f32 -1.442695, %v154_v11 }
 0x141   :  { %189 = vpow2.f32 %v181_v12 }
 0x147   :  { %v190_v13 = vpop.eup %189 }
 0x148   :  { %v159_v14 = vadd.f32 1.0, %v190_v13 }
 0x14a   :  { %191 = vrcp.f32 %v159_v14  ;;  %v171_v18 = vand.u32 2147483648, %v159_v14  ;;  %v169_v20 = vand.u32 2147483647, %v159_v14  ;;  %vm165_vm6 = vweird.f32 %v159_v14 }
 0x14c   :  { %v172_v22 = vor.u32 1.1754944e-38, %v171_v18  ;;  %vm170_vm8 = vcmp.eq.f32.partialorder %v169_v20, 8.507059e+37 }
 0x150   :  { %v192_v15 = vpop.eup %191 }
 0x151   :  { %v161_v16 = vmul.f32 %v192_v15, %v159_v14  ;;  %vm166_vm5 = vweird.f32 %v192_v15 }
 0x152   :  { %vm167_vm7 = vmor %vm165_vm6, %vm166_vm5 }
 0x153   :  { %v162_v17 = vsub.f32 1.0, %v161_v16 }
 0x155   :  { %v163_v19 = vmul.f32 %v192_v15, %v162_v17 }
 0x157   :  { %v164_v21 = vadd.f32 %v192_v15, %v163_v19 }
 0x159   :  { %v168_v23 = vsel %vm167_vm7, %v192_v15, %v164_v21 }
 0x15a   :  { %v173_v24 = vsel %vm170_vm8, %v172_v22, %v168_v23 }
 0x15b   :  { %175 = vst [vmem:[%s346_s5] sm:$0x3] %v173_v24 }

// kernel: _lambda_.19
= control target key start
LH: loop header
LB: loop body
LE: loop exit
PB: predicated region body
PF: predicated region fallthrough
CT: control target
= control target key end

     0   :  { %s328_s1 = inlined_call_operand.vmem [shape: bf16[128,128], index: 1, kind: input, shape index: {}]   ;;  %s329_s2 = inlined_call_operand.vmem [shape: f32[1,128], index: 2, kind: input, shape index: {}]   ;;  %s330_s3 = inlined_call_operand.vmem [shape: f32[1,128], index: 3, kind: input, shape index: {}]   ;;  %s331_s0 = inlined_call_operand.vmem [shape: bf16[32,128], index: 0, kind: input, shape index: {}]   ;;  %s332_s4 = inlined_call_operand.vmem [shape: f32[32,128], index: 4, kind: input, shape index: {}]   ;;  %s333_s5 = inlined_call_operand.vmem [shape: f32[32,128], index: 5, kind: output, shape index: {}]  }
   0x1   :  { %v227_v0 = vld [vmem:[%s328_s1 + $0x38] sm:$0xff]  ;;  %v226_v1 = vld [vmem:[%s328_s1 + $0x30] sm:$0xff]  ;;  %v225_v2 = vld [vmem:[%s328_s1 + $0x28] sm:$0xff] }
   0x2   :  { %112 = vmatpush.bf16.msra.mxu0 %v227_v0  ;;  %228 = vmatpush.bf16.msra.mxu1 %v227_v0  ;;  %v224_v3 = vld [vmem:[%s328_s1 + $0x20] sm:$0xff]  ;;  %v223_v4 = vld [vmem:[%s328_s1 + $0x18] sm:$0xff]  ;;  %v222_v5 = vld [vmem:[%s328_s1 + $0x10] sm:$0xff] }
   0x3   :  { %v221_v6 = vld [vmem:[%s328_s1 + $0x8] sm:$0xff]  ;;  %v220_v7 = vld [vmem:[%s328_s1] sm:$0xff]  ;;  %v164_v17 = vld [vmem:[%s332_s4 + $0x10] sm:$0xff] }
   0x4   :  { %v218_v8 = vld [vmem:[%s331_s0] sm:$0xff]  ;;  %v219_v9 = vld [vmem:[%s331_s0 + $0x8] sm:$0xff]  ;;  %v165_v27 = vld [vmem:[%s332_s4 + $0x18] sm:$0xff] }
   0x5   :  { %v236_v10 = vld [vmem:[%s329_s2] ss:$0 sm:$0xff]  ;;  %v163_v26 = vld [vmem:[%s332_s4 + $0x8] sm:$0xff] }
   0x6   :  { %113 = vmatpush.bf16.msra.mxu0 %v226_v1  ;;  %229 = vmatpush.bf16.msra.mxu1 %v226_v1  ;;  %v237_v11 = vld [vmem:[%s330_s3] ss:$0 sm:$0xff] }
   0x7   :  { %v162_v16 = vld [vmem:[%s332_s4] sm:$0xff] }
   0xa   :  { %114 = vmatpush.bf16.msra.mxu0 %v225_v2  ;;  %230 = vmatpush.bf16.msra.mxu1 %v225_v2 }
   0xe   :  { %115 = vmatpush.bf16.msra.mxu0 %v224_v3  ;;  %231 = vmatpush.bf16.msra.mxu1 %v224_v3 }
  0x12   :  { %116 = vmatpush.bf16.msra.mxu0 %v223_v4  ;;  %232 = vmatpush.bf16.msra.mxu1 %v223_v4 }
  0x16   :  { %117 = vmatpush.bf16.msra.mxu0 %v222_v5  ;;  %233 = vmatpush.bf16.msra.mxu1 %v222_v5 }
  0x1a   :  { %118 = vmatpush.bf16.msra.mxu0 %v221_v6  ;;  %234 = vmatpush.bf16.msra.mxu1 %v221_v6 }
  0x1e   :  { %119 = vmatpush.bf16.msra.mxu0 %v220_v7  ;;  %235 = vmatpush.bf16.msra.mxu1 %v220_v7 }
  0x21   :  { %120 = vmatmul.bf16.vlgmr.msra.gmra.mxu0 %v218_v8  ;;  %125 = vmatmul.bf16.vlgmr.msra.gmra.mxu1 %v219_v9 }
  0x9e   :  { %v121_v12 = vpop.f32.mrf.mxu0  ;;  %v126_v13 = vpop.f32.mrf.mxu1 }
  0x9f   :  { %v150_v14 = vmul.f32 %v236_v10, %v121_v12  ;;  %v152_v15 = vmul.f32 %v236_v10, %v126_v13 }
  0xa1   :  { %v158_v18 = vadd.f32 %v237_v11, %v150_v14  ;;  %v160_v19 = vadd.f32 %v237_v11, %v152_v15 }
  0xa3   :  { %v166_v20 = vadd.f32 %v162_v16, %v158_v18  ;;  %v168_v21 = vadd.f32 %v164_v17, %v160_v19 }
  0xa5   :  { %170 = vst [vmem:[%s333_s5] sm:$0xff] %v166_v20 }
  0xa6   :  { %172 = vst [vmem:[%s333_s5 + $0x10] sm:$0xff] %v168_v21  ;;  %v123_v22 = vpop.f32.mrf.mxu0  ;;  %v128_v23 = vpop.f32.mrf.mxu1 }
  0xa7   :  { %v151_v24 = vmul.f32 %v236_v10, %v123_v22  ;;  %v153_v25 = vmul.f32 %v236_v10, %v128_v23 }
  0xa9   :  { %v159_v28 = vadd.f32 %v237_v11, %v151_v24  ;;  %v161_v29 = vadd.f32 %v237_v11, %v153_v25 }
  0xab   :  { %v167_v30 = vadd.f32 %v163_v26, %v159_v28  ;;  %v169_v31 = vadd.f32 %v165_v27, %v161_v29 }
  0xad   :  { %171 = vst [vmem:[%s333_s5 + $0x8] sm:$0xff] %v167_v30 }
  0xae   :  { %173 = vst [vmem:[%s333_s5 + $0x18] sm:$0xff] %v169_v31 }

// kernel: _lambda_.21
= control target key start
LH: loop header
LB: loop body
LE: loop exit
PB: predicated region body
PF: predicated region fallthrough
CT: control target
= control target key end

     0   :  { %v137_v2 = vmov 0.0   ;;  %s225_s0 = inlined_call_operand.vmem [shape: f32[2,16,128], index: 0, kind: input, shape index: {}]   ;;  %s226_s1 = inlined_call_operand.vmem [shape: f32[128,128], index: 1, kind: input, shape index: {}]   ;;  %s227_s2 = inlined_call_operand.vmem [shape: f32[1,128], index: 2, kind: input, shape index: {}]   ;;  %s228_s3 = inlined_call_operand.hbm [shape: f32[2,128], index: 3, kind: output, shape index: {}]  }
   0x1   :  { %v66_v0 = vld [vmem:[%s226_s1 + $0x78] sm:$0xff]  ;;  %v65_v1 = vld [vmem:[%s226_s1 + $0x70] sm:$0xff]  ;;  %19 = vst [vmem:[#allocation2] sm:$0x3] %v137_v2  ;;  %v64_v3 = vld [vmem:[%s226_s1 + $0x68] sm:$0xff] }
   0x2   :  { %71 = vmatpush.msra.mxu0 %v66_v0  ;;  %v63_v4 = vld [vmem:[%s226_s1 + $0x60] sm:$0xff]  ;;  %v62_v5 = vld [vmem:[%s226_s1 + $0x58] sm:$0xff]  ;;  %v22_v7 = vld [vmem:[%s225_s0 + $0x8] sm:$0xff] }
   0x3   :  { %v21_v6 = vld [vmem:[%s225_s0] sm:$0xff]  ;;  %v23_v8 = vld [vmem:[%s225_s0 + $0x10] sm:$0xff]  ;;  %v24_v9 = vld [vmem:[%s225_s0 + $0x18] sm:$0xff] }
   0x4   :  { %72 = vmatpush.msra.mxu0 %v65_v1  ;;  %v25_v10 = vadd.f32 %v22_v7, %v21_v6  ;;  %v32_v11 = vadd.f32 %v24_v9, %v23_v8 }
   0x6   :  { %73 = vmatpush.msra.mxu0 %v64_v3 }
   0x8   :  { %74 = vmatpush.msra.mxu0 %v63_v4 }
   0x9   :  { %8 = vsyncpa [#allocation4], 0  ;;  %v61_v12 = vld [vmem:[%s226_s1 + $0x50] sm:$0xff]  ;;  %v26_v13 = vrot.slane %v25_v10, 4  ;;  %v33_v14 = vrot.slane %v32_v11, 4  ;;  %v60_v15 = vld [vmem:[%s226_s1 + $0x48] sm:$0xff] }
   0xa   :  { %75 = vmatpush.msra.mxu0 %v62_v5  ;;  %v59_v18 = vld [vmem:[%s226_s1 + $0x40] sm:$0xff]  ;;  %v58_v21 = vld [vmem:[%s226_s1 + $0x38] sm:$0xff]  ;;  %v57_v24 = vld [vmem:[%s226_s1 + $0x30] sm:$0xff]  ;;  %vm41_vm0 = vcmask 1041409   ;;  %s138_s26 = smov [#allocation3]   ;;  %s99_s30 = sshll.u32 %s228_s3, 4  ;;  %s100_s30 = int_to_ptr.hbm [resolvable:$true] %s99_s30 }
   0xb   :  { %v27_v16 = vadd.f32 %v26_v13, %v25_v10  ;;  %v34_v17 = vadd.f32 %v33_v14, %v32_v11  ;;  %v56_v27 = vld [vmem:[%s226_s1 + $0x28] sm:$0xff]  ;;  %v20_v29 = vld [vmem:[#allocation2] sm:$0x3]  ;;  %v54_v33 = vld [vmem:[%s226_s1 + $0x18] sm:$0xff]  ;;  %s97_s27 = sshll.u32 %s138_s26, 4  ;;  %s98_s27 = int_to_ptr.vmem [resolvable:$true] %s97_s27 }
   0xc   :  { %76 = vmatpush.msra.mxu0 %v61_v12  ;;  %v55_v31 = vld [vmem:[%s226_s1 + $0x20] sm:$0xff]  ;;  %v53_v35 = vld [vmem:[%s226_s1 + $0x10] sm:$0xff]  ;;  %v52_v36 = vld [vmem:[%s226_s1 + $0x8] sm:$0xff] }
   0xd   :  { %v28_v19 = vrot.slane %v27_v16, 2  ;;  %v35_v20 = vrot.slane %v34_v17, 2  ;;  %v51_v37 = vld [vmem:[%s226_s1] sm:$0xff] }
   0xe   :  { %77 = vmatpush.msra.mxu0 %v60_v15  ;;  %v110_v40 = vld [vmem:[%s227_s2] ss:$0 sm:$0xff] }
   0xf   :  { %v29_v22 = vadd.f32 %v28_v19, %v27_v16  ;;  %v36_v23 = vadd.f32 %v35_v20, %v34_v17 }
  0x10   :  { %78 = vmatpush.msra.mxu0 %v59_v18 }
  0x11   :  { %v30_v25 = vrot.slane %v29_v22, 1  ;;  %v37_v26 = vrot.slane %v36_v23, 1 }
  0x12   :  { %79 = vmatpush.msra.mxu0 %v58_v21 }
  0x13   :  { %v31_v28 = vadd.f32 %v30_v25, %v29_v22  ;;  %v38_v30 = vadd.f32 %v37_v26, %v36_v23 }
  0x14   :  { %80 = vmatpush.msra.mxu0 %v57_v24 }
  0x15   :  { %v42_v32 = vsel %vm41_vm0, %v38_v30, %v31_v28 }
  0x16   :  { %81 = vmatpush.msra.mxu0 %v56_v27  ;;  %v44_v34 = vadd.f32 %v42_v32, %v20_v29 }
  0x18   :  { %82 = vmatpush.msra.mxu0 %v55_v31  ;;  %45 = vst [vmem:[#allocation2] sm:$0x3] %v44_v34 }
  0x1a   :  { %83 = vmatpush.msra.mxu0 %v54_v33 }
  0x1c   :  { %84 = vmatpush.msra.mxu0 %v53_v35 }
  0x1e   :  { %85 = vmatpush.msra.mxu0 %v52_v36 }
  0x1f   :  { %v49_v38 = vld [vmem:[#allocation2] sm:$0x3] }
  0x20   :  { %86 = vmatpush.msra.mxu0 %v51_v37  ;;  %v50_v39 = vmul.f32 0.0625, %v49_v38 }
  0x22   :  { %87 = vmatmul.f32.vlgmr.msra.gmra.mxu0 %v50_v39 }
  0x9f   :  { %v88_v41 = vpop.f32.mrf.mxu0 }
  0xa0   :  { %v89_v42 = vadd.f32 %v110_v40, %v88_v41 }
  0xa2   :  { %91 = vst [vmem:[#allocation3] sm:$0x3] %v89_v42 }
  0xa3   :  { %102 = dma.vmem_to_hbm [thread:$0]  %s98_s27, 32, %s100_s30, [#allocation4]  }
  0xa4   :  { %135 = dma.done.wait [#allocation4], 32  }
  0xa5   :  { %136 = vsyncadd [#allocation4], 4294967264 }
  0xa6   :  { %107 = vsyncpa [#allocation4], 1 }

</bundles_post_ra>
